<compile_context>
chip_gen: v5e
topology: v5e:2x2
jax: 0.10.0
libtpu: 0.0.40
codegen_flags: <defaults>
</compile_context>

<pallas_src>
import functools

import jax
import jax.numpy as jnp
from jax import lax
from jax.experimental import pallas as pl
from jax.experimental.pallas import tpu as pltpu

HIDDEN_DIM = 32          # LSTM hidden size H
DECODER_DIM = 64         # decoder hidden dim
BATCH = 2
SEQ = 8
N_SENTS_PER_SUMM = 3     # sentences per sampled summary
N_SAMPLES = 2            # sampled summaries per document

_VMEM = pl.BlockSpec(memory_space=pltpu.MemorySpace.VMEM)
_SMEM = pl.BlockSpec(memory_space=pltpu.MemorySpace.SMEM)


# ----------------------------------------------------------------------------
# Fused forward kernel
# ----------------------------------------------------------------------------
def _fused_forward_kernel(idx_ref, x_ref,
                          wih0_ref, whh0_ref, b0_ref,
                          wih1_ref, whh1_ref, b1_ref,
                          wt1_ref, bt1_ref, wt2_ref, bt2_ref,
                          wd1_ref, bd1_ref, wd2_ref, bd2_ref,
                          sent_ref, doc_ref, theta_ref, scores_ref,
                          sent_tm,
                          *, seq_len, batch, hidden, n_samples, n_sents):
    T, B, H = seq_len, batch, hidden
    H2 = 2 * H

    def bilstm_layer(x_rows, wih_ref, whh_ref, b_ref):
        """x_rows: list of T (B, in_dim) values.  Fused fwd+bwd recurrence.

        Gate column layout (8H = 4 gate blocks of 2H): [i|f|g|o], each block
        = [fwd(H) | bwd(H)].  h_cat / c_cat = [fwd(H) | bwd(H)].
        """
        # Hoisted input projection for both directions, all timesteps.
        # Row t of x2 = [x[t] | x[T-1-t]] so one matmul feeds fwd(t) and bwd(T-1-t).
        x2 = jnp.concatenate(
            [jnp.concatenate([x_rows[t], x_rows[T - 1 - t]], axis=-1)
             for t in range(T)], axis=0)                                # (T*B, 2*in)
        gx = jnp.dot(x2, wih_ref[...],
                     preferred_element_type=jnp.float32) + b_ref[...]  # (T*B, 8H)
        whh = whh_ref[...]                                              # (2H, 8H)

        h_cat = jnp.zeros((B, H2), jnp.float32)
        c_cat = jnp.zeros((B, H2), jnp.float32)
        out_f = [None] * T
        out_b = [None] * T
        for t in range(T):        # fully unrolled, T is static
            gates = gx[t * B:(t + 1) * B, :] + jnp.dot(
                h_cat, whh, preferred_element_type=jnp.float32)         # (B, 8H)
            sig = jax.nn.sigmoid(gates)    # whole-vreg EUP activations
            tnh = jnp.tanh(gates)
            i = sig[:, 0 * H2:1 * H2]
            f = sig[:, 1 * H2:2 * H2]
            g = tnh[:, 2 * H2:3 * H2]
            o = sig[:, 3 * H2:4 * H2]
            c_cat = f * c_cat + i * g
            h_cat = o * jnp.tanh(c_cat)
            out_f[t] = h_cat[:, :H]            # fwd hidden at time t
            out_b[T - 1 - t] = h_cat[:, H:]    # bwd hidden at time T-1-t
        return out_f, out_b, h_cat

    # ---- sl_encoder layer 0 ----
    x_rows0 = [x_ref[:, t, :] for t in range(T)]
    f0, b0, hfin0 = bilstm_layer(x_rows0, wih0_ref, whh0_ref, b0_ref)

    # ---- sl_encoder layer 1 (input = [fwd|bwd] of layer 0; inter-layer
    #      dropout is identity in eval mode) ----
    x_rows1 = [jnp.concatenate([f0[t], b0[t]], axis=-1) for t in range(T)]
    f1, b1, hfin1 = bilstm_layer(x_rows1, wih1_ref, whh1_ref, b1_ref)

    # sent_contents: batch-first output + a time-major VMEM copy for the gather.
    for t in range(T):
        row = jnp.concatenate([f1[t], b1[t]], axis=-1)     # (B, 2H)
        sent_tm[t] = row
        sent_ref[:, t, :] = row

    # doc_contents: h_n [l0_f, l0_b, l1_f, l1_b] -> cat over layers per
    # direction -> mean over directions  (matches view(2,2,B,H) logic).
    d_f = jnp.concatenate([hfin0[:, :H], hfin1[:, :H]], axis=-1)
    d_b = jnp.concatenate([hfin0[:, H:], hfin1[:, H:]], axis=-1)
    doc = 0.5 * (d_f + d_b)                                # (B, 2H)
    doc_ref[:, 0, :] = doc

    # theta_decoder: Linear -> (Dropout=id) -> ReLU -> Linear -> Tanh
    ht = jnp.maximum(
        jnp.dot(doc, wt1_ref[...], preferred_element_type=jnp.float32)
        + bt1_ref[...], 0.0)
    theta = jnp.tanh(
        jnp.dot(ht, wt2_ref[...], preferred_element_type=jnp.float32)
        + bt2_ref[...])
    theta_ref[:, 0, :] = theta

    # pretraining_output: in-kernel gather of the 3 selected sentence vectors
    # per (doc, sample) using SMEM indices, then the decoder MLP.
    rows = []
    for r in range(B * n_samples):
        b = r // n_samples                       # repeat_interleave over docs
        pieces = [doc[b:b + 1, :]]
        for j in range(n_sents):
            sid = idx_ref[r * n_sents + j]       # dynamic sentence id (SMEM)
            pieces.append(sent_tm[sid][b:b + 1, :])
        rows.append(jnp.concatenate(pieces, axis=-1))      # (1, 8H)
    dec_in = jnp.concatenate(rows, axis=0)                 # (B*n_samples, 8H)

    hd = jnp.maximum(
        jnp.dot(dec_in, wd1_ref[...], preferred_element_type=jnp.float32)
        + bd1_ref[...], 0.0)
    scores_ref[...] = jax.nn.sigmoid(
        jnp.dot(hd, wd2_ref[...], preferred_element_type=jnp.float32)
        + bd2_ref[...])
    # TODO(synk): training-mode dropout (stochastic masks) is not implemented;
    # eval-mode identity only.


def rl_summ_forward(fused, x, summ_idx):
    """Single fused pallas_call.

    x        : (B, T, 2H) float32, batch_first sentence embeddings.
    summ_idx : (B * N_SAMPLES * N_SENTS_PER_SUMM,) int32 flattened sentence ids.
    Returns (sent_contents, doc_contents, theta_hat, predicted_scores).
    """
    B, T, H2 = x.shape
    H = H2 // 2
    n_rows = B * N_SAMPLES
    kernel = functools.partial(_fused_forward_kernel, seq_len=T, batch=B,
                               hidden=H, n_samples=N_SAMPLES,
                               n_sents=N_SENTS_PER_SUMM)
    out_shape = (
        jax.ShapeDtypeStruct((B, T, H2), jnp.float32),   # sent_contents
        jax.ShapeDtypeStruct((B, 1, H2), jnp.float32),   # doc_contents
        jax.ShapeDtypeStruct((B, 1, H2), jnp.float32),   # theta_hat
        jax.ShapeDtypeStruct((n_rows, 3), jnp.float32),  # predicted_scores
    )
    return pl.pallas_call(
        kernel,
        out_shape=out_shape,
        in_specs=[_SMEM] + [_VMEM] * 15,
        out_specs=(_VMEM, _VMEM, _VMEM, _VMEM),
        scratch_shapes=[pltpu.VMEM((T, B, H2), jnp.float32)],  # time-major sents
    )(summ_idx, x,
      fused["wih0"], fused["whh0"], fused["b0"],
      fused["wih1"], fused["whh1"], fused["b1"],
      fused["wt1"], fused["bt1"], fused["wt2"], fused["bt2"],
      fused["wd1"], fused["bd1"], fused["wd2"], fused["bd2"])


# ----------------------------------------------------------------------------
# Parameters: raw (PyTorch orientation) init + one-time fused-layout prep
# ----------------------------------------------------------------------------
def _uniform(key, shape, bound):
    return jax.random.uniform(key, shape, jnp.float32, -bound, bound)


def init_raw_params(key, hidden_dim, decoder_dim):
    """PyTorch-layout parameters: weight_ih (4H, In), weight_hh (4H, H), Linear (out, in)."""
    H = hidden_dim
    kb = 1.0 / (H ** 0.5)
    keys = iter(jax.random.split(key, 40))
    lstm = []
    for _layer in range(2):
        layer_p = {}
        for direction in ("fwd", "bwd"):
            w_ih = _uniform(next(keys), (4 * H, 2 * H), kb)
            w_hh = _uniform(next(keys), (4 * H, H), kb)
            b_ih = _uniform(next(keys), (4 * H,), kb)
            b_hh = _uniform(next(keys), (4 * H,), kb)
            layer_p[direction] = (w_ih, w_hh, b_ih, b_hh)
        lstm.append(layer_p)
    kt = 1.0 / ((2 * H) ** 0.5)
    theta = (_uniform(next(keys), (2 * H, 2 * H), kt),
             _uniform(next(keys), (2 * H,), kt),
             _uniform(next(keys), (2 * H, 2 * H), kt),
             _uniform(next(keys), (2 * H,), kt))
    kd1 = 1.0 / ((8 * H) ** 0.5)
    kd2 = 1.0 / (decoder_dim ** 0.5)
    decoder = (_uniform(next(keys), (decoder_dim, 8 * H), kd1),
               _uniform(next(keys), (decoder_dim,), kd1),
               _uniform(next(keys), (3, decoder_dim), kd2),
               _uniform(next(keys), (3,), kd2))
    return {"lstm": lstm, "theta": theta, "decoder": decoder}


def _fuse_bilstm_layer(fwd, bwd, H):
    """Build fused (x,x_rev)->(both directions) gate weights.

    Columns: gate-major [i|f|g|o], each 2H block = [fwd(H) | bwd(H)].
    wih_big rows: [x(t) (In) ; x(T-1-t) (In)];  whh_big rows: [h_fwd(H) ; h_bwd(H)].
    """
    w_ih_f, w_hh_f, b_ih_f, b_hh_f = fwd
    w_ih_b, w_hh_b, b_ih_b, b_hh_b = bwd
    in_dim = w_ih_f.shape[1]
    z_in = jnp.zeros((in_dim, H), jnp.float32)
    z_h = jnp.zeros((H, H), jnp.float32)
    wih_cols, whh_cols, b_parts = [], [], []
    for g in range(4):                                  # PyTorch order i, f, g, o
        wf = w_ih_f[g * H:(g + 1) * H, :].T             # (In, H)
        wb = w_ih_b[g * H:(g + 1) * H, :].T
        wih_cols.append(jnp.concatenate([wf, z_in], axis=0))
        wih_cols.append(jnp.concatenate([z_in, wb], axis=0))
        uf = w_hh_f[g * H:(g + 1) * H, :].T             # (H, H)
        ub = w_hh_b[g * H:(g + 1) * H, :].T
        whh_cols.append(jnp.concatenate([uf, z_h], axis=0))
        whh_cols.append(jnp.concatenate([z_h, ub], axis=0))
        b_parts.append((b_ih_f + b_hh_f)[g * H:(g + 1) * H])
        b_parts.append((b_ih_b + b_hh_b)[g * H:(g + 1) * H])
    wih_big = jnp.concatenate(wih_cols, axis=1)         # (2*In, 8H)
    whh_big = jnp.concatenate(whh_cols, axis=1)         # (2H,  8H)
    b_big = jnp.concatenate(b_parts, axis=0)[None, :]   # (1,   8H)
    return wih_big, whh_big, b_big


def prepare_fused_params(raw, hidden_dim):
    H = hidden_dim
    fused = {}
    for layer in range(2):
        wih, whh, b = _fuse_bilstm_layer(raw["lstm"][layer]["fwd"],
                                         raw["lstm"][layer]["bwd"], H)
        fused[f"wih{layer}"], fused[f"whh{layer}"], fused[f"b{layer}"] = wih, whh, b
    wt1, bt1, wt2, bt2 = raw["theta"]
    fused.update(wt1=wt1.T, bt1=bt1[None, :], wt2=wt2.T, bt2=bt2[None, :])
    wd1, bd1, wd2, bd2 = raw["decoder"]
    fused.update(wd1=wd1.T, bd1=bd1[None, :], wd2=wd2.T, bd2=bd2[None, :])
    return fused


# ----------------------------------------------------------------------------
# Plain-JAX reference (mirrors PyTorch eval semantics) for validation
# ----------------------------------------------------------------------------
def _ref_lstm_dir(x_seq, params, H, reverse):
    w_ih, w_hh, b_ih, b_hh = params
    hi = lax.Precision.HIGHEST
    B = x_seq[0].shape[0]
    h = jnp.zeros((B, H), jnp.float32)
    c = jnp.zeros((B, H), jnp.float32)
    T = len(x_seq)
    order = range(T - 1, -1, -1) if reverse else range(T)
    outs = [None] * T
    for t in order:
        gates = (jnp.dot(x_seq[t], w_ih.T, precision=hi)
                 + jnp.dot(h, w_hh.T, precision=hi) + b_ih + b_hh)
        i = jax.nn.sigmoid(gates[:, 0:H])
        f = jax.nn.sigmoid(gates[:, H:2 * H])
        g = jnp.tanh(gates[:, 2 * H:3 * H])
        o = jax.nn.sigmoid(gates[:, 3 * H:4 * H])
        c = f * c + i * g
        h = o * jnp.tanh(c)
        outs[t] = h
    return outs, h


def reference_forward(raw, x, sampled_summs, H):
    hi = lax.Precision.HIGHEST
    B, T, _ = x.shape
    layer_in = [x[:, t, :] for t in range(T)]
    finals = []
    for layer in range(2):
        of, hf = _ref_lstm_dir(layer_in, raw["lstm"][layer]["fwd"], H, False)
        ob, hb = _ref_lstm_dir(layer_in, raw["lstm"][layer]["bwd"], H, True)
        layer_in = [jnp.concatenate([of[t], ob[t]], axis=-1) for t in range(T)]
        finals.append((hf, hb))
    sent = jnp.stack(layer_in, axis=1)                       # (B, T, 2H)
    d_f = jnp.concatenate([finals[0][0], finals[1][0]], axis=-1)
    d_b = jnp.concatenate([finals[0][1], finals[1][1]], axis=-1)
    doc = 0.5 * (d_f + d_b)
    wt1, bt1, wt2, bt2 = raw["theta"]
    ht = jnp.maximum(jnp.dot(doc, wt1.T, precision=hi) + bt1, 0.0)
    theta = jnp.tanh(jnp.dot(ht, wt2.T, precision=hi) + bt2)
    wd1, bd1, wd2, bd2 = raw["decoder"]
    rows = []
    for b, samples in enumerate(sampled_summs):
        for summ in samples:
            sents = [sent[b, sid] for sid in summ]
            rows.append(jnp.concatenate([doc[b]] + sents, axis=-1))
    dec_in = jnp.stack(rows, axis=0)
    hd = jnp.maximum(jnp.dot(dec_in, wd1.T, precision=hi) + bd1, 0.0)
    scores = jax.nn.sigmoid(jnp.dot(hd, wd2.T, precision=hi) + bd2)
    return sent, doc[:, None, :], theta[:, None, :], scores


# ----------------------------------------------------------------------------
if __name__ == "__main__":
    key = jax.random.PRNGKey(0)
    k_param, k_x = jax.random.split(key)

    raw_params = init_raw_params(k_param, HIDDEN_DIM, DECODER_DIM)
    fused_params = prepare_fused_params(raw_params, HIDDEN_DIM)

    # Input: (batch, seq, 2*hidden_dim) sentence embeddings (batch_first).
    x = jax.random.normal(k_x, (BATCH, SEQ, 2 * HIDDEN_DIM), jnp.float32)

    # Deterministic sampled summaries: 2 samples/doc, 3 sentences each.
    sampled_summs = [[[0, 1, 2], [3, 4, 5]],
                     [[1, 3, 5], [0, 2, 7]]]
    summ_idx = jnp.asarray(
        [sid for doc_s in sampled_summs for summ in doc_s for sid in summ],
        dtype=jnp.int32)

    fwd_fn = jax.jit(rl_summ_forward)
    sent_c, doc_c, theta_hat, scores = fwd_fn(fused_params, x, summ_idx)
    jax.block_until_ready((sent_c, doc_c, theta_hat, scores))

    assert sent_c.shape == (BATCH, SEQ, 2 * HIDDEN_DIM)
    assert doc_c.shape == (BATCH, 1, 2 * HIDDEN_DIM)
    assert theta_hat.shape == (BATCH, 1, 2 * HIDDEN_DIM)
    assert scores.shape == (BATCH * N_SAMPLES, 3)

    # Validate against the plain-JAX reference of the PyTorch module (eval mode).
    refs = reference_forward(raw_params, x, sampled_summs, HIDDEN_DIM)
    for got, want in zip((sent_c, doc_c, theta_hat, scores), refs):
        err = float(jnp.max(jnp.abs(got - want)))
        assert jnp.allclose(got, want, atol=2e-2, rtol=2e-2), err

    print("KERNEL_OK")
</pallas_src>

<mosaic_0001>
module attributes {stable_mosaic.version = 11 : i64} {
  func.func @_fused_forward_kernel(%arg0: memref<12xi32, #tpu.memory_space<smem>>, %arg1: memref<2x8x64xf32, #tpu.memory_space<vmem>>, %arg2: memref<128x256xf32, #tpu.memory_space<vmem>>, %arg3: memref<64x256xf32, #tpu.memory_space<vmem>>, %arg4: memref<1x256xf32, #tpu.memory_space<vmem>>, %arg5: memref<128x256xf32, #tpu.memory_space<vmem>>, %arg6: memref<64x256xf32, #tpu.memory_space<vmem>>, %arg7: memref<1x256xf32, #tpu.memory_space<vmem>>, %arg8: memref<64x64xf32, #tpu.memory_space<vmem>>, %arg9: memref<1x64xf32, #tpu.memory_space<vmem>>, %arg10: memref<64x64xf32, #tpu.memory_space<vmem>>, %arg11: memref<1x64xf32, #tpu.memory_space<vmem>>, %arg12: memref<256x64xf32, #tpu.memory_space<vmem>>, %arg13: memref<1x64xf32, #tpu.memory_space<vmem>>, %arg14: memref<64x3xf32, #tpu.memory_space<vmem>>, %arg15: memref<1x3xf32, #tpu.memory_space<vmem>>, %arg16: memref<2x8x64xf32, #tpu.memory_space<vmem>>, %arg17: memref<2x1x64xf32, #tpu.memory_space<vmem>>, %arg18: memref<2x1x64xf32, #tpu.memory_space<vmem>>, %arg19: memref<4x3xf32, #tpu.memory_space<vmem>>, %arg20: memref<8x2x64xf32, #tpu.memory_space<vmem>>) attributes {dimension_semantics = [], scalar_prefetch = 0 : i64, scratch_operands = 1 : i64, tpu.core_type = #tpu.core_type<tc>} {
    %c0 = arith.constant 0 : index
    %c0_0 = arith.constant 0 : index
    %c0_1 = arith.constant 0 : index
    %0 = vector.load %arg1[%c0, %c0_0, %c0_1] : memref<2x8x64xf32, #tpu.memory_space<vmem>>, vector<2x1x64xf32>
    %1 = vector.shape_cast %0 : vector<2x1x64xf32> to vector<2x64xf32>
    %c0_2 = arith.constant 0 : index
    %c1 = arith.constant 1 : index
    %c0_3 = arith.constant 0 : index
    %2 = vector.load %arg1[%c0_2, %c1, %c0_3] : memref<2x8x64xf32, #tpu.memory_space<vmem>>, vector<2x1x64xf32>
    %3 = vector.shape_cast %2 : vector<2x1x64xf32> to vector<2x64xf32>
    %c0_4 = arith.constant 0 : index
    %c2 = arith.constant 2 : index
    %c0_5 = arith.constant 0 : index
    %4 = vector.load %arg1[%c0_4, %c2, %c0_5] : memref<2x8x64xf32, #tpu.memory_space<vmem>>, vector<2x1x64xf32>
    %5 = vector.shape_cast %4 : vector<2x1x64xf32> to vector<2x64xf32>
    %c0_6 = arith.constant 0 : index
    %c3 = arith.constant 3 : index
    %c0_7 = arith.constant 0 : index
    %6 = vector.load %arg1[%c0_6, %c3, %c0_7] : memref<2x8x64xf32, #tpu.memory_space<vmem>>, vector<2x1x64xf32>
    %7 = vector.shape_cast %6 : vector<2x1x64xf32> to vector<2x64xf32>
    %c0_8 = arith.constant 0 : index
    %c4 = arith.constant 4 : index
    %c0_9 = arith.constant 0 : index
    %8 = vector.load %arg1[%c0_8, %c4, %c0_9] : memref<2x8x64xf32, #tpu.memory_space<vmem>>, vector<2x1x64xf32>
    %9 = vector.shape_cast %8 : vector<2x1x64xf32> to vector<2x64xf32>
    %c0_10 = arith.constant 0 : index
    %c5 = arith.constant 5 : index
    %c0_11 = arith.constant 0 : index
    %10 = vector.load %arg1[%c0_10, %c5, %c0_11] : memref<2x8x64xf32, #tpu.memory_space<vmem>>, vector<2x1x64xf32>
    %11 = vector.shape_cast %10 : vector<2x1x64xf32> to vector<2x64xf32>
    %c0_12 = arith.constant 0 : index
    %c6 = arith.constant 6 : index
    %c0_13 = arith.constant 0 : index
    %12 = vector.load %arg1[%c0_12, %c6, %c0_13] : memref<2x8x64xf32, #tpu.memory_space<vmem>>, vector<2x1x64xf32>
    %13 = vector.shape_cast %12 : vector<2x1x64xf32> to vector<2x64xf32>
    %c0_14 = arith.constant 0 : index
    %c7 = arith.constant 7 : index
    %c0_15 = arith.constant 0 : index
    %14 = vector.load %arg1[%c0_14, %c7, %c0_15] : memref<2x8x64xf32, #tpu.memory_space<vmem>>, vector<2x1x64xf32>
    %15 = vector.shape_cast %14 : vector<2x1x64xf32> to vector<2x64xf32>
    %16 = tpu.concatenate %1, %15 in 1 : vector<2x64xf32>, vector<2x64xf32> -> vector<2x128xf32>
    %17 = tpu.concatenate %3, %13 in 1 : vector<2x64xf32>, vector<2x64xf32> -> vector<2x128xf32>
    %18 = tpu.concatenate %5, %11 in 1 : vector<2x64xf32>, vector<2x64xf32> -> vector<2x128xf32>
    %19 = tpu.concatenate %7, %9 in 1 : vector<2x64xf32>, vector<2x64xf32> -> vector<2x128xf32>
    %20 = tpu.concatenate %9, %7 in 1 : vector<2x64xf32>, vector<2x64xf32> -> vector<2x128xf32>
    %21 = tpu.concatenate %11, %5 in 1 : vector<2x64xf32>, vector<2x64xf32> -> vector<2x128xf32>
    %22 = tpu.concatenate %13, %3 in 1 : vector<2x64xf32>, vector<2x64xf32> -> vector<2x128xf32>
    %23 = tpu.concatenate %15, %1 in 1 : vector<2x64xf32>, vector<2x64xf32> -> vector<2x128xf32>
    %24 = tpu.concatenate %16, %17, %18, %19, %20, %21, %22, %23 in 0 : vector<2x128xf32>, vector<2x128xf32>, vector<2x128xf32>, vector<2x128xf32>, vector<2x128xf32>, vector<2x128xf32>, vector<2x128xf32>, vector<2x128xf32> -> vector<16x128xf32>
    %c0_16 = arith.constant 0 : index
    %c0_17 = arith.constant 0 : index
    %25 = vector.load %arg2[%c0_16, %c0_17] : memref<128x256xf32, #tpu.memory_space<vmem>>, vector<128x256xf32>
    %cst = arith.constant dense<0.000000e+00> : vector<16x256xf32>
    %26 = tpu.matmul %24, %25, %cst {dimension_numbers = #tpu.dot_dimension_numbers<[1], [0], [0], [1], [0, 0, 1, 1], [], []>} : vector<16x128xf32>, vector<128x256xf32>, vector<16x256xf32> -> vector<16x256xf32>
    %c0_18 = arith.constant 0 : index
    %c0_19 = arith.constant 0 : index
    %27 = vector.load %arg4[%c0_18, %c0_19] : memref<1x256xf32, #tpu.memory_space<vmem>>, vector<1x256xf32>
    %28 = vector.broadcast %27 : vector<1x256xf32> to vector<16x256xf32>
    %29 = arith.addf %26, %28 : vector<16x256xf32>
    %c0_20 = arith.constant 0 : index
    %c0_21 = arith.constant 0 : index
    %30 = vector.load %arg3[%c0_20, %c0_21] : memref<64x256xf32, #tpu.memory_space<vmem>>, vector<64x256xf32>
    %cst_22 = arith.constant 0.000000e+00 : f32
    %31 = vector.broadcast %cst_22 : f32 to vector<2x64xf32>
    %cst_23 = arith.constant 0.000000e+00 : f32
    %32 = vector.broadcast %cst_23 : f32 to vector<2x64xf32>
    %33 = vector.extract_strided_slice %29 {offsets = [0, 0], sizes = [2, 256], strides = [1, 1]} : vector<16x256xf32> to vector<2x256xf32>
    %cst_24 = arith.constant dense<0.000000e+00> : vector<2x256xf32>
    %34 = tpu.matmul %31, %30, %cst_24 {dimension_numbers = #tpu.dot_dimension_numbers<[1], [0], [0], [1], [0, 0, 1, 1], [], []>} : vector<2x64xf32>, vector<64x256xf32>, vector<2x256xf32> -> vector<2x256xf32>
    %35 = arith.addf %33, %34 : vector<2x256xf32>
    %36 = arith.negf %35 : vector<2x256xf32>
    %37 = math.exp %36 : vector<2x256xf32>
    %cst_25 = arith.constant 1.000000e+00 : f32
    %38 = vector.broadcast %cst_25 : f32 to vector<2x256xf32>
    %39 = arith.addf %38, %37 : vector<2x256xf32>
    %40 = arith.divf %38, %39 : vector<2x256xf32>
    %41 = math.tanh %35 : vector<2x256xf32>
    %42 = vector.extract_strided_slice %40 {offsets = [0, 0], sizes = [2, 64], strides = [1, 1]} : vector<2x256xf32> to vector<2x64xf32>
    %43 = vector.extract_strided_slice %40 {offsets = [0, 64], sizes = [2, 64], strides = [1, 1]} : vector<2x256xf32> to vector<2x64xf32>
    %44 = vector.extract_strided_slice %41 {offsets = [0, 128], sizes = [2, 64], strides = [1, 1]} : vector<2x256xf32> to vector<2x64xf32>
    %45 = vector.extract_strided_slice %40 {offsets = [0, 192], sizes = [2, 64], strides = [1, 1]} : vector<2x256xf32> to vector<2x64xf32>
    %46 = arith.mulf %43, %32 : vector<2x64xf32>
    %47 = arith.mulf %42, %44 : vector<2x64xf32>
    %48 = arith.addf %46, %47 : vector<2x64xf32>
    %49 = math.tanh %48 : vector<2x64xf32>
    %50 = arith.mulf %45, %49 : vector<2x64xf32>
    %51 = vector.extract_strided_slice %50 {offsets = [0, 0], sizes = [2, 32], strides = [1, 1]} : vector<2x64xf32> to vector<2x32xf32>
    %52 = vector.extract_strided_slice %50 {offsets = [0, 32], sizes = [2, 32], strides = [1, 1]} : vector<2x64xf32> to vector<2x32xf32>
    %53 = vector.extract_strided_slice %29 {offsets = [2, 0], sizes = [2, 256], strides = [1, 1]} : vector<16x256xf32> to vector<2x256xf32>
    %cst_26 = arith.constant dense<0.000000e+00> : vector<2x256xf32>
    %54 = tpu.matmul %50, %30, %cst_26 {dimension_numbers = #tpu.dot_dimension_numbers<[1], [0], [0], [1], [0, 0, 1, 1], [], []>} : vector<2x64xf32>, vector<64x256xf32>, vector<2x256xf32> -> vector<2x256xf32>
    %55 = arith.addf %53, %54 : vector<2x256xf32>
    %56 = arith.negf %55 : vector<2x256xf32>
    %57 = math.exp %56 : vector<2x256xf32>
    %cst_27 = arith.constant 1.000000e+00 : f32
    %58 = vector.broadcast %cst_27 : f32 to vector<2x256xf32>
    %59 = arith.addf %58, %57 : vector<2x256xf32>
    %60 = arith.divf %58, %59 : vector<2x256xf32>
    %61 = math.tanh %55 : vector<2x256xf32>
    %62 = vector.extract_strided_slice %60 {offsets = [0, 0], sizes = [2, 64], strides = [1, 1]} : vector<2x256xf32> to vector<2x64xf32>
    %63 = vector.extract_strided_slice %60 {offsets = [0, 64], sizes = [2, 64], strides = [1, 1]} : vector<2x256xf32> to vector<2x64xf32>
    %64 = vector.extract_strided_slice %61 {offsets = [0, 128], sizes = [2, 64], strides = [1, 1]} : vector<2x256xf32> to vector<2x64xf32>
    %65 = vector.extract_strided_slice %60 {offsets = [0, 192], sizes = [2, 64], strides = [1, 1]} : vector<2x256xf32> to vector<2x64xf32>
    %66 = arith.mulf %63, %48 : vector<2x64xf32>
    %67 = arith.mulf %62, %64 : vector<2x64xf32>
    %68 = arith.addf %66, %67 : vector<2x64xf32>
    %69 = math.tanh %68 : vector<2x64xf32>
    %70 = arith.mulf %65, %69 : vector<2x64xf32>
    %71 = vector.extract_strided_slice %70 {offsets = [0, 0], sizes = [2, 32], strides = [1, 1]} : vector<2x64xf32> to vector<2x32xf32>
    %72 = vector.extract_strided_slice %70 {offsets = [0, 32], sizes = [2, 32], strides = [1, 1]} : vector<2x64xf32> to vector<2x32xf32>
    %73 = vector.extract_strided_slice %29 {offsets = [4, 0], sizes = [2, 256], strides = [1, 1]} : vector<16x256xf32> to vector<2x256xf32>
    %cst_28 = arith.constant dense<0.000000e+00> : vector<2x256xf32>
    %74 = tpu.matmul %70, %30, %cst_28 {dimension_numbers = #tpu.dot_dimension_numbers<[1], [0], [0], [1], [0, 0, 1, 1], [], []>} : vector<2x64xf32>, vector<64x256xf32>, vector<2x256xf32> -> vector<2x256xf32>
    %75 = arith.addf %73, %74 : vector<2x256xf32>
    %76 = arith.negf %75 : vector<2x256xf32>
    %77 = math.exp %76 : vector<2x256xf32>
    %cst_29 = arith.constant 1.000000e+00 : f32
    %78 = vector.broadcast %cst_29 : f32 to vector<2x256xf32>
    %79 = arith.addf %78, %77 : vector<2x256xf32>
    %80 = arith.divf %78, %79 : vector<2x256xf32>
    %81 = math.tanh %75 : vector<2x256xf32>
    %82 = vector.extract_strided_slice %80 {offsets = [0, 0], sizes = [2, 64], strides = [1, 1]} : vector<2x256xf32> to vector<2x64xf32>
    %83 = vector.extract_strided_slice %80 {offsets = [0, 64], sizes = [2, 64], strides = [1, 1]} : vector<2x256xf32> to vector<2x64xf32>
    %84 = vector.extract_strided_slice %81 {offsets = [0, 128], sizes = [2, 64], strides = [1, 1]} : vector<2x256xf32> to vector<2x64xf32>
    %85 = vector.extract_strided_slice %80 {offsets = [0, 192], sizes = [2, 64], strides = [1, 1]} : vector<2x256xf32> to vector<2x64xf32>
    %86 = arith.mulf %83, %68 : vector<2x64xf32>
    %87 = arith.mulf %82, %84 : vector<2x64xf32>
    %88 = arith.addf %86, %87 : vector<2x64xf32>
    %89 = math.tanh %88 : vector<2x64xf32>
    %90 = arith.mulf %85, %89 : vector<2x64xf32>
    %91 = vector.extract_strided_slice %90 {offsets = [0, 0], sizes = [2, 32], strides = [1, 1]} : vector<2x64xf32> to vector<2x32xf32>
    %92 = vector.extract_strided_slice %90 {offsets = [0, 32], sizes = [2, 32], strides = [1, 1]} : vector<2x64xf32> to vector<2x32xf32>
    %93 = vector.extract_strided_slice %29 {offsets = [6, 0], sizes = [2, 256], strides = [1, 1]} : vector<16x256xf32> to vector<2x256xf32>
    %cst_30 = arith.constant dense<0.000000e+00> : vector<2x256xf32>
    %94 = tpu.matmul %90, %30, %cst_30 {dimension_numbers = #tpu.dot_dimension_numbers<[1], [0], [0], [1], [0, 0, 1, 1], [], []>} : vector<2x64xf32>, vector<64x256xf32>, vector<2x256xf32> -> vector<2x256xf32>
    %95 = arith.addf %93, %94 : vector<2x256xf32>
    %96 = arith.negf %95 : vector<2x256xf32>
    %97 = math.exp %96 : vector<2x256xf32>
    %cst_31 = arith.constant 1.000000e+00 : f32
    %98 = vector.broadcast %cst_31 : f32 to vector<2x256xf32>
    %99 = arith.addf %98, %97 : vector<2x256xf32>
    %100 = arith.divf %98, %99 : vector<2x256xf32>
    %101 = math.tanh %95 : vector<2x256xf32>
    %102 = vector.extract_strided_slice %100 {offsets = [0, 0], sizes = [2, 64], strides = [1, 1]} : vector<2x256xf32> to vector<2x64xf32>
    %103 = vector.extract_strided_slice %100 {offsets = [0, 64], sizes = [2, 64], strides = [1, 1]} : vector<2x256xf32> to vector<2x64xf32>
    %104 = vector.extract_strided_slice %101 {offsets = [0, 128], sizes = [2, 64], strides = [1, 1]} : vector<2x256xf32> to vector<2x64xf32>
    %105 = vector.extract_strided_slice %100 {offsets = [0, 192], sizes = [2, 64], strides = [1, 1]} : vector<2x256xf32> to vector<2x64xf32>
    %106 = arith.mulf %103, %88 : vector<2x64xf32>
    %107 = arith.mulf %102, %104 : vector<2x64xf32>
    %108 = arith.addf %106, %107 : vector<2x64xf32>
    %109 = math.tanh %108 : vector<2x64xf32>
    %110 = arith.mulf %105, %109 : vector<2x64xf32>
    %111 = vector.extract_strided_slice %110 {offsets = [0, 0], sizes = [2, 32], strides = [1, 1]} : vector<2x64xf32> to vector<2x32xf32>
    %112 = vector.extract_strided_slice %110 {offsets = [0, 32], sizes = [2, 32], strides = [1, 1]} : vector<2x64xf32> to vector<2x32xf32>
    %113 = vector.extract_strided_slice %29 {offsets = [8, 0], sizes = [2, 256], strides = [1, 1]} : vector<16x256xf32> to vector<2x256xf32>
    %cst_32 = arith.constant dense<0.000000e+00> : vector<2x256xf32>
    %114 = tpu.matmul %110, %30, %cst_32 {dimension_numbers = #tpu.dot_dimension_numbers<[1], [0], [0], [1], [0, 0, 1, 1], [], []>} : vector<2x64xf32>, vector<64x256xf32>, vector<2x256xf32> -> vector<2x256xf32>
    %115 = arith.addf %113, %114 : vector<2x256xf32>
    %116 = arith.negf %115 : vector<2x256xf32>
    %117 = math.exp %116 : vector<2x256xf32>
    %cst_33 = arith.constant 1.000000e+00 : f32
    %118 = vector.broadcast %cst_33 : f32 to vector<2x256xf32>
    %119 = arith.addf %118, %117 : vector<2x256xf32>
    %120 = arith.divf %118, %119 : vector<2x256xf32>
    %121 = math.tanh %115 : vector<2x256xf32>
    %122 = vector.extract_strided_slice %120 {offsets = [0, 0], sizes = [2, 64], strides = [1, 1]} : vector<2x256xf32> to vector<2x64xf32>
    %123 = vector.extract_strided_slice %120 {offsets = [0, 64], sizes = [2, 64], strides = [1, 1]} : vector<2x256xf32> to vector<2x64xf32>
    %124 = vector.extract_strided_slice %121 {offsets = [0, 128], sizes = [2, 64], strides = [1, 1]} : vector<2x256xf32> to vector<2x64xf32>
    %125 = vector.extract_strided_slice %120 {offsets = [0, 192], sizes = [2, 64], strides = [1, 1]} : vector<2x256xf32> to vector<2x64xf32>
    %126 = arith.mulf %123, %108 : vector<2x64xf32>
    %127 = arith.mulf %122, %124 : vector<2x64xf32>
    %128 = arith.addf %126, %127 : vector<2x64xf32>
    %129 = math.tanh %128 : vector<2x64xf32>
    %130 = arith.mulf %125, %129 : vector<2x64xf32>
    %131 = vector.extract_strided_slice %130 {offsets = [0, 0], sizes = [2, 32], strides = [1, 1]} : vector<2x64xf32> to vector<2x32xf32>
    %132 = vector.extract_strided_slice %130 {offsets = [0, 32], sizes = [2, 32], strides = [1, 1]} : vector<2x64xf32> to vector<2x32xf32>
    %133 = vector.extract_strided_slice %29 {offsets = [10, 0], sizes = [2, 256], strides = [1, 1]} : vector<16x256xf32> to vector<2x256xf32>
    %cst_34 = arith.constant dense<0.000000e+00> : vector<2x256xf32>
    %134 = tpu.matmul %130, %30, %cst_34 {dimension_numbers = #tpu.dot_dimension_numbers<[1], [0], [0], [1], [0, 0, 1, 1], [], []>} : vector<2x64xf32>, vector<64x256xf32>, vector<2x256xf32> -> vector<2x256xf32>
    %135 = arith.addf %133, %134 : vector<2x256xf32>
    %136 = arith.negf %135 : vector<2x256xf32>
    %137 = math.exp %136 : vector<2x256xf32>
    %cst_35 = arith.constant 1.000000e+00 : f32
    %138 = vector.broadcast %cst_35 : f32 to vector<2x256xf32>
    %139 = arith.addf %138, %137 : vector<2x256xf32>
    %140 = arith.divf %138, %139 : vector<2x256xf32>
    %141 = math.tanh %135 : vector<2x256xf32>
    %142 = vector.extract_strided_slice %140 {offsets = [0, 0], sizes = [2, 64], strides = [1, 1]} : vector<2x256xf32> to vector<2x64xf32>
    %143 = vector.extract_strided_slice %140 {offsets = [0, 64], sizes = [2, 64], strides = [1, 1]} : vector<2x256xf32> to vector<2x64xf32>
    %144 = vector.extract_strided_slice %141 {offsets = [0, 128], sizes = [2, 64], strides = [1, 1]} : vector<2x256xf32> to vector<2x64xf32>
    %145 = vector.extract_strided_slice %140 {offsets = [0, 192], sizes = [2, 64], strides = [1, 1]} : vector<2x256xf32> to vector<2x64xf32>
    %146 = arith.mulf %143, %128 : vector<2x64xf32>
    %147 = arith.mulf %142, %144 : vector<2x64xf32>
    %148 = arith.addf %146, %147 : vector<2x64xf32>
    %149 = math.tanh %148 : vector<2x64xf32>
    %150 = arith.mulf %145, %149 : vector<2x64xf32>
    %151 = vector.extract_strided_slice %150 {offsets = [0, 0], sizes = [2, 32], strides = [1, 1]} : vector<2x64xf32> to vector<2x32xf32>
    %152 = vector.extract_strided_slice %150 {offsets = [0, 32], sizes = [2, 32], strides = [1, 1]} : vector<2x64xf32> to vector<2x32xf32>
    %153 = vector.extract_strided_slice %29 {offsets = [12, 0], sizes = [2, 256], strides = [1, 1]} : vector<16x256xf32> to vector<2x256xf32>
    %cst_36 = arith.constant dense<0.000000e+00> : vector<2x256xf32>
    %154 = tpu.matmul %150, %30, %cst_36 {dimension_numbers = #tpu.dot_dimension_numbers<[1], [0], [0], [1], [0, 0, 1, 1], [], []>} : vector<2x64xf32>, vector<64x256xf32>, vector<2x256xf32> -> vector<2x256xf32>
    %155 = arith.addf %153, %154 : vector<2x256xf32>
    %156 = arith.negf %155 : vector<2x256xf32>
    %157 = math.exp %156 : vector<2x256xf32>
    %cst_37 = arith.constant 1.000000e+00 : f32
    %158 = vector.broadcast %cst_37 : f32 to vector<2x256xf32>
    %159 = arith.addf %158, %157 : vector<2x256xf32>
    %160 = arith.divf %158, %159 : vector<2x256xf32>
    %161 = math.tanh %155 : vector<2x256xf32>
    %162 = vector.extract_strided_slice %160 {offsets = [0, 0], sizes = [2, 64], strides = [1, 1]} : vector<2x256xf32> to vector<2x64xf32>
    %163 = vector.extract_strided_slice %160 {offsets = [0, 64], sizes = [2, 64], strides = [1, 1]} : vector<2x256xf32> to vector<2x64xf32>
    %164 = vector.extract_strided_slice %161 {offsets = [0, 128], sizes = [2, 64], strides = [1, 1]} : vector<2x256xf32> to vector<2x64xf32>
    %165 = vector.extract_strided_slice %160 {offsets = [0, 192], sizes = [2, 64], strides = [1, 1]} : vector<2x256xf32> to vector<2x64xf32>
    %166 = arith.mulf %163, %148 : vector<2x64xf32>
    %167 = arith.mulf %162, %164 : vector<2x64xf32>
    %168 = arith.addf %166, %167 : vector<2x64xf32>
    %169 = math.tanh %168 : vector<2x64xf32>
    %170 = arith.mulf %165, %169 : vector<2x64xf32>
    %171 = vector.extract_strided_slice %170 {offsets = [0, 0], sizes = [2, 32], strides = [1, 1]} : vector<2x64xf32> to vector<2x32xf32>
    %172 = vector.extract_strided_slice %170 {offsets = [0, 32], sizes = [2, 32], strides = [1, 1]} : vector<2x64xf32> to vector<2x32xf32>
    %173 = vector.extract_strided_slice %29 {offsets = [14, 0], sizes = [2, 256], strides = [1, 1]} : vector<16x256xf32> to vector<2x256xf32>
    %cst_38 = arith.constant dense<0.000000e+00> : vector<2x256xf32>
    %174 = tpu.matmul %170, %30, %cst_38 {dimension_numbers = #tpu.dot_dimension_numbers<[1], [0], [0], [1], [0, 0, 1, 1], [], []>} : vector<2x64xf32>, vector<64x256xf32>, vector<2x256xf32> -> vector<2x256xf32>
    %175 = arith.addf %173, %174 : vector<2x256xf32>
    %176 = arith.negf %175 : vector<2x256xf32>
    %177 = math.exp %176 : vector<2x256xf32>
    %cst_39 = arith.constant 1.000000e+00 : f32
    %178 = vector.broadcast %cst_39 : f32 to vector<2x256xf32>
    %179 = arith.addf %178, %177 : vector<2x256xf32>
    %180 = arith.divf %178, %179 : vector<2x256xf32>
    %181 = math.tanh %175 : vector<2x256xf32>
    %182 = vector.extract_strided_slice %180 {offsets = [0, 0], sizes = [2, 64], strides = [1, 1]} : vector<2x256xf32> to vector<2x64xf32>
    %183 = vector.extract_strided_slice %180 {offsets = [0, 64], sizes = [2, 64], strides = [1, 1]} : vector<2x256xf32> to vector<2x64xf32>
    %184 = vector.extract_strided_slice %181 {offsets = [0, 128], sizes = [2, 64], strides = [1, 1]} : vector<2x256xf32> to vector<2x64xf32>
    %185 = vector.extract_strided_slice %180 {offsets = [0, 192], sizes = [2, 64], strides = [1, 1]} : vector<2x256xf32> to vector<2x64xf32>
    %186 = arith.mulf %183, %168 : vector<2x64xf32>
    %187 = arith.mulf %182, %184 : vector<2x64xf32>
    %188 = arith.addf %186, %187 : vector<2x64xf32>
    %189 = math.tanh %188 : vector<2x64xf32>
    %190 = arith.mulf %185, %189 : vector<2x64xf32>
    %191 = vector.extract_strided_slice %190 {offsets = [0, 0], sizes = [2, 32], strides = [1, 1]} : vector<2x64xf32> to vector<2x32xf32>
    %192 = vector.extract_strided_slice %190 {offsets = [0, 32], sizes = [2, 32], strides = [1, 1]} : vector<2x64xf32> to vector<2x32xf32>
    %193 = tpu.concatenate %51, %192 in 1 : vector<2x32xf32>, vector<2x32xf32> -> vector<2x64xf32>
    %194 = tpu.concatenate %71, %172 in 1 : vector<2x32xf32>, vector<2x32xf32> -> vector<2x64xf32>
    %195 = tpu.concatenate %91, %152 in 1 : vector<2x32xf32>, vector<2x32xf32> -> vector<2x64xf32>
    %196 = tpu.concatenate %111, %132 in 1 : vector<2x32xf32>, vector<2x32xf32> -> vector<2x64xf32>
    %197 = tpu.concatenate %131, %112 in 1 : vector<2x32xf32>, vector<2x32xf32> -> vector<2x64xf32>
    %198 = tpu.concatenate %151, %92 in 1 : vector<2x32xf32>, vector<2x32xf32> -> vector<2x64xf32>
    %199 = tpu.concatenate %171, %72 in 1 : vector<2x32xf32>, vector<2x32xf32> -> vector<2x64xf32>
    %200 = tpu.concatenate %191, %52 in 1 : vector<2x32xf32>, vector<2x32xf32> -> vector<2x64xf32>
    %201 = tpu.concatenate %193, %200 in 1 : vector<2x64xf32>, vector<2x64xf32> -> vector<2x128xf32>
    %202 = tpu.concatenate %194, %199 in 1 : vector<2x64xf32>, vector<2x64xf32> -> vector<2x128xf32>
    %203 = tpu.concatenate %195, %198 in 1 : vector<2x64xf32>, vector<2x64xf32> -> vector<2x128xf32>
    %204 = tpu.concatenate %196, %197 in 1 : vector<2x64xf32>, vector<2x64xf32> -> vector<2x128xf32>
    %205 = tpu.concatenate %197, %196 in 1 : vector<2x64xf32>, vector<2x64xf32> -> vector<2x128xf32>
    %206 = tpu.concatenate %198, %195 in 1 : vector<2x64xf32>, vector<2x64xf32> -> vector<2x128xf32>
    %207 = tpu.concatenate %199, %194 in 1 : vector<2x64xf32>, vector<2x64xf32> -> vector<2x128xf32>
    %208 = tpu.concatenate %200, %193 in 1 : vector<2x64xf32>, vector<2x64xf32> -> vector<2x128xf32>
    %209 = tpu.concatenate %201, %202, %203, %204, %205, %206, %207, %208 in 0 : vector<2x128xf32>, vector<2x128xf32>, vector<2x128xf32>, vector<2x128xf32>, vector<2x128xf32>, vector<2x128xf32>, vector<2x128xf32>, vector<2x128xf32> -> vector<16x128xf32>
    %c0_40 = arith.constant 0 : index
    %c0_41 = arith.constant 0 : index
    %210 = vector.load %arg5[%c0_40, %c0_41] : memref<128x256xf32, #tpu.memory_space<vmem>>, vector<128x256xf32>
    %cst_42 = arith.constant dense<0.000000e+00> : vector<16x256xf32>
    %211 = tpu.matmul %209, %210, %cst_42 {dimension_numbers = #tpu.dot_dimension_numbers<[1], [0], [0], [1], [0, 0, 1, 1], [], []>} : vector<16x128xf32>, vector<128x256xf32>, vector<16x256xf32> -> vector<16x256xf32>
    %c0_43 = arith.constant 0 : index
    %c0_44 = arith.constant 0 : index
    %212 = vector.load %arg7[%c0_43, %c0_44] : memref<1x256xf32, #tpu.memory_space<vmem>>, vector<1x256xf32>
    %213 = vector.broadcast %212 : vector<1x256xf32> to vector<16x256xf32>
    %214 = arith.addf %211, %213 : vector<16x256xf32>
    %c0_45 = arith.constant 0 : index
    %c0_46 = arith.constant 0 : index
    %215 = vector.load %arg6[%c0_45, %c0_46] : memref<64x256xf32, #tpu.memory_space<vmem>>, vector<64x256xf32>
    %cst_47 = arith.constant 0.000000e+00 : f32
    %216 = vector.broadcast %cst_47 : f32 to vector<2x64xf32>
    %cst_48 = arith.constant 0.000000e+00 : f32
    %217 = vector.broadcast %cst_48 : f32 to vector<2x64xf32>
    %218 = vector.extract_strided_slice %214 {offsets = [0, 0], sizes = [2, 256], strides = [1, 1]} : vector<16x256xf32> to vector<2x256xf32>
    %cst_49 = arith.constant dense<0.000000e+00> : vector<2x256xf32>
    %219 = tpu.matmul %216, %215, %cst_49 {dimension_numbers = #tpu.dot_dimension_numbers<[1], [0], [0], [1], [0, 0, 1, 1], [], []>} : vector<2x64xf32>, vector<64x256xf32>, vector<2x256xf32> -> vector<2x256xf32>
    %220 = arith.addf %218, %219 : vector<2x256xf32>
    %221 = arith.negf %220 : vector<2x256xf32>
    %222 = math.exp %221 : vector<2x256xf32>
    %cst_50 = arith.constant 1.000000e+00 : f32
    %223 = vector.broadcast %cst_50 : f32 to vector<2x256xf32>
    %224 = arith.addf %223, %222 : vector<2x256xf32>
    %225 = arith.divf %223, %224 : vector<2x256xf32>
    %226 = math.tanh %220 : vector<2x256xf32>
    %227 = vector.extract_strided_slice %225 {offsets = [0, 0], sizes = [2, 64], strides = [1, 1]} : vector<2x256xf32> to vector<2x64xf32>
    %228 = vector.extract_strided_slice %225 {offsets = [0, 64], sizes = [2, 64], strides = [1, 1]} : vector<2x256xf32> to vector<2x64xf32>
    %229 = vector.extract_strided_slice %226 {offsets = [0, 128], sizes = [2, 64], strides = [1, 1]} : vector<2x256xf32> to vector<2x64xf32>
    %230 = vector.extract_strided_slice %225 {offsets = [0, 192], sizes = [2, 64], strides = [1, 1]} : vector<2x256xf32> to vector<2x64xf32>
    %231 = arith.mulf %228, %217 : vector<2x64xf32>
    %232 = arith.mulf %227, %229 : vector<2x64xf32>
    %233 = arith.addf %231, %232 : vector<2x64xf32>
    %234 = math.tanh %233 : vector<2x64xf32>
    %235 = arith.mulf %230, %234 : vector<2x64xf32>
    %236 = vector.extract_strided_slice %235 {offsets = [0, 0], sizes = [2, 32], strides = [1, 1]} : vector<2x64xf32> to vector<2x32xf32>
    %237 = vector.extract_strided_slice %235 {offsets = [0, 32], sizes = [2, 32], strides = [1, 1]} : vector<2x64xf32> to vector<2x32xf32>
    %238 = vector.extract_strided_slice %214 {offsets = [2, 0], sizes = [2, 256], strides = [1, 1]} : vector<16x256xf32> to vector<2x256xf32>
    %cst_51 = arith.constant dense<0.000000e+00> : vector<2x256xf32>
    %239 = tpu.matmul %235, %215, %cst_51 {dimension_numbers = #tpu.dot_dimension_numbers<[1], [0], [0], [1], [0, 0, 1, 1], [], []>} : vector<2x64xf32>, vector<64x256xf32>, vector<2x256xf32> -> vector<2x256xf32>
    %240 = arith.addf %238, %239 : vector<2x256xf32>
    %241 = arith.negf %240 : vector<2x256xf32>
    %242 = math.exp %241 : vector<2x256xf32>
    %cst_52 = arith.constant 1.000000e+00 : f32
    %243 = vector.broadcast %cst_52 : f32 to vector<2x256xf32>
    %244 = arith.addf %243, %242 : vector<2x256xf32>
    %245 = arith.divf %243, %244 : vector<2x256xf32>
    %246 = math.tanh %240 : vector<2x256xf32>
    %247 = vector.extract_strided_slice %245 {offsets = [0, 0], sizes = [2, 64], strides = [1, 1]} : vector<2x256xf32> to vector<2x64xf32>
    %248 = vector.extract_strided_slice %245 {offsets = [0, 64], sizes = [2, 64], strides = [1, 1]} : vector<2x256xf32> to vector<2x64xf32>
    %249 = vector.extract_strided_slice %246 {offsets = [0, 128], sizes = [2, 64], strides = [1, 1]} : vector<2x256xf32> to vector<2x64xf32>
    %250 = vector.extract_strided_slice %245 {offsets = [0, 192], sizes = [2, 64], strides = [1, 1]} : vector<2x256xf32> to vector<2x64xf32>
    %251 = arith.mulf %248, %233 : vector<2x64xf32>
    %252 = arith.mulf %247, %249 : vector<2x64xf32>
    %253 = arith.addf %251, %252 : vector<2x64xf32>
    %254 = math.tanh %253 : vector<2x64xf32>
    %255 = arith.mulf %250, %254 : vector<2x64xf32>
    %256 = vector.extract_strided_slice %255 {offsets = [0, 0], sizes = [2, 32], strides = [1, 1]} : vector<2x64xf32> to vector<2x32xf32>
    %257 = vector.extract_strided_slice %255 {offsets = [0, 32], sizes = [2, 32], strides = [1, 1]} : vector<2x64xf32> to vector<2x32xf32>
    %258 = vector.extract_strided_slice %214 {offsets = [4, 0], sizes = [2, 256], strides = [1, 1]} : vector<16x256xf32> to vector<2x256xf32>
    %cst_53 = arith.constant dense<0.000000e+00> : vector<2x256xf32>
    %259 = tpu.matmul %255, %215, %cst_53 {dimension_numbers = #tpu.dot_dimension_numbers<[1], [0], [0], [1], [0, 0, 1, 1], [], []>} : vector<2x64xf32>, vector<64x256xf32>, vector<2x256xf32> -> vector<2x256xf32>
    %260 = arith.addf %258, %259 : vector<2x256xf32>
    %261 = arith.negf %260 : vector<2x256xf32>
    %262 = math.exp %261 : vector<2x256xf32>
    %cst_54 = arith.constant 1.000000e+00 : f32
    %263 = vector.broadcast %cst_54 : f32 to vector<2x256xf32>
    %264 = arith.addf %263, %262 : vector<2x256xf32>
    %265 = arith.divf %263, %264 : vector<2x256xf32>
    %266 = math.tanh %260 : vector<2x256xf32>
    %267 = vector.extract_strided_slice %265 {offsets = [0, 0], sizes = [2, 64], strides = [1, 1]} : vector<2x256xf32> to vector<2x64xf32>
    %268 = vector.extract_strided_slice %265 {offsets = [0, 64], sizes = [2, 64], strides = [1, 1]} : vector<2x256xf32> to vector<2x64xf32>
    %269 = vector.extract_strided_slice %266 {offsets = [0, 128], sizes = [2, 64], strides = [1, 1]} : vector<2x256xf32> to vector<2x64xf32>
    %270 = vector.extract_strided_slice %265 {offsets = [0, 192], sizes = [2, 64], strides = [1, 1]} : vector<2x256xf32> to vector<2x64xf32>
    %271 = arith.mulf %268, %253 : vector<2x64xf32>
    %272 = arith.mulf %267, %269 : vector<2x64xf32>
    %273 = arith.addf %271, %272 : vector<2x64xf32>
    %274 = math.tanh %273 : vector<2x64xf32>
    %275 = arith.mulf %270, %274 : vector<2x64xf32>
    %276 = vector.extract_strided_slice %275 {offsets = [0, 0], sizes = [2, 32], strides = [1, 1]} : vector<2x64xf32> to vector<2x32xf32>
    %277 = vector.extract_strided_slice %275 {offsets = [0, 32], sizes = [2, 32], strides = [1, 1]} : vector<2x64xf32> to vector<2x32xf32>
    %278 = vector.extract_strided_slice %214 {offsets = [6, 0], sizes = [2, 256], strides = [1, 1]} : vector<16x256xf32> to vector<2x256xf32>
    %cst_55 = arith.constant dense<0.000000e+00> : vector<2x256xf32>
    %279 = tpu.matmul %275, %215, %cst_55 {dimension_numbers = #tpu.dot_dimension_numbers<[1], [0], [0], [1], [0, 0, 1, 1], [], []>} : vector<2x64xf32>, vector<64x256xf32>, vector<2x256xf32> -> vector<2x256xf32>
    %280 = arith.addf %278, %279 : vector<2x256xf32>
    %281 = arith.negf %280 : vector<2x256xf32>
    %282 = math.exp %281 : vector<2x256xf32>
    %cst_56 = arith.constant 1.000000e+00 : f32
    %283 = vector.broadcast %cst_56 : f32 to vector<2x256xf32>
    %284 = arith.addf %283, %282 : vector<2x256xf32>
    %285 = arith.divf %283, %284 : vector<2x256xf32>
    %286 = math.tanh %280 : vector<2x256xf32>
    %287 = vector.extract_strided_slice %285 {offsets = [0, 0], sizes = [2, 64], strides = [1, 1]} : vector<2x256xf32> to vector<2x64xf32>
    %288 = vector.extract_strided_slice %285 {offsets = [0, 64], sizes = [2, 64], strides = [1, 1]} : vector<2x256xf32> to vector<2x64xf32>
    %289 = vector.extract_strided_slice %286 {offsets = [0, 128], sizes = [2, 64], strides = [1, 1]} : vector<2x256xf32> to vector<2x64xf32>
    %290 = vector.extract_strided_slice %285 {offsets = [0, 192], sizes = [2, 64], strides = [1, 1]} : vector<2x256xf32> to vector<2x64xf32>
    %291 = arith.mulf %288, %273 : vector<2x64xf32>
    %292 = arith.mulf %287, %289 : vector<2x64xf32>
    %293 = arith.addf %291, %292 : vector<2x64xf32>
    %294 = math.tanh %293 : vector<2x64xf32>
    %295 = arith.mulf %290, %294 : vector<2x64xf32>
    %296 = vector.extract_strided_slice %295 {offsets = [0, 0], sizes = [2, 32], strides = [1, 1]} : vector<2x64xf32> to vector<2x32xf32>
    %297 = vector.extract_strided_slice %295 {offsets = [0, 32], sizes = [2, 32], strides = [1, 1]} : vector<2x64xf32> to vector<2x32xf32>
    %298 = vector.extract_strided_slice %214 {offsets = [8, 0], sizes = [2, 256], strides = [1, 1]} : vector<16x256xf32> to vector<2x256xf32>
    %cst_57 = arith.constant dense<0.000000e+00> : vector<2x256xf32>
    %299 = tpu.matmul %295, %215, %cst_57 {dimension_numbers = #tpu.dot_dimension_numbers<[1], [0], [0], [1], [0, 0, 1, 1], [], []>} : vector<2x64xf32>, vector<64x256xf32>, vector<2x256xf32> -> vector<2x256xf32>
    %300 = arith.addf %298, %299 : vector<2x256xf32>
    %301 = arith.negf %300 : vector<2x256xf32>
    %302 = math.exp %301 : vector<2x256xf32>
    %cst_58 = arith.constant 1.000000e+00 : f32
    %303 = vector.broadcast %cst_58 : f32 to vector<2x256xf32>
    %304 = arith.addf %303, %302 : vector<2x256xf32>
    %305 = arith.divf %303, %304 : vector<2x256xf32>
    %306 = math.tanh %300 : vector<2x256xf32>
    %307 = vector.extract_strided_slice %305 {offsets = [0, 0], sizes = [2, 64], strides = [1, 1]} : vector<2x256xf32> to vector<2x64xf32>
    %308 = vector.extract_strided_slice %305 {offsets = [0, 64], sizes = [2, 64], strides = [1, 1]} : vector<2x256xf32> to vector<2x64xf32>
    %309 = vector.extract_strided_slice %306 {offsets = [0, 128], sizes = [2, 64], strides = [1, 1]} : vector<2x256xf32> to vector<2x64xf32>
    %310 = vector.extract_strided_slice %305 {offsets = [0, 192], sizes = [2, 64], strides = [1, 1]} : vector<2x256xf32> to vector<2x64xf32>
    %311 = arith.mulf %308, %293 : vector<2x64xf32>
    %312 = arith.mulf %307, %309 : vector<2x64xf32>
    %313 = arith.addf %311, %312 : vector<2x64xf32>
    %314 = math.tanh %313 : vector<2x64xf32>
    %315 = arith.mulf %310, %314 : vector<2x64xf32>
    %316 = vector.extract_strided_slice %315 {offsets = [0, 0], sizes = [2, 32], strides = [1, 1]} : vector<2x64xf32> to vector<2x32xf32>
    %317 = vector.extract_strided_slice %315 {offsets = [0, 32], sizes = [2, 32], strides = [1, 1]} : vector<2x64xf32> to vector<2x32xf32>
    %318 = vector.extract_strided_slice %214 {offsets = [10, 0], sizes = [2, 256], strides = [1, 1]} : vector<16x256xf32> to vector<2x256xf32>
    %cst_59 = arith.constant dense<0.000000e+00> : vector<2x256xf32>
    %319 = tpu.matmul %315, %215, %cst_59 {dimension_numbers = #tpu.dot_dimension_numbers<[1], [0], [0], [1], [0, 0, 1, 1], [], []>} : vector<2x64xf32>, vector<64x256xf32>, vector<2x256xf32> -> vector<2x256xf32>
    %320 = arith.addf %318, %319 : vector<2x256xf32>
    %321 = arith.negf %320 : vector<2x256xf32>
    %322 = math.exp %321 : vector<2x256xf32>
    %cst_60 = arith.constant 1.000000e+00 : f32
    %323 = vector.broadcast %cst_60 : f32 to vector<2x256xf32>
    %324 = arith.addf %323, %322 : vector<2x256xf32>
    %325 = arith.divf %323, %324 : vector<2x256xf32>
    %326 = math.tanh %320 : vector<2x256xf32>
    %327 = vector.extract_strided_slice %325 {offsets = [0, 0], sizes = [2, 64], strides = [1, 1]} : vector<2x256xf32> to vector<2x64xf32>
    %328 = vector.extract_strided_slice %325 {offsets = [0, 64], sizes = [2, 64], strides = [1, 1]} : vector<2x256xf32> to vector<2x64xf32>
    %329 = vector.extract_strided_slice %326 {offsets = [0, 128], sizes = [2, 64], strides = [1, 1]} : vector<2x256xf32> to vector<2x64xf32>
    %330 = vector.extract_strided_slice %325 {offsets = [0, 192], sizes = [2, 64], strides = [1, 1]} : vector<2x256xf32> to vector<2x64xf32>
    %331 = arith.mulf %328, %313 : vector<2x64xf32>
    %332 = arith.mulf %327, %329 : vector<2x64xf32>
    %333 = arith.addf %331, %332 : vector<2x64xf32>
    %334 = math.tanh %333 : vector<2x64xf32>
    %335 = arith.mulf %330, %334 : vector<2x64xf32>
    %336 = vector.extract_strided_slice %335 {offsets = [0, 0], sizes = [2, 32], strides = [1, 1]} : vector<2x64xf32> to vector<2x32xf32>
    %337 = vector.extract_strided_slice %335 {offsets = [0, 32], sizes = [2, 32], strides = [1, 1]} : vector<2x64xf32> to vector<2x32xf32>
    %338 = vector.extract_strided_slice %214 {offsets = [12, 0], sizes = [2, 256], strides = [1, 1]} : vector<16x256xf32> to vector<2x256xf32>
    %cst_61 = arith.constant dense<0.000000e+00> : vector<2x256xf32>
    %339 = tpu.matmul %335, %215, %cst_61 {dimension_numbers = #tpu.dot_dimension_numbers<[1], [0], [0], [1], [0, 0, 1, 1], [], []>} : vector<2x64xf32>, vector<64x256xf32>, vector<2x256xf32> -> vector<2x256xf32>
    %340 = arith.addf %338, %339 : vector<2x256xf32>
    %341 = arith.negf %340 : vector<2x256xf32>
    %342 = math.exp %341 : vector<2x256xf32>
    %cst_62 = arith.constant 1.000000e+00 : f32
    %343 = vector.broadcast %cst_62 : f32 to vector<2x256xf32>
    %344 = arith.addf %343, %342 : vector<2x256xf32>
    %345 = arith.divf %343, %344 : vector<2x256xf32>
    %346 = math.tanh %340 : vector<2x256xf32>
    %347 = vector.extract_strided_slice %345 {offsets = [0, 0], sizes = [2, 64], strides = [1, 1]} : vector<2x256xf32> to vector<2x64xf32>
    %348 = vector.extract_strided_slice %345 {offsets = [0, 64], sizes = [2, 64], strides = [1, 1]} : vector<2x256xf32> to vector<2x64xf32>
    %349 = vector.extract_strided_slice %346 {offsets = [0, 128], sizes = [2, 64], strides = [1, 1]} : vector<2x256xf32> to vector<2x64xf32>
    %350 = vector.extract_strided_slice %345 {offsets = [0, 192], sizes = [2, 64], strides = [1, 1]} : vector<2x256xf32> to vector<2x64xf32>
    %351 = arith.mulf %348, %333 : vector<2x64xf32>
    %352 = arith.mulf %347, %349 : vector<2x64xf32>
    %353 = arith.addf %351, %352 : vector<2x64xf32>
    %354 = math.tanh %353 : vector<2x64xf32>
    %355 = arith.mulf %350, %354 : vector<2x64xf32>
    %356 = vector.extract_strided_slice %355 {offsets = [0, 0], sizes = [2, 32], strides = [1, 1]} : vector<2x64xf32> to vector<2x32xf32>
    %357 = vector.extract_strided_slice %355 {offsets = [0, 32], sizes = [2, 32], strides = [1, 1]} : vector<2x64xf32> to vector<2x32xf32>
    %358 = vector.extract_strided_slice %214 {offsets = [14, 0], sizes = [2, 256], strides = [1, 1]} : vector<16x256xf32> to vector<2x256xf32>
    %cst_63 = arith.constant dense<0.000000e+00> : vector<2x256xf32>
    %359 = tpu.matmul %355, %215, %cst_63 {dimension_numbers = #tpu.dot_dimension_numbers<[1], [0], [0], [1], [0, 0, 1, 1], [], []>} : vector<2x64xf32>, vector<64x256xf32>, vector<2x256xf32> -> vector<2x256xf32>
    %360 = arith.addf %358, %359 : vector<2x256xf32>
    %361 = arith.negf %360 : vector<2x256xf32>
    %362 = math.exp %361 : vector<2x256xf32>
    %cst_64 = arith.constant 1.000000e+00 : f32
    %363 = vector.broadcast %cst_64 : f32 to vector<2x256xf32>
    %364 = arith.addf %363, %362 : vector<2x256xf32>
    %365 = arith.divf %363, %364 : vector<2x256xf32>
    %366 = math.tanh %360 : vector<2x256xf32>
    %367 = vector.extract_strided_slice %365 {offsets = [0, 0], sizes = [2, 64], strides = [1, 1]} : vector<2x256xf32> to vector<2x64xf32>
    %368 = vector.extract_strided_slice %365 {offsets = [0, 64], sizes = [2, 64], strides = [1, 1]} : vector<2x256xf32> to vector<2x64xf32>
    %369 = vector.extract_strided_slice %366 {offsets = [0, 128], sizes = [2, 64], strides = [1, 1]} : vector<2x256xf32> to vector<2x64xf32>
    %370 = vector.extract_strided_slice %365 {offsets = [0, 192], sizes = [2, 64], strides = [1, 1]} : vector<2x256xf32> to vector<2x64xf32>
    %371 = arith.mulf %368, %353 : vector<2x64xf32>
    %372 = arith.mulf %367, %369 : vector<2x64xf32>
    %373 = arith.addf %371, %372 : vector<2x64xf32>
    %374 = math.tanh %373 : vector<2x64xf32>
    %375 = arith.mulf %370, %374 : vector<2x64xf32>
    %376 = vector.extract_strided_slice %375 {offsets = [0, 0], sizes = [2, 32], strides = [1, 1]} : vector<2x64xf32> to vector<2x32xf32>
    %377 = vector.extract_strided_slice %375 {offsets = [0, 32], sizes = [2, 32], strides = [1, 1]} : vector<2x64xf32> to vector<2x32xf32>
    %378 = tpu.concatenate %236, %377 in 1 : vector<2x32xf32>, vector<2x32xf32> -> vector<2x64xf32>
    %c0_65 = arith.constant 0 : index
    %c0_66 = arith.constant 0 : index
    %c0_67 = arith.constant 0 : index
    %379 = vector.load %arg20[%c0_65, %c0_66, %c0_67] : memref<8x2x64xf32, #tpu.memory_space<vmem>>, vector<1x2x64xf32>
    %380 = vector.shape_cast %379 : vector<1x2x64xf32> to vector<2x64xf32>
    %381 = vector.shape_cast %378 : vector<2x64xf32> to vector<1x2x64xf32>
    tpu.vector_store %arg20[%c0_65, %c0_66, %c0_67], %381 {strides = array<i32>} : memref<8x2x64xf32, #tpu.memory_space<vmem>>, vector<1x2x64xf32>,
    %c0_68 = arith.constant 0 : index
    %c0_69 = arith.constant 0 : index
    %c0_70 = arith.constant 0 : index
    %382 = vector.load %arg16[%c0_68, %c0_69, %c0_70] : memref<2x8x64xf32, #tpu.memory_space<vmem>>, vector<2x1x64xf32>
    %383 = vector.shape_cast %382 : vector<2x1x64xf32> to vector<2x64xf32>
    %384 = vector.shape_cast %378 : vector<2x64xf32> to vector<2x1x64xf32>
    tpu.vector_store %arg16[%c0_68, %c0_69, %c0_70], %384 {strides = array<i32>} : memref<2x8x64xf32, #tpu.memory_space<vmem>>, vector<2x1x64xf32>,
    %385 = tpu.concatenate %256, %357 in 1 : vector<2x32xf32>, vector<2x32xf32> -> vector<2x64xf32>
    %c1_71 = arith.constant 1 : index
    %c0_72 = arith.constant 0 : index
    %c0_73 = arith.constant 0 : index
    %386 = vector.load %arg20[%c1_71, %c0_72, %c0_73] : memref<8x2x64xf32, #tpu.memory_space<vmem>>, vector<1x2x64xf32>
    %387 = vector.shape_cast %386 : vector<1x2x64xf32> to vector<2x64xf32>
    %388 = vector.shape_cast %385 : vector<2x64xf32> to vector<1x2x64xf32>
    tpu.vector_store %arg20[%c1_71, %c0_72, %c0_73], %388 {strides = array<i32>} : memref<8x2x64xf32, #tpu.memory_space<vmem>>, vector<1x2x64xf32>,
    %c0_74 = arith.constant 0 : index
    %c1_75 = arith.constant 1 : index
    %c0_76 = arith.constant 0 : index
    %389 = vector.load %arg16[%c0_74, %c1_75, %c0_76] : memref<2x8x64xf32, #tpu.memory_space<vmem>>, vector<2x1x64xf32>
    %390 = vector.shape_cast %389 : vector<2x1x64xf32> to vector<2x64xf32>
    %391 = vector.shape_cast %385 : vector<2x64xf32> to vector<2x1x64xf32>
    tpu.vector_store %arg16[%c0_74, %c1_75, %c0_76], %391 {strides = array<i32>} : memref<2x8x64xf32, #tpu.memory_space<vmem>>, vector<2x1x64xf32>,
    %392 = tpu.concatenate %276, %337 in 1 : vector<2x32xf32>, vector<2x32xf32> -> vector<2x64xf32>
    %c2_77 = arith.constant 2 : index
    %c0_78 = arith.constant 0 : index
    %c0_79 = arith.constant 0 : index
    %393 = vector.load %arg20[%c2_77, %c0_78, %c0_79] : memref<8x2x64xf32, #tpu.memory_space<vmem>>, vector<1x2x64xf32>
    %394 = vector.shape_cast %393 : vector<1x2x64xf32> to vector<2x64xf32>
    %395 = vector.shape_cast %392 : vector<2x64xf32> to vector<1x2x64xf32>
    tpu.vector_store %arg20[%c2_77, %c0_78, %c0_79], %395 {strides = array<i32>} : memref<8x2x64xf32, #tpu.memory_space<vmem>>, vector<1x2x64xf32>,
    %c0_80 = arith.constant 0 : index
    %c2_81 = arith.constant 2 : index
    %c0_82 = arith.constant 0 : index
    %396 = vector.load %arg16[%c0_80, %c2_81, %c0_82] : memref<2x8x64xf32, #tpu.memory_space<vmem>>, vector<2x1x64xf32>
    %397 = vector.shape_cast %396 : vector<2x1x64xf32> to vector<2x64xf32>
    %398 = vector.shape_cast %392 : vector<2x64xf32> to vector<2x1x64xf32>
    tpu.vector_store %arg16[%c0_80, %c2_81, %c0_82], %398 {strides = array<i32>} : memref<2x8x64xf32, #tpu.memory_space<vmem>>, vector<2x1x64xf32>,
    %399 = tpu.concatenate %296, %317 in 1 : vector<2x32xf32>, vector<2x32xf32> -> vector<2x64xf32>
    %c3_83 = arith.constant 3 : index
    %c0_84 = arith.constant 0 : index
    %c0_85 = arith.constant 0 : index
    %400 = vector.load %arg20[%c3_83, %c0_84, %c0_85] : memref<8x2x64xf32, #tpu.memory_space<vmem>>, vector<1x2x64xf32>
    %401 = vector.shape_cast %400 : vector<1x2x64xf32> to vector<2x64xf32>
    %402 = vector.shape_cast %399 : vector<2x64xf32> to vector<1x2x64xf32>
    tpu.vector_store %arg20[%c3_83, %c0_84, %c0_85], %402 {strides = array<i32>} : memref<8x2x64xf32, #tpu.memory_space<vmem>>, vector<1x2x64xf32>,
    %c0_86 = arith.constant 0 : index
    %c3_87 = arith.constant 3 : index
    %c0_88 = arith.constant 0 : index
    %403 = vector.load %arg16[%c0_86, %c3_87, %c0_88] : memref<2x8x64xf32, #tpu.memory_space<vmem>>, vector<2x1x64xf32>
    %404 = vector.shape_cast %403 : vector<2x1x64xf32> to vector<2x64xf32>
    %405 = vector.shape_cast %399 : vector<2x64xf32> to vector<2x1x64xf32>
    tpu.vector_store %arg16[%c0_86, %c3_87, %c0_88], %405 {strides = array<i32>} : memref<2x8x64xf32, #tpu.memory_space<vmem>>, vector<2x1x64xf32>,
    %406 = tpu.concatenate %316, %297 in 1 : vector<2x32xf32>, vector<2x32xf32> -> vector<2x64xf32>
    %c4_89 = arith.constant 4 : index
    %c0_90 = arith.constant 0 : index
    %c0_91 = arith.constant 0 : index
    %407 = vector.load %arg20[%c4_89, %c0_90, %c0_91] : memref<8x2x64xf32, #tpu.memory_space<vmem>>, vector<1x2x64xf32>
    %408 = vector.shape_cast %407 : vector<1x2x64xf32> to vector<2x64xf32>
    %409 = vector.shape_cast %406 : vector<2x64xf32> to vector<1x2x64xf32>
    tpu.vector_store %arg20[%c4_89, %c0_90, %c0_91], %409 {strides = array<i32>} : memref<8x2x64xf32, #tpu.memory_space<vmem>>, vector<1x2x64xf32>,
    %c0_92 = arith.constant 0 : index
    %c4_93 = arith.constant 4 : index
    %c0_94 = arith.constant 0 : index
    %410 = vector.load %arg16[%c0_92, %c4_93, %c0_94] : memref<2x8x64xf32, #tpu.memory_space<vmem>>, vector<2x1x64xf32>
    %411 = vector.shape_cast %410 : vector<2x1x64xf32> to vector<2x64xf32>
    %412 = vector.shape_cast %406 : vector<2x64xf32> to vector<2x1x64xf32>
    tpu.vector_store %arg16[%c0_92, %c4_93, %c0_94], %412 {strides = array<i32>} : memref<2x8x64xf32, #tpu.memory_space<vmem>>, vector<2x1x64xf32>,
    %413 = tpu.concatenate %336, %277 in 1 : vector<2x32xf32>, vector<2x32xf32> -> vector<2x64xf32>
    %c5_95 = arith.constant 5 : index
    %c0_96 = arith.constant 0 : index
    %c0_97 = arith.constant 0 : index
    %414 = vector.load %arg20[%c5_95, %c0_96, %c0_97] : memref<8x2x64xf32, #tpu.memory_space<vmem>>, vector<1x2x64xf32>
    %415 = vector.shape_cast %414 : vector<1x2x64xf32> to vector<2x64xf32>
    %416 = vector.shape_cast %413 : vector<2x64xf32> to vector<1x2x64xf32>
    tpu.vector_store %arg20[%c5_95, %c0_96, %c0_97], %416 {strides = array<i32>} : memref<8x2x64xf32, #tpu.memory_space<vmem>>, vector<1x2x64xf32>,
    %c0_98 = arith.constant 0 : index
    %c5_99 = arith.constant 5 : index
    %c0_100 = arith.constant 0 : index
    %417 = vector.load %arg16[%c0_98, %c5_99, %c0_100] : memref<2x8x64xf32, #tpu.memory_space<vmem>>, vector<2x1x64xf32>
    %418 = vector.shape_cast %417 : vector<2x1x64xf32> to vector<2x64xf32>
    %419 = vector.shape_cast %413 : vector<2x64xf32> to vector<2x1x64xf32>
    tpu.vector_store %arg16[%c0_98, %c5_99, %c0_100], %419 {strides = array<i32>} : memref<2x8x64xf32, #tpu.memory_space<vmem>>, vector<2x1x64xf32>,
    %420 = tpu.concatenate %356, %257 in 1 : vector<2x32xf32>, vector<2x32xf32> -> vector<2x64xf32>
    %c6_101 = arith.constant 6 : index
    %c0_102 = arith.constant 0 : index
    %c0_103 = arith.constant 0 : index
    %421 = vector.load %arg20[%c6_101, %c0_102, %c0_103] : memref<8x2x64xf32, #tpu.memory_space<vmem>>, vector<1x2x64xf32>
    %422 = vector.shape_cast %421 : vector<1x2x64xf32> to vector<2x64xf32>
    %423 = vector.shape_cast %420 : vector<2x64xf32> to vector<1x2x64xf32>
    tpu.vector_store %arg20[%c6_101, %c0_102, %c0_103], %423 {strides = array<i32>} : memref<8x2x64xf32, #tpu.memory_space<vmem>>, vector<1x2x64xf32>,
    %c0_104 = arith.constant 0 : index
    %c6_105 = arith.constant 6 : index
    %c0_106 = arith.constant 0 : index
    %424 = vector.load %arg16[%c0_104, %c6_105, %c0_106] : memref<2x8x64xf32, #tpu.memory_space<vmem>>, vector<2x1x64xf32>
    %425 = vector.shape_cast %424 : vector<2x1x64xf32> to vector<2x64xf32>
    %426 = vector.shape_cast %420 : vector<2x64xf32> to vector<2x1x64xf32>
    tpu.vector_store %arg16[%c0_104, %c6_105, %c0_106], %426 {strides = array<i32>} : memref<2x8x64xf32, #tpu.memory_space<vmem>>, vector<2x1x64xf32>,
    %427 = tpu.concatenate %376, %237 in 1 : vector<2x32xf32>, vector<2x32xf32> -> vector<2x64xf32>
    %c7_107 = arith.constant 7 : index
    %c0_108 = arith.constant 0 : index
    %c0_109 = arith.constant 0 : index
    %428 = vector.load %arg20[%c7_107, %c0_108, %c0_109] : memref<8x2x64xf32, #tpu.memory_space<vmem>>, vector<1x2x64xf32>
    %429 = vector.shape_cast %428 : vector<1x2x64xf32> to vector<2x64xf32>
    %430 = vector.shape_cast %427 : vector<2x64xf32> to vector<1x2x64xf32>
    tpu.vector_store %arg20[%c7_107, %c0_108, %c0_109], %430 {strides = array<i32>} : memref<8x2x64xf32, #tpu.memory_space<vmem>>, vector<1x2x64xf32>,
    %c0_110 = arith.constant 0 : index
    %c7_111 = arith.constant 7 : index
    %c0_112 = arith.constant 0 : index
    %431 = vector.load %arg16[%c0_110, %c7_111, %c0_112] : memref<2x8x64xf32, #tpu.memory_space<vmem>>, vector<2x1x64xf32>
    %432 = vector.shape_cast %431 : vector<2x1x64xf32> to vector<2x64xf32>
    %433 = vector.shape_cast %427 : vector<2x64xf32> to vector<2x1x64xf32>
    tpu.vector_store %arg16[%c0_110, %c7_111, %c0_112], %433 {strides = array<i32>} : memref<2x8x64xf32, #tpu.memory_space<vmem>>, vector<2x1x64xf32>,
    %434 = vector.extract_strided_slice %190 {offsets = [0, 0], sizes = [2, 32], strides = [1, 1]} : vector<2x64xf32> to vector<2x32xf32>
    %435 = vector.extract_strided_slice %375 {offsets = [0, 0], sizes = [2, 32], strides = [1, 1]} : vector<2x64xf32> to vector<2x32xf32>
    %436 = tpu.concatenate %434, %435 in 1 : vector<2x32xf32>, vector<2x32xf32> -> vector<2x64xf32>
    %437 = vector.extract_strided_slice %190 {offsets = [0, 32], sizes = [2, 32], strides = [1, 1]} : vector<2x64xf32> to vector<2x32xf32>
    %438 = vector.extract_strided_slice %375 {offsets = [0, 32], sizes = [2, 32], strides = [1, 1]} : vector<2x64xf32> to vector<2x32xf32>
    %439 = tpu.concatenate %437, %438 in 1 : vector<2x32xf32>, vector<2x32xf32> -> vector<2x64xf32>
    %440 = arith.addf %436, %439 : vector<2x64xf32>
    %cst_113 = arith.constant 5.000000e-01 : f32
    %441 = vector.broadcast %cst_113 : f32 to vector<2x64xf32>
    %442 = arith.mulf %441, %440 : vector<2x64xf32>
    %c0_114 = arith.constant 0 : index
    %c0_115 = arith.constant 0 : index
    %c0_116 = arith.constant 0 : index
    %443 = vector.load %arg17[%c0_114, %c0_115, %c0_116] : memref<2x1x64xf32, #tpu.memory_space<vmem>>, vector<2x1x64xf32>
    %444 = vector.shape_cast %443 : vector<2x1x64xf32> to vector<2x64xf32>
    %445 = vector.shape_cast %442 : vector<2x64xf32> to vector<2x1x64xf32>
    tpu.vector_store %arg17[%c0_114, %c0_115, %c0_116], %445 {strides = array<i32>} : memref<2x1x64xf32, #tpu.memory_space<vmem>>, vector<2x1x64xf32>,
    %c0_117 = arith.constant 0 : index
    %c0_118 = arith.constant 0 : index
    %446 = vector.load %arg8[%c0_117, %c0_118] : memref<64x64xf32, #tpu.memory_space<vmem>>, vector<64x64xf32>
    %cst_119 = arith.constant dense<0.000000e+00> : vector<2x64xf32>
    %447 = tpu.matmul %442, %446, %cst_119 {dimension_numbers = #tpu.dot_dimension_numbers<[1], [0], [0], [1], [0, 0, 1, 1], [], []>} : vector<2x64xf32>, vector<64x64xf32>, vector<2x64xf32> -> vector<2x64xf32>
    %c0_120 = arith.constant 0 : index
    %c0_121 = arith.constant 0 : index
    %448 = vector.load %arg9[%c0_120, %c0_121] : memref<1x64xf32, #tpu.memory_space<vmem>>, vector<1x64xf32>
    %449 = vector.broadcast %448 : vector<1x64xf32> to vector<2x64xf32>
    %450 = arith.addf %447, %449 : vector<2x64xf32>
    %cst_122 = arith.constant 0.000000e+00 : f32
    %451 = vector.broadcast %cst_122 : f32 to vector<2x64xf32>
    %452 = arith.maximumf %450, %451 : vector<2x64xf32>
    %c0_123 = arith.constant 0 : index
    %c0_124 = arith.constant 0 : index
    %453 = vector.load %arg10[%c0_123, %c0_124] : memref<64x64xf32, #tpu.memory_space<vmem>>, vector<64x64xf32>
    %cst_125 = arith.constant dense<0.000000e+00> : vector<2x64xf32>
    %454 = tpu.matmul %452, %453, %cst_125 {dimension_numbers = #tpu.dot_dimension_numbers<[1], [0], [0], [1], [0, 0, 1, 1], [], []>} : vector<2x64xf32>, vector<64x64xf32>, vector<2x64xf32> -> vector<2x64xf32>
    %c0_126 = arith.constant 0 : index
    %c0_127 = arith.constant 0 : index
    %455 = vector.load %arg11[%c0_126, %c0_127] : memref<1x64xf32, #tpu.memory_space<vmem>>, vector<1x64xf32>
    %456 = vector.broadcast %455 : vector<1x64xf32> to vector<2x64xf32>
    %457 = arith.addf %454, %456 : vector<2x64xf32>
    %458 = math.tanh %457 : vector<2x64xf32>
    %c0_128 = arith.constant 0 : index
    %c0_129 = arith.constant 0 : index
    %c0_130 = arith.constant 0 : index
    %459 = vector.load %arg18[%c0_128, %c0_129, %c0_130] : memref<2x1x64xf32, #tpu.memory_space<vmem>>, vector<2x1x64xf32>
    %460 = vector.shape_cast %459 : vector<2x1x64xf32> to vector<2x64xf32>
    %461 = vector.shape_cast %458 : vector<2x64xf32> to vector<2x1x64xf32>
    tpu.vector_store %arg18[%c0_128, %c0_129, %c0_130], %461 {strides = array<i32>} : memref<2x1x64xf32, #tpu.memory_space<vmem>>, vector<2x1x64xf32>,
    %462 = vector.extract_strided_slice %442 {offsets = [0, 0], sizes = [1, 64], strides = [1, 1]} : vector<2x64xf32> to vector<1x64xf32>
    %c0_131 = arith.constant 0 : index
    %463 = memref.load %arg0[%c0_131] : memref<12xi32, #tpu.memory_space<smem>>
    %464 = arith.index_cast %463 : i32 to index
    %c0_132 = arith.constant 0 : index
    %c0_133 = arith.constant 0 : index
    %465 = vector.load %arg20[%464, %c0_132, %c0_133] : memref<8x2x64xf32, #tpu.memory_space<vmem>>, vector<1x2x64xf32>
    %466 = vector.shape_cast %465 : vector<1x2x64xf32> to vector<2x64xf32>
    %467 = vector.extract_strided_slice %466 {offsets = [0, 0], sizes = [1, 64], strides = [1, 1]} : vector<2x64xf32> to vector<1x64xf32>
    %c1_134 = arith.constant 1 : index
    %468 = memref.load %arg0[%c1_134] : memref<12xi32, #tpu.memory_space<smem>>
    %469 = arith.index_cast %468 : i32 to index
    %c0_135 = arith.constant 0 : index
    %c0_136 = arith.constant 0 : index
    %470 = vector.load %arg20[%469, %c0_135, %c0_136] : memref<8x2x64xf32, #tpu.memory_space<vmem>>, vector<1x2x64xf32>
    %471 = vector.shape_cast %470 : vector<1x2x64xf32> to vector<2x64xf32>
    %472 = vector.extract_strided_slice %471 {offsets = [0, 0], sizes = [1, 64], strides = [1, 1]} : vector<2x64xf32> to vector<1x64xf32>
    %c2_137 = arith.constant 2 : index
    %473 = memref.load %arg0[%c2_137] : memref<12xi32, #tpu.memory_space<smem>>
    %474 = arith.index_cast %473 : i32 to index
    %c0_138 = arith.constant 0 : index
    %c0_139 = arith.constant 0 : index
    %475 = vector.load %arg20[%474, %c0_138, %c0_139] : memref<8x2x64xf32, #tpu.memory_space<vmem>>, vector<1x2x64xf32>
    %476 = vector.shape_cast %475 : vector<1x2x64xf32> to vector<2x64xf32>
    %477 = vector.extract_strided_slice %476 {offsets = [0, 0], sizes = [1, 64], strides = [1, 1]} : vector<2x64xf32> to vector<1x64xf32>
    %478 = tpu.concatenate %462, %467, %472, %477 in 1 : vector<1x64xf32>, vector<1x64xf32>, vector<1x64xf32>, vector<1x64xf32> -> vector<1x256xf32>
    %479 = vector.extract_strided_slice %442 {offsets = [0, 0], sizes = [1, 64], strides = [1, 1]} : vector<2x64xf32> to vector<1x64xf32>
    %c3_140 = arith.constant 3 : index
    %480 = memref.load %arg0[%c3_140] : memref<12xi32, #tpu.memory_space<smem>>
    %481 = arith.index_cast %480 : i32 to index
    %c0_141 = arith.constant 0 : index
    %c0_142 = arith.constant 0 : index
    %482 = vector.load %arg20[%481, %c0_141, %c0_142] : memref<8x2x64xf32, #tpu.memory_space<vmem>>, vector<1x2x64xf32>
    %483 = vector.shape_cast %482 : vector<1x2x64xf32> to vector<2x64xf32>
    %484 = vector.extract_strided_slice %483 {offsets = [0, 0], sizes = [1, 64], strides = [1, 1]} : vector<2x64xf32> to vector<1x64xf32>
    %c4_143 = arith.constant 4 : index
    %485 = memref.load %arg0[%c4_143] : memref<12xi32, #tpu.memory_space<smem>>
    %486 = arith.index_cast %485 : i32 to index
    %c0_144 = arith.constant 0 : index
    %c0_145 = arith.constant 0 : index
    %487 = vector.load %arg20[%486, %c0_144, %c0_145] : memref<8x2x64xf32, #tpu.memory_space<vmem>>, vector<1x2x64xf32>
    %488 = vector.shape_cast %487 : vector<1x2x64xf32> to vector<2x64xf32>
    %489 = vector.extract_strided_slice %488 {offsets = [0, 0], sizes = [1, 64], strides = [1, 1]} : vector<2x64xf32> to vector<1x64xf32>
    %c5_146 = arith.constant 5 : index
    %490 = memref.load %arg0[%c5_146] : memref<12xi32, #tpu.memory_space<smem>>
    %491 = arith.index_cast %490 : i32 to index
    %c0_147 = arith.constant 0 : index
    %c0_148 = arith.constant 0 : index
    %492 = vector.load %arg20[%491, %c0_147, %c0_148] : memref<8x2x64xf32, #tpu.memory_space<vmem>>, vector<1x2x64xf32>
    %493 = vector.shape_cast %492 : vector<1x2x64xf32> to vector<2x64xf32>
    %494 = vector.extract_strided_slice %493 {offsets = [0, 0], sizes = [1, 64], strides = [1, 1]} : vector<2x64xf32> to vector<1x64xf32>
    %495 = tpu.concatenate %479, %484, %489, %494 in 1 : vector<1x64xf32>, vector<1x64xf32>, vector<1x64xf32>, vector<1x64xf32> -> vector<1x256xf32>
    %496 = vector.extract_strided_slice %442 {offsets = [1, 0], sizes = [1, 64], strides = [1, 1]} : vector<2x64xf32> to vector<1x64xf32>
    %c6_149 = arith.constant 6 : index
    %497 = memref.load %arg0[%c6_149] : memref<12xi32, #tpu.memory_space<smem>>
    %498 = arith.index_cast %497 : i32 to index
    %c0_150 = arith.constant 0 : index
    %c0_151 = arith.constant 0 : index
    %499 = vector.load %arg20[%498, %c0_150, %c0_151] : memref<8x2x64xf32, #tpu.memory_space<vmem>>, vector<1x2x64xf32>
    %500 = vector.shape_cast %499 : vector<1x2x64xf32> to vector<2x64xf32>
    %501 = vector.extract_strided_slice %500 {offsets = [1, 0], sizes = [1, 64], strides = [1, 1]} : vector<2x64xf32> to vector<1x64xf32>
    %c7_152 = arith.constant 7 : index
    %502 = memref.load %arg0[%c7_152] : memref<12xi32, #tpu.memory_space<smem>>
    %503 = arith.index_cast %502 : i32 to index
    %c0_153 = arith.constant 0 : index
    %c0_154 = arith.constant 0 : index
    %504 = vector.load %arg20[%503, %c0_153, %c0_154] : memref<8x2x64xf32, #tpu.memory_space<vmem>>, vector<1x2x64xf32>
    %505 = vector.shape_cast %504 : vector<1x2x64xf32> to vector<2x64xf32>
    %506 = vector.extract_strided_slice %505 {offsets = [1, 0], sizes = [1, 64], strides = [1, 1]} : vector<2x64xf32> to vector<1x64xf32>
    %c8 = arith.constant 8 : index
    %507 = memref.load %arg0[%c8] : memref<12xi32, #tpu.memory_space<smem>>
    %508 = arith.index_cast %507 : i32 to index
    %c0_155 = arith.constant 0 : index
    %c0_156 = arith.constant 0 : index
    %509 = vector.load %arg20[%508, %c0_155, %c0_156] : memref<8x2x64xf32, #tpu.memory_space<vmem>>, vector<1x2x64xf32>
    %510 = vector.shape_cast %509 : vector<1x2x64xf32> to vector<2x64xf32>
    %511 = vector.extract_strided_slice %510 {offsets = [1, 0], sizes = [1, 64], strides = [1, 1]} : vector<2x64xf32> to vector<1x64xf32>
    %512 = tpu.concatenate %496, %501, %506, %511 in 1 : vector<1x64xf32>, vector<1x64xf32>, vector<1x64xf32>, vector<1x64xf32> -> vector<1x256xf32>
    %513 = vector.extract_strided_slice %442 {offsets = [1, 0], sizes = [1, 64], strides = [1, 1]} : vector<2x64xf32> to vector<1x64xf32>
    %c9 = arith.constant 9 : index
    %514 = memref.load %arg0[%c9] : memref<12xi32, #tpu.memory_space<smem>>
    %515 = arith.index_cast %514 : i32 to index
    %c0_157 = arith.constant 0 : index
    %c0_158 = arith.constant 0 : index
    %516 = vector.load %arg20[%515, %c0_157, %c0_158] : memref<8x2x64xf32, #tpu.memory_space<vmem>>, vector<1x2x64xf32>
    %517 = vector.shape_cast %516 : vector<1x2x64xf32> to vector<2x64xf32>
    %518 = vector.extract_strided_slice %517 {offsets = [1, 0], sizes = [1, 64], strides = [1, 1]} : vector<2x64xf32> to vector<1x64xf32>
    %c10 = arith.constant 10 : index
    %519 = memref.load %arg0[%c10] : memref<12xi32, #tpu.memory_space<smem>>
    %520 = arith.index_cast %519 : i32 to index
    %c0_159 = arith.constant 0 : index
    %c0_160 = arith.constant 0 : index
    %521 = vector.load %arg20[%520, %c0_159, %c0_160] : memref<8x2x64xf32, #tpu.memory_space<vmem>>, vector<1x2x64xf32>
    %522 = vector.shape_cast %521 : vector<1x2x64xf32> to vector<2x64xf32>
    %523 = vector.extract_strided_slice %522 {offsets = [1, 0], sizes = [1, 64], strides = [1, 1]} : vector<2x64xf32> to vector<1x64xf32>
    %c11 = arith.constant 11 : index
    %524 = memref.load %arg0[%c11] : memref<12xi32, #tpu.memory_space<smem>>
    %525 = arith.index_cast %524 : i32 to index
    %c0_161 = arith.constant 0 : index
    %c0_162 = arith.constant 0 : index
    %526 = vector.load %arg20[%525, %c0_161, %c0_162] : memref<8x2x64xf32, #tpu.memory_space<vmem>>, vector<1x2x64xf32>
    %527 = vector.shape_cast %526 : vector<1x2x64xf32> to vector<2x64xf32>
    %528 = vector.extract_strided_slice %527 {offsets = [1, 0], sizes = [1, 64], strides = [1, 1]} : vector<2x64xf32> to vector<1x64xf32>
    %529 = tpu.concatenate %513, %518, %523, %528 in 1 : vector<1x64xf32>, vector<1x64xf32>, vector<1x64xf32>, vector<1x64xf32> -> vector<1x256xf32>
    %530 = tpu.concatenate %478, %495, %512, %529 in 0 : vector<1x256xf32>, vector<1x256xf32>, vector<1x256xf32>, vector<1x256xf32> -> vector<4x256xf32>
    %c0_163 = arith.constant 0 : index
    %c0_164 = arith.constant 0 : index
    %531 = vector.load %arg12[%c0_163, %c0_164] : memref<256x64xf32, #tpu.memory_space<vmem>>, vector<256x64xf32>
    %cst_165 = arith.constant dense<0.000000e+00> : vector<4x64xf32>
    %532 = tpu.matmul %530, %531, %cst_165 {dimension_numbers = #tpu.dot_dimension_numbers<[1], [0], [0], [1], [0, 0, 1, 1], [], []>} : vector<4x256xf32>, vector<256x64xf32>, vector<4x64xf32> -> vector<4x64xf32>
    %c0_166 = arith.constant 0 : index
    %c0_167 = arith.constant 0 : index
    %533 = vector.load %arg13[%c0_166, %c0_167] : memref<1x64xf32, #tpu.memory_space<vmem>>, vector<1x64xf32>
    %534 = vector.broadcast %533 : vector<1x64xf32> to vector<4x64xf32>
    %535 = arith.addf %532, %534 : vector<4x64xf32>
    %cst_168 = arith.constant 0.000000e+00 : f32
    %536 = vector.broadcast %cst_168 : f32 to vector<4x64xf32>
    %537 = arith.maximumf %535, %536 : vector<4x64xf32>
    %c0_169 = arith.constant 0 : index
    %c0_170 = arith.constant 0 : index
    %538 = vector.load %arg14[%c0_169, %c0_170] : memref<64x3xf32, #tpu.memory_space<vmem>>, vector<64x3xf32>
    %cst_171 = arith.constant dense<0.000000e+00> : vector<4x3xf32>
    %539 = tpu.matmul %537, %538, %cst_171 {dimension_numbers = #tpu.dot_dimension_numbers<[1], [0], [0], [1], [0, 0, 1, 1], [], []>} : vector<4x64xf32>, vector<64x3xf32>, vector<4x3xf32> -> vector<4x3xf32>
    %c0_172 = arith.constant 0 : index
    %c0_173 = arith.constant 0 : index
    %540 = vector.load %arg15[%c0_172, %c0_173] : memref<1x3xf32, #tpu.memory_space<vmem>>, vector<1x3xf32>
    %541 = vector.broadcast %540 : vector<1x3xf32> to vector<4x3xf32>
    %542 = arith.addf %539, %541 : vector<4x3xf32>
    %543 = arith.negf %542 : vector<4x3xf32>
    %544 = math.exp %543 : vector<4x3xf32>
    %cst_174 = arith.constant 1.000000e+00 : f32
    %545 = vector.broadcast %cst_174 : f32 to vector<4x3xf32>
    %546 = arith.addf %545, %544 : vector<4x3xf32>
    %547 = arith.divf %545, %546 : vector<4x3xf32>
    %c0_175 = arith.constant 0 : index
    %c0_176 = arith.constant 0 : index
    %548 = vector.load %arg19[%c0_175, %c0_176] : memref<4x3xf32, #tpu.memory_space<vmem>>, vector<4x3xf32>
    tpu.vector_store %arg19[%c0_175, %c0_176], %547 {strides = array<i32>} : memref<4x3xf32, #tpu.memory_space<vmem>>, vector<4x3xf32>,
    return
  }
}

</mosaic_0001>

<bundles_post_ra>
// kernel: rl_summ_forward.1
= control target key start
LH: loop header
LB: loop body
LE: loop exit
PB: predicated region body
PF: predicated region fallthrough
CT: control target
= control target key end

     0   :  { %s4849_s0 = inlined_call_operand.vmem [shape: s32[12], index: 0, kind: input, shape index: {}]   ;;  %s4850_s1 = inlined_call_operand.hbm [shape: f32[2,8,64], index: 1, kind: input, shape index: {}]   ;;  %s4851_s2 = inlined_call_operand.vmem [shape: f32[128,256], index: 2, kind: input, shape index: {}]   ;;  %s4852_s3 = inlined_call_operand.vmem [shape: f32[64,256], index: 3, kind: input, shape index: {}]   ;;  %s4853_s4 = inlined_call_operand.vmem [shape: f32[1,256], index: 4, kind: input, shape index: {}]   ;;  %s4854_s5 = inlined_call_operand.hbm [shape: f32[128,256], index: 5, kind: input, shape index: {}]   ;;  %s4855_s6 = inlined_call_operand.hbm [shape: f32[64,256], index: 6, kind: input, shape index: {}]   ;;  %s4856_s7 = inlined_call_operand.vmem [shape: f32[1,256], index: 7, kind: input, shape index: {}]   ;;  %s4857_s8 = inlined_call_operand.vmem [shape: f32[64,64], index: 8, kind: input, shape index: {}]   ;;  %s4858_s9 = inlined_call_operand.vmem [shape: f32[1,64], index: 9, kind: input, shape index: {}]   ;;  %s4859_s10 = inlined_call_operand.hbm [shape: f32[64,64], index: 10, kind: input, shape index: {}]   ;;  %s4860_s11 = inlined_call_operand.hbm [shape: f32[1,64], index: 11, kind: input, shape index: {}]   ;;  %s4861_s12 = inlined_call_operand.vmem [shape: f32[256,64], index: 12, kind: input, shape index: {}]   ;;  %s4862_s13 = inlined_call_operand.hbm [shape: f32[1,64], index: 13, kind: input, shape index: {}]   ;;  %s4863_s14 = inlined_call_operand.vmem [shape: f32[64,3], index: 14, kind: input, shape index: {}]   ;;  %s4864_s15 = inlined_call_operand.hbm [shape: f32[1,3], index: 15, kind: input, shape index: {}]   ;;  %s4865_s16 = inlined_call_operand.hbm [shape: f32[2,8,64], index: 16, kind: output, shape index: {0}]   ;;  %s4866_s17 = inlined_call_operand.hbm [shape: f32[2,1,64], index: 17, kind: output, shape index: {1}]   ;;  %s4867_s18 = inlined_call_operand.hbm [shape: f32[2,1,64], index: 18, kind: output, shape index: {2}]   ;;  %s4868_s19 = inlined_call_operand.hbm [shape: f32[4,3], index: 19, kind: output, shape index: {3}]  }
   0x1   :  { %4874 = sst [smem:[#allocation31_spill]] %s4849_s0 }
   0x2   :  { %4875 = sst [smem:[#allocation32_spill]] %s4850_s1 }
   0x3   :  { %4876 = sst [smem:[#allocation33_spill]] %s4851_s2 }
   0x4   :  { %4877 = sst [smem:[#allocation34_spill]] %s4852_s3 }
   0x5   :  { %25 = vsyncpa [#allocation6], 0 }
   0x6   :  { %26 = vsyncpa [#allocation4], 0 }
   0x7   :  { %27 = vsyncpa [#allocation9], 0 }
   0x8   :  { %28 = vsyncpa [#allocation12], 0 }
   0x9   :  { %29 = vsyncpa [#allocation15], 0 }
   0xa   :  { %30 = vsyncpa [#allocation5], 0 }
   0xb   :  { %31 = vsyncpa [#allocation19], 0  ;;  %s65_s20 = sshll.u32 %s4854_s5, 4  ;;  %s66_s20 = int_to_ptr.hbm [resolvable:$true] %s65_s20 }
   0xc   :  { %32 = vsyncpa [#allocation22], 0  ;;  %s3546_s21 = smov [#allocation8]   ;;  %s4871_s22 = smov 256  }
   0xd   :  { %s67_s1 = sshll.u32 %s3546_s21, 4  ;;  %s4872_s2 = smov 16   ;;  %s68_s1 = int_to_ptr.vmem [resolvable:$true] %s67_s1 }
   0xe   :  { %73 = dma.hbm_to_vmem [thread:$0]  %s66_s20, 4096, %s68_s1, [#allocation9], %s4871_s22, %s4871_s22, %s4872_s2  }
   0xf   :  { %s97_s25 = sshll.u32 %s4859_s10, 4  ;;  %s3549_s3 = smov [#allocation11]   ;;  %s98_s25 = int_to_ptr.hbm [resolvable:$true] %s97_s25 }
  0x10   :  { %s99_s26 = sshll.u32 %s3549_s3, 4  ;;  %s124_s28 = sshll.u32 %s4862_s13, 4  ;;  %s100_s26 = int_to_ptr.vmem [resolvable:$true] %s99_s26  ;;  %s125_s28 = int_to_ptr.hbm [resolvable:$true] %s124_s28 }
  0x11   :  { %s3550_s29 = smov 128   ;;  %s3551_s0 = smov 8  }
  0x12   :  { %105 = dma.hbm_to_vmem [thread:$0]  %s98_s25, 1024, %s100_s26, [#allocation12], %s3550_s29, %s3550_s29, %s3551_s0  }
  0x13   :  { %s4878_s21 = sld [smem:[#allocation31_spill]]  ;;  %s3552_s10 = smov [#allocation14]  }
  0x14   :  { %s126_s23 = sshll.u32 %s3552_s10, 4  ;;  %s3553_s24 = smov [#allocation3]   ;;  %s127_s23 = int_to_ptr.vmem [resolvable:$true] %s126_s23 }
  0x15   :  { %129 = dma.hbm_to_vmem [thread:$0]  %s125_s28, 16, %s127_s23, [#allocation15]  }
  0x16   :  { %s4879_s27 = sld [smem:[#allocation32_spill]]  ;;  %s3554_s22 = smov [#allocation7]  }
  0x17   :  { %s48_s2 = sshll.u32 %s3554_s22, 4  ;;  %s78_s30 = sshll.u32 %s4855_s6, 4  ;;  %s49_s2 = int_to_ptr.vmem [resolvable:$true] %s48_s2  ;;  %s79_s30 = int_to_ptr.hbm [resolvable:$true] %s78_s30 }
  0x18   :  { %s3555_s28 = smov [#allocation10]   ;;  %s111_s10 = sshll.u32 %s4860_s11, 4  ;;  %s112_s10 = int_to_ptr.hbm [resolvable:$true] %s111_s10 }
  0x19   :  { %s38_s1 = sshll.u32 %s4878_s21, 4  ;;  %s80_s20 = sshll.u32 %s3555_s28, 4  ;;  %s39_s1 = int_to_ptr.vmem [resolvable:$true] %s38_s1  ;;  %s81_s20 = int_to_ptr.vmem [resolvable:$true] %s80_s20 }
  0x1a   :  { %41 = dma.vmem_to_smem %s39_s1, 16, %s3553_s24, [#allocation6]  }
  0x1b   :  { %s4880_s23 = smov 16   ;;  %s4881_s22 = smov 256  }
  0x1c   :  { %s46_s5 = sshll.u32 %s4879_s27, 4  ;;  %s137_s6 = sshll.u32 %s4864_s15, 4  ;;  %s47_s5 = int_to_ptr.hbm [resolvable:$true] %s46_s5  ;;  %s138_s6 = int_to_ptr.hbm [resolvable:$true] %s137_s6 }
  0x1d   :  { %54 = dma.hbm_to_vmem [thread:$0]  %s47_s5, 256, %s49_s2, [#allocation4], %s3550_s29, %s3550_s29, %s3551_s0  }
  0x1e   :  { %86 = dma.hbm_to_vmem [thread:$0]  %s79_s30, 2048, %s81_s20, [#allocation9], %s4881_s22, %s4881_s22, %s4880_s23  }
  0x1f   :  { %s3556_s3 = smov [#allocation13]   ;;  %s3557_s2 = smov [#allocation16]  }
  0x20   :  { %s113_s27 = sshll.u32 %s3556_s3, 4  ;;  %s139_s5 = sshll.u32 %s3557_s2, 4  ;;  %s114_s27 = int_to_ptr.vmem [resolvable:$true] %s113_s27  ;;  %s140_s5 = int_to_ptr.vmem [resolvable:$true] %s139_s5 }
  0x21   :  { %116 = dma.hbm_to_vmem [thread:$0]  %s112_s10, 16, %s114_s27, [#allocation12]  }
  0x22   :  { %142 = dma.hbm_to_vmem [thread:$0]  %s138_s6, 16, %s140_s5, [#allocation15]  }
  0x23   :  { %3530 = dma.done.wait [#allocation6], 16  }
  0x24   :  { %3531 = vsyncadd [#allocation6], 4294967280 }
  0x25   :  { %3532 = dma.done.wait [#allocation4], 256  }
  0x26   :  { %3533 = vsyncadd [#allocation4], 4294967040 }
  0x27   :  { %3534 = dma.done.wait [#allocation9], 6144  }
  0x28   :  { %3535 = vsyncadd [#allocation9], 4294961152 }
  0x29   :  { %3536 = dma.done.wait [#allocation12], 1040  }
  0x2a   :  { %3537 = vsyncadd [#allocation12], 4294966256 }
  0x2b   :  { %3538 = dma.done.wait [#allocation15], 32  }
  0x2c   :  { %3539 = vsyncadd [#allocation15], 4294967264 }
  0x2d   :  { %175 = sfence }
  0x2e   :  { %v186_v0 = vld [vmem:[#allocation7 + $0x5] sm:$0x1]  ;;  %v187_v1 = vld [vmem:[#allocation7 + $0xd] sm:$0x1]  ;;  %v188_v2 = vld [vmem:[#allocation7 + $0x6] sm:$0x1] }
  0x2f   :  { %v189_v3 = vld [vmem:[#allocation7 + $0xe] sm:$0x1]  ;;  %vm195_vm0 = vcmask 1041409   ;;  %v227_v4 = vrot.slane %v187_v1, 7  ;;  %s4882_s25 = sld [smem:[#allocation33_spill]]  ;;  %s3558_s5 = smov 64  }
  0x30   :  { %v214_v6 = vrot.slane %v189_v3, 7  ;;  %v185_v7 = vld [vmem:[#allocation7 + $0xc] sm:$0x1]  ;;  %v191_v10 = vld [vmem:[#allocation7 + $0xf] sm:$0x1]  ;;  %s4883_s28 = sld [smem:[#allocation34_spill]] }
  0x31   :  { %v3710_v9 = vsel %vm195_vm0, %v227_v4, %v186_v0  ;;  %v200_v13 = vrot.slane %v191_v10, 7  ;;  %v240_v14 = vrot.slane %v185_v7, 7  ;;  %v184_v19 = vld [vmem:[#allocation7 + $0x4] sm:$0x1]  ;;  %v190_v20 = vld [vmem:[#allocation7 + $0x7] sm:$0x1] }
  0x32   :  { %v3716_v12 = vsel %vm195_vm0, %v214_v6, %v188_v2  ;;  %v3559_v0 = vmov 0.0   ;;  %v179_v3 = vld [vmem:[#allocation7 + $0x9] sm:$0x1]  ;;  %v181_v4 = vld [vmem:[#allocation7 + $0xa] sm:$0x1]  ;;  %vm205_vm1 = vcmask 523264  }
  0x33   :  { %v2967_v18 = vpack.i.bf16 %v3710_v9, %v3716_v12  ;;  %v3745_v25 = vsel %vm195_vm0, %v200_v13, %v190_v20  ;;  %v3748_v26 = vsel %vm195_vm0, %v240_v14, %v184_v19  ;;  %v209_v6 = vrot.slane %v179_v3, 7  ;;  %v177_v10 = vld [vmem:[#allocation7 + $0x8] sm:$0x1]  ;;  %v180_v13 = vld [vmem:[#allocation7 + $0x2] sm:$0x1]  ;;  %s3561_s1 = smov 32  }
  0x34   :  { %v2972_v36 = vpack.i.bf16 %v3748_v26, %v3745_v25  ;;  %v222_v7 = vrot.slane %v181_v4, 7  ;;  %v176_v20 = vld [vmem:[#allocation7] sm:$0x1]  ;;  %vm284_vm2 = vcmask 1041408   ;;  %vm286_vm3 = vcmask 1043456   ;;  %s4632_s21 = sld [smem:[#allocation3 + $0x5]] }
  0x35   :  { %v323_v5 = vld [vmem:[%s4882_s25 + $0xf0] sm:$0xff]  ;;  %v324_v8 = vld [vmem:[%s4882_s25 + $0xf8] sm:$0xff]  ;;  %v321_v11 = vld [vmem:[%s4882_s25 + $0xe0] sm:$0xff]  ;;  %2968 = vrot.lane.b32.xlu0 %v2967_v18, %s3558_s5  ;;  %vm288_vm4 = vcmask 1045504   ;;  %s4645_s10 = sld [smem:[#allocation3]] }
  0x36   :  { %331 = vmatpush.msra.mxu0 %v323_v5  ;;  %354 = vmatpush.msra.mxu1 %v324_v8  ;;  %v322_v15 = vld [vmem:[%s4882_s25 + $0xe8] sm:$0xff]  ;;  %v319_v16 = vld [vmem:[%s4882_s25 + $0xd0] sm:$0xff]  ;;  %v320_v17 = vld [vmem:[%s4882_s25 + $0xd8] sm:$0xff]  ;;  %v3958_v19 = vsel %vm195_vm0, %v222_v7, %v180_v13  ;;  %s4647_s22 = sld [smem:[#allocation3 + $0x3]] }
  0x37   :  { %v317_v21 = vld [vmem:[%s4882_s25 + $0xc0] sm:$0xff]  ;;  %v318_v22 = vld [vmem:[%s4882_s25 + $0xc8] sm:$0xff]  ;;  %v315_v23 = vld [vmem:[%s4882_s25 + $0xb0] sm:$0xff]  ;;  %s4652_s24 = sld [smem:[#allocation3 + $0x8]] }
  0x38   :  { %332 = vmatpush.msra.mxu0 %v321_v11  ;;  %355 = vmatpush.msra.mxu1 %v322_v15  ;;  %v3742_v24 = vld [vmem:[%s4883_s28 + $0x70] sm:$0xff]  ;;  %v316_v27 = vld [vmem:[%s4882_s25 + $0xb8] sm:$0xff]  ;;  %v313_v28 = vld [vmem:[%s4882_s25 + $0xa0] sm:$0xff]  ;;  %s4661_s27 = sld [smem:[#allocation3 + $0xb]] }
  0x39   :  { %404 = vmatpush.msra.mxu2 %v3742_v24  ;;  %v3760_v29 = vld [vmem:[%s4883_s28 + $0x78] sm:$0xff]  ;;  %v314_v30 = vld [vmem:[%s4882_s25 + $0xa8] sm:$0xff]  ;;  %v3769_v31 = vld [vmem:[%s4883_s28 + $0x60] sm:$0xff] }
  0x3a   :  { %333 = vmatpush.msra.mxu0 %v319_v16  ;;  %356 = vmatpush.msra.mxu1 %v320_v17  ;;  %v3774_v32 = vld [vmem:[%s4883_s28 + $0x68] sm:$0xff]  ;;  %v311_v33 = vld [vmem:[%s4882_s25 + $0x90] sm:$0xff]  ;;  %v3788_v35 = vld [vmem:[%s4883_s28 + $0x58] sm:$0xff]  ;;  %v194_v17 = vrot.slane %v177_v10, 7  ;;  %s2931_s13 = sshll.u32 %s4632_s21, 1 }
  0x3b   :  { %424 = vmatpush.msra.mxu3 %v3760_v29  ;;  %405 = vmatpush.msra.mxu2 %v3769_v31  ;;  %v3783_v34 = vld [vmem:[%s4883_s28 + $0x50] sm:$0xff]  ;;  %v312_v37 = vld [vmem:[%s4882_s25 + $0x98] sm:$0xff]  ;;  %v309_v38 = vld [vmem:[%s4882_s25 + $0x80] sm:$0xff]  ;;  %s2921_s11 = sshll.u32 %s4645_s10, 1 }
  0x3c   :  { %334 = vmatpush.msra.mxu0 %v317_v21  ;;  %357 = vmatpush.msra.mxu1 %v318_v22  ;;  %v310_v39 = vld [vmem:[%s4882_s25 + $0x88] sm:$0xff]  ;;  %v307_v40 = vld [vmem:[%s4882_s25 + $0x70] sm:$0xff]  ;;  %v308_v41 = vld [vmem:[%s4882_s25 + $0x78] sm:$0xff]  ;;  %s2927_s15 = sshll.u32 %s4647_s22, 1  ;;  %s2490_s21 = scalar_lea.vmem [#allocation2], %s2921_s11 }
  0x3d   :  { %425 = vmatpush.msra.mxu3 %v3774_v32  ;;  %406 = vmatpush.msra.mxu2 %v3783_v34  ;;  %v305_v42 = vld [vmem:[%s4882_s25 + $0x60] sm:$0xff]  ;;  %v306_v43 = vld [vmem:[%s4882_s25 + $0x68] sm:$0xff]  ;;  %v303_v46 = vld [vmem:[%s4882_s25 + $0x50] sm:$0xff]  ;;  %s2937_s26 = sshll.u32 %s4652_s24, 1  ;;  %s2928_s22 = sld [smem:[#allocation3 + $0x4]] }
  0x3e   :  { %335 = vmatpush.msra.mxu0 %v315_v23  ;;  %358 = vmatpush.msra.mxu1 %v316_v27  ;;  %v3820_v44 = vld [vmem:[%s4883_s28 + $0x40] sm:$0xff]  ;;  %v3825_v45 = vld [vmem:[%s4883_s28 + $0x48] sm:$0xff]  ;;  %v304_v47 = vld [vmem:[%s4882_s25 + $0x58] sm:$0xff]  ;;  %s2922_s24 = sld [smem:[#allocation3 + $0x1]] }
  0x3f   :  { %426 = vmatpush.msra.mxu3 %v3788_v35  ;;  %2973 = vrot.lane.b32.xlu0 %v2972_v36, %s3558_s5  ;;  %v3837_v48 = vld [vmem:[%s4883_s28 + $0x30] sm:$0xff]  ;;  %v3843_v49 = vld [vmem:[%s4883_s28 + $0x38] sm:$0xff]  ;;  %v301_v50 = vld [vmem:[%s4882_s25 + $0x40] sm:$0xff] }
  0x40   :  { %336 = vmatpush.msra.mxu0 %v313_v28  ;;  %359 = vmatpush.msra.mxu1 %v314_v30  ;;  %v302_v51 = vld [vmem:[%s4882_s25 + $0x48] sm:$0xff]  ;;  %v3855_v52 = vld [vmem:[%s4883_s28 + $0x20] sm:$0xff]  ;;  %v299_v54 = vld [vmem:[%s4882_s25 + $0x30] sm:$0xff]  ;;  %v3968_v28 = vsel %vm195_vm0, %v194_v17, %v176_v20 }
  0x41   :  { %407 = vmatpush.msra.mxu2 %v3820_v44  ;;  %427 = vmatpush.msra.mxu3 %v3825_v45  ;;  %v3860_v53 = vld [vmem:[%s4883_s28 + $0x28] sm:$0xff]  ;;  %v300_v55 = vld [vmem:[%s4882_s25 + $0x38] sm:$0xff]  ;;  %v3872_v56 = vld [vmem:[%s4883_s28 + $0x10] sm:$0xff] }
  0x42   :  { %337 = vmatpush.msra.mxu0 %v311_v33  ;;  %360 = vmatpush.msra.mxu1 %v312_v37  ;;  %v3878_v57 = vld [vmem:[%s4883_s28 + $0x18] sm:$0xff]  ;;  %v297_v58 = vld [vmem:[%s4882_s25 + $0x20] sm:$0xff]  ;;  %v298_v59 = vld [vmem:[%s4882_s25 + $0x28] sm:$0xff] }
  0x43   :  { %408 = vmatpush.msra.mxu2 %v3837_v48  ;;  %428 = vmatpush.msra.mxu3 %v3843_v49  ;;  %v3892_v60 = vld [vmem:[%s4883_s28] sm:$0xff]  ;;  %v3897_v61 = vld [vmem:[%s4883_s28 + $0x8] sm:$0xff]  ;;  %v295_v62 = vld [vmem:[%s4882_s25 + $0x10] sm:$0xff]  ;;  %s2525_s28 = scalar_lea.vmem [#allocation2], %s2931_s13  ;;  %s4775_s13 = sld [smem:[#allocation3 + $0x7]] }
  0x44   :  { %338 = vmatpush.msra.mxu0 %v309_v38  ;;  %361 = vmatpush.msra.mxu1 %v310_v39  ;;  %v296_v63 = vld [vmem:[%s4882_s25 + $0x18] sm:$0xff]  ;;  %v293_v1 = vld [vmem:[%s4882_s25] sm:$0xff]  ;;  %v294_v2 = vld [vmem:[%s4882_s25 + $0x8] sm:$0xff]  ;;  %s2923_s11 = sshll.u32 %s2922_s24, 1 }
  0x45   :  { %409 = vmatpush.msra.mxu2 %v3855_v52  ;;  %429 = vmatpush.msra.mxu3 %v3860_v53  ;;  %v178_v8 = vld [vmem:[#allocation7 + $0x1] sm:$0x1]  ;;  %v183_v11 = vld [vmem:[#allocation7 + $0xb] sm:$0x1]  ;;  %v182_v21 = vld [vmem:[#allocation7 + $0x3] sm:$0x1] }
  0x46   :  { %339 = vmatpush.msra.mxu0 %v307_v40  ;;  %362 = vmatpush.msra.mxu1 %v308_v41  ;;  %v3954_v16 = vsel %vm195_vm0, %v209_v6, %v178_v8  ;;  %v235_v18 = vrot.slane %v183_v11, 7 }
  0x47   :  { %410 = vmatpush.msra.mxu2 %v3872_v56  ;;  %430 = vmatpush.msra.mxu3 %v3878_v57 }
  0x48   :  { %340 = vmatpush.msra.mxu0 %v305_v42  ;;  %363 = vmatpush.msra.mxu1 %v306_v43  ;;  %v3971_v30 = vsel %vm195_vm0, %v235_v18, %v182_v21 }
  0x49   :  { %411 = vmatpush.msra.mxu2 %v3892_v60  ;;  %431 = vmatpush.msra.mxu3 %v3897_v61 }
  0x4a   :  { %341 = vmatpush.msra.mxu0 %v303_v46  ;;  %364 = vmatpush.msra.mxu1 %v304_v47  ;;  %v4005_v47 = vld [vmem:[%s4853_s4] sm:$0x3]  ;;  %s2943_s4 = sshll.u32 %s4661_s27, 1 }
  0x4b   :  { %412 = vmatmul.f32.vlgmr.msra.gmra.mxu2 %v3559_v0  ;;  %432 = vmatmul.f32.vlgmr.msra.gmra.mxu3 %v3559_v0 }
  0x4c   :  { %342 = vmatpush.msra.mxu0 %v301_v50  ;;  %365 = vmatpush.msra.mxu1 %v302_v51  ;;  %v327_v50 = vperm.slane %v4005_v47, 0 }
  0x4d   :  { %499 = vmatpush.msrb.mxu2 %v3742_v24  ;;  %519 = vmatpush.msrb.mxu3 %v3760_v29 }
  0x4e   :  { %343 = vmatpush.msra.mxu0 %v299_v54  ;;  %366 = vmatpush.msra.mxu1 %v300_v55 }
  0x4f   :  { %500 = vmatpush.msrb.mxu2 %v3769_v31  ;;  %520 = vmatpush.msrb.mxu3 %v3774_v32 }
  0x50   :  { %344 = vmatpush.msra.mxu0 %v297_v58  ;;  %367 = vmatpush.msra.mxu1 %v298_v59 }
  0x51   :  { %501 = vmatpush.msrb.mxu2 %v3783_v34  ;;  %521 = vmatpush.msrb.mxu3 %v3788_v35 }
  0x52   :  { %345 = vmatpush.msra.mxu0 %v295_v62  ;;  %368 = vmatpush.msra.mxu1 %v296_v63  ;;  %v328_v63 = vperm.slane %v4005_v47, 1 }
  0x53   :  { %502 = vmatpush.msrb.mxu2 %v3820_v44  ;;  %522 = vmatpush.msrb.mxu3 %v3825_v45 }
  0x54   :  { %346 = vmatpush.msra.mxu0 %v293_v1  ;;  %369 = vmatpush.msra.mxu1 %v294_v2 }
  0x55   :  { %503 = vmatpush.msrb.mxu2 %v3837_v48  ;;  %523 = vmatpush.msrb.mxu3 %v3843_v49 }
  0x56   :  { %604 = vmatpush.msrb.mxu0 %v3742_v24  ;;  %624 = vmatpush.msrb.mxu1 %v3760_v29 }
  0x57   :  { %504 = vmatpush.msrb.mxu2 %v3855_v52  ;;  %524 = vmatpush.msrb.mxu3 %v3860_v53 }
  0x58   :  { %605 = vmatpush.msrb.mxu0 %v3769_v31  ;;  %625 = vmatpush.msrb.mxu1 %v3774_v32 }
  0x59   :  { %505 = vmatpush.msrb.mxu2 %v3872_v56  ;;  %525 = vmatpush.msrb.mxu3 %v3878_v57 }
  0x5a   :  { %606 = vmatpush.msrb.mxu0 %v3783_v34  ;;  %626 = vmatpush.msrb.mxu1 %v3788_v35 }
  0x5b   :  { %506 = vmatpush.msrb.mxu2 %v3892_v60  ;;  %526 = vmatpush.msrb.mxu3 %v3897_v61 }
  0x5c   :  { %607 = vmatpush.msrb.mxu0 %v3820_v44  ;;  %627 = vmatpush.msrb.mxu1 %v3825_v45 }
  0x5d   :  { %709 = vmatpush.msra.mxu2 %v3742_v24  ;;  %729 = vmatpush.msra.mxu3 %v3760_v29 }
  0x5e   :  { %608 = vmatpush.msrb.mxu0 %v3837_v48  ;;  %628 = vmatpush.msrb.mxu1 %v3843_v49 }
  0x5f   :  { %710 = vmatpush.msra.mxu2 %v3769_v31  ;;  %730 = vmatpush.msra.mxu3 %v3774_v32 }
  0x60   :  { %609 = vmatpush.msrb.mxu0 %v3855_v52  ;;  %629 = vmatpush.msrb.mxu1 %v3860_v53 }
  0x61   :  { %711 = vmatpush.msra.mxu2 %v3783_v34  ;;  %731 = vmatpush.msra.mxu3 %v3788_v35 }
  0x62   :  { %610 = vmatpush.msrb.mxu0 %v3872_v56  ;;  %630 = vmatpush.msrb.mxu1 %v3878_v57 }
  0x63   :  { %712 = vmatpush.msra.mxu2 %v3820_v44  ;;  %732 = vmatpush.msra.mxu3 %v3825_v45 }
  0x64   :  { %611 = vmatpush.msrb.mxu0 %v3892_v60  ;;  %631 = vmatpush.msrb.mxu1 %v3897_v61 }
  0x65   :  { %713 = vmatpush.msra.mxu2 %v3837_v48  ;;  %733 = vmatpush.msra.mxu3 %v3843_v49 }
  0x67   :  { %714 = vmatpush.msra.mxu2 %v3855_v52  ;;  %734 = vmatpush.msra.mxu3 %v3860_v53 }
  0x69   :  { %715 = vmatpush.msra.mxu2 %v3872_v56  ;;  %735 = vmatpush.msra.mxu3 %v3878_v57 }
  0x6b   :  { %716 = vmatpush.msra.mxu2 %v3892_v60  ;;  %736 = vmatpush.msra.mxu3 %v3897_v61 }
  0xa7   :  { %v2969_v5 = vpop.permute.xlu0 %2968 }
  0xa8   :  { %v2970_v14 = vunpack.i.l.bf16 %v2969_v5  ;;  %v2971_v15 = vunpack.i.h.bf16 %v2969_v5 }
  0xaa   :  { %v219_v22 = vsel %vm205_vm1, %v3954_v16, %v2970_v14  ;;  %v232_v23 = vsel %vm205_vm1, %v3958_v19, %v2971_v15 }
  0xab   :  { %v267_v37 = vrot.slane %v219_v22, 6  ;;  %v270_v38 = vrot.slane %v232_v23, 4 }
  0xb1   :  { %v2974_v27 = vpop.permute.xlu0 %2973 }
  0xb2   :  { %v2976_v33 = vunpack.i.h.bf16 %v2974_v27  ;;  %v2975_v36 = vunpack.i.l.bf16 %v2974_v27 }
  0xb4   :  { %v206_v39 = vsel %vm205_vm1, %v3968_v28, %v2975_v36  ;;  %v245_v40 = vsel %vm205_vm1, %v3971_v30, %v2976_v33 }
  0xb5   :  { %v273_v41 = vrot.slane %v245_v40, 2  ;;  %v285_v42 = vsel %vm284_vm2, %v206_v39, %v267_v37 }
  0xb6   :  { %v287_v43 = vsel %vm286_vm3, %v285_v42, %v270_v38 }
  0xb7   :  { %v289_v46 = vsel %vm288_vm4, %v287_v43, %v273_v41 }
  0xb8   :  { %347 = vmatmul.f32.vlgmr.msra.gmra.mxu0 %v289_v46  ;;  %370 = vmatmul.f32.vlgmr.msra.gmra.mxu1 %v289_v46 }
  0xb9   :  { %814 = vmatpush.msra.mxu0 %v3742_v24  ;;  %834 = vmatpush.msra.mxu1 %v3760_v29 }
  0xbb   :  { %815 = vmatpush.msra.mxu0 %v3769_v31  ;;  %835 = vmatpush.msra.mxu1 %v3774_v32 }
  0xbd   :  { %816 = vmatpush.msra.mxu0 %v3783_v34  ;;  %836 = vmatpush.msra.mxu1 %v3788_v35 }
  0xbf   :  { %817 = vmatpush.msra.mxu0 %v3820_v44  ;;  %837 = vmatpush.msra.mxu1 %v3825_v45 }
  0xc1   :  { %818 = vmatpush.msra.mxu0 %v3837_v48  ;;  %838 = vmatpush.msra.mxu1 %v3843_v49 }
  0xc3   :  { %819 = vmatpush.msra.mxu0 %v3855_v52  ;;  %839 = vmatpush.msra.mxu1 %v3860_v53 }
  0xc5   :  { %820 = vmatpush.msra.mxu0 %v3872_v56  ;;  %840 = vmatpush.msra.mxu1 %v3878_v57 }
  0xc7   :  { %821 = vmatpush.msra.mxu0 %v3892_v60  ;;  %841 = vmatpush.msra.mxu1 %v3897_v61 }
  0xce   :  { %v413_v54 = vpop.f32.mrf.mxu2  ;;  %v433_v4 = vpop.f32.mrf.mxu3 }
 0x135   :  { %v348_v51 = vpop.f32.mrf.mxu0  ;;  %v371_v2 = vpop.f32.mrf.mxu1 }
 0x136   :  { %v4010_v55 = vadd.f32 %v348_v51, %v327_v50  ;;  %v4016_v3 = vadd.f32 %v371_v2, %v328_v63 }
 0x138   :  { %v436_v58 = vadd.f32 %v413_v54, %v4010_v55  ;;  %v437_v6 = vadd.f32 %v433_v4, %v4016_v3 }
 0x13a   :  { %v2859_v59 = vmul.f32 -1.442695, %v436_v58  ;;  %v2860_v22 = vmul.f32 -1.442695, %v437_v6 }
 0x13c   :  { %3056 = vpow2.f32 %v2859_v59 }
 0x142   :  { %v3057_v62 = vpop.eup %3056 }
 0x143   :  { %v444_v1 = vadd.f32 1.0, %v3057_v62 }
 0x145   :  { %3058 = vrcp.f32 %v444_v1  ;;  %v457_v10 = vand.u32 2147483648, %v444_v1  ;;  %v455_v13 = vand.u32 2147483647, %v444_v1  ;;  %vm451_vm6 = vweird.f32 %v444_v1 }
 0x146   :  { %3060 = vtanh.f32 %v437_v6  ;;  %v2982_v6 = vpack.i.bf16 %v3968_v28, %v3971_v30 }
 0x147   :  { %v458_v15 = vor.u32 1.1754944e-38, %v457_v10  ;;  %vm456_vm8 = vcmp.eq.f32.partialorder %v455_v13, 8.507059e+37  ;;  %3062 = vpow2.f32 %v2860_v22 }
 0x148   :  { %2983 = vrot.lane.b32.xlu0 %v2982_v6, %s3558_s5 }
 0x14b   :  { %v3059_v5 = vpop.eup %3058 }
 0x14c   :  { %v447_v7 = vmul.f32 %v3059_v5, %v444_v1  ;;  %vm452_vm5 = vweird.f32 %v3059_v5  ;;  %v3061_v18 = vpop.eup %3060 }
 0x14d   :  { %vm453_vm7 = vmor %vm451_vm6, %vm452_vm5  ;;  %v3063_v23 = vpop.eup %3062 }
 0x14e   :  { %v448_v8 = vsub.f32 1.0, %v447_v7  ;;  %v445_v27 = vadd.f32 1.0, %v3063_v23 }
 0x150   :  { %v449_v11 = vmul.f32 %v3059_v5, %v448_v8  ;;  %3064 = vrcp.f32 %v445_v27  ;;  %v472_v43 = vand.u32 2147483648, %v445_v27  ;;  %vm466_vm10 = vweird.f32 %v445_v27 }
 0x151   :  { %v470_v46 = vand.u32 2147483647, %v445_v27 }
 0x152   :  { %v450_v14 = vadd.f32 %v3059_v5, %v449_v11  ;;  %v473_v54 = vor.u32 1.1754944e-38, %v472_v43  ;;  %v2977_v43 = vpack.i.bf16 %v3954_v16, %v3958_v19 }
 0x153   :  { %vm471_vm12 = vcmp.eq.f32.partialorder %v470_v46, 8.507059e+37 }
 0x154   :  { %v454_v17 = vsel %vm453_vm7, %v3059_v5, %v450_v14 }
 0x155   :  { %v459_v20 = vsel %vm456_vm8, %v458_v15, %v454_v17 }
 0x156   :  { %v478_v21 = vmul.f32 %v3061_v18, %v459_v20  ;;  %v3065_v33 = vpop.eup %3064  ;;  %v477_v39 = vmul.f32 0.0, %v459_v20 }
 0x157   :  { %v462_v36 = vmul.f32 %v3065_v33, %v445_v27  ;;  %vm467_vm9 = vweird.f32 %v3065_v33 }
 0x158   :  { %480 = vrot.lane.b32.xlu1 %v478_v21, %s3558_s5  ;;  %vm468_vm11 = vmor %vm466_vm10, %vm467_vm9 }
 0x159   :  { %v463_v37 = vsub.f32 1.0, %v462_v36 }
 0x15b   :  { %v464_v38 = vmul.f32 %v3065_v33, %v463_v37 }
 0x15d   :  { %v465_v42 = vadd.f32 %v3065_v33, %v464_v38 }
 0x15f   :  { %v469_v51 = vsel %vm468_vm11, %v3065_v33, %v465_v42 }
 0x160   :  { %v474_v59 = vsel %vm471_vm12, %v473_v54, %v469_v51 }
 0x1ca   :  { %v481_v40 = vpop.permute.xlu1 %480 }
 0x1cb   :  { %v4020_v41 = vadd.f32 %v481_v40, %v477_v39 }
 0x1cd   :  { %3066 = vtanh.f32 %v4020_v41  ;;  %v579_v23 = vrot.slane %v4020_v41, 6 }
 0x1d3   :  { %v3067_v58 = vpop.eup %3066 }
 0x1d4   :  { %v4023_v62 = vmul.f32 %v3067_v58, %v474_v59 }
 0x1d6   :  { %487 = vrot.lane.b32.xlu1 %v4023_v62, %s3558_s5 }
 0x248   :  { %v4027_v1 = vpop.permute.xlu1 %487 }
 0x249   :  { %2861 = vmatmul.msk.f32.vlgmr.msrb.gmra.mxu2 %vm205_vm1, %v4027_v1  ;;  %2862 = vmatmul.msk.f32.vlgmr.msrb.gmra.mxu3 %vm205_vm1, %v4027_v1 }
 0x24a   :  { %912 = vmatpush.msrb.mxu2 %v3742_v24  ;;  %932 = vmatpush.msrb.mxu3 %v3760_v29 }
 0x24c   :  { %913 = vmatpush.msrb.mxu2 %v3769_v31  ;;  %933 = vmatpush.msrb.mxu3 %v3774_v32 }
 0x24e   :  { %914 = vmatpush.msrb.mxu2 %v3783_v34  ;;  %934 = vmatpush.msrb.mxu3 %v3788_v35 }
 0x250   :  { %915 = vmatpush.msrb.mxu2 %v3820_v44  ;;  %935 = vmatpush.msrb.mxu3 %v3825_v45 }
 0x252   :  { %916 = vmatpush.msrb.mxu2 %v3837_v48  ;;  %936 = vmatpush.msrb.mxu3 %v3843_v49 }
 0x254   :  { %917 = vmatpush.msrb.mxu2 %v3855_v52  ;;  %937 = vmatpush.msrb.mxu3 %v3860_v53 }
 0x256   :  { %918 = vmatpush.msrb.mxu2 %v3872_v56  ;;  %938 = vmatpush.msrb.mxu3 %v3878_v57 }
 0x258   :  { %919 = vmatpush.msrb.mxu2 %v3892_v60  ;;  %939 = vmatpush.msrb.mxu3 %v3897_v61 }
 0x2cc   :  { %v508_v2 = vpop.f32.mrf.mxu2  ;;  %v528_v11 = vpop.f32.mrf.mxu3 }
 0x2cd   :  { %v533_v4 = vrot.slane %v508_v2, 6  ;;  %v534_v13 = vrot.slane %v528_v11, 6  ;;  %v2984_v11 = vpop.permute.xlu0 %2983 }
 0x2cf   :  { %v537_v5 = vadd.f32 %v533_v4, %v4010_v55  ;;  %v538_v15 = vadd.f32 %v534_v13, %v4016_v3  ;;  %v2986_v13 = vunpack.i.h.bf16 %v2984_v11 }
 0x2d1   :  { %v2863_v7 = vmul.f32 -1.442695, %v537_v5  ;;  %v2864_v39 = vmul.f32 -1.442695, %v538_v15 }
 0x2d3   :  { %3068 = vpow2.f32 %v2863_v7 }
 0x2d9   :  { %v3069_v8 = vpop.eup %3068 }
 0x2da   :  { %v545_v10 = vadd.f32 1.0, %v3069_v8 }
 0x2dc   :  { %3070 = vrcp.f32 %v545_v10  ;;  %v558_v20 = vand.u32 2147483648, %v545_v10  ;;  %v556_v22 = vand.u32 2147483647, %v545_v10  ;;  %vm552_vm14 = vweird.f32 %v545_v10 }
 0x2dd   :  { %3072 = vtanh.f32 %v538_v15 }
 0x2de   :  { %v559_v30 = vor.u32 1.1754944e-38, %v558_v20  ;;  %vm557_vm0 = vcmp.eq.f32.partialorder %v556_v22, 8.507059e+37  ;;  %3074 = vpow2.f32 %v2864_v39  ;;  %v265_v20 = vsel %vm205_vm1, %v3745_v25, %v2986_v13 }
 0x2e2   :  { %v3071_v14 = vpop.eup %3070 }
 0x2e3   :  { %v548_v17 = vmul.f32 %v3071_v14, %v545_v10  ;;  %vm553_vm13 = vweird.f32 %v3071_v14  ;;  %v3073_v33 = vpop.eup %3072 }
 0x2e4   :  { %vm554_vm15 = vmor %vm552_vm14, %vm553_vm13  ;;  %v3075_v40 = vpop.eup %3074 }
 0x2e5   :  { %v549_v18 = vsub.f32 1.0, %v548_v17  ;;  %v546_v42 = vadd.f32 1.0, %v3075_v40 }
 0x2e7   :  { %v550_v21 = vmul.f32 %v3071_v14, %v549_v18  ;;  %3076 = vrcp.f32 %v546_v42  ;;  %v573_v4 = vand.u32 2147483648, %v546_v42  ;;  %vm567_vm6 = vweird.f32 %v546_v42 }
 0x2e8   :  { %v571_v5 = vand.u32 2147483647, %v546_v42 }
 0x2e9   :  { %v551_v28 = vadd.f32 %v3071_v14, %v550_v21  ;;  %v574_v7 = vor.u32 1.1754944e-38, %v573_v4 }
 0x2ea   :  { %vm572_vm8 = vcmp.eq.f32.partialorder %v571_v5, 8.507059e+37 }
 0x2eb   :  { %v555_v27 = vsel %vm554_vm15, %v3071_v14, %v551_v28  ;;  %v2985_v14 = vunpack.i.l.bf16 %v2984_v11 }
 0x2ec   :  { %v560_v36 = vsel %vm557_vm0, %v559_v30, %v555_v27  ;;  %v282_v27 = vrot.slane %v265_v20, 2 }
 0x2ed   :  { %v582_v37 = vmul.f32 %v3073_v33, %v560_v36  ;;  %v581_v38 = vmul.f32 %v579_v23, %v560_v36  ;;  %v3077_v46 = vpop.eup %3076  ;;  %v250_v28 = vsel %vm205_vm1, %v3748_v26, %v2985_v14 }
 0x2ee   :  { %v563_v41 = vmul.f32 %v3077_v46, %v546_v42  ;;  %vm568_vm5 = vweird.f32 %v3077_v46 }
 0x2ef   :  { %584 = vrot.lane.b32.xlu2 %v582_v37, %s3558_s5  ;;  %vm569_vm7 = vmor %vm567_vm6, %vm568_vm5 }
 0x2f0   :  { %v564_v51 = vsub.f32 1.0, %v563_v41 }
 0x2f2   :  { %v565_v54 = vmul.f32 %v3077_v46, %v564_v51 }
 0x2f4   :  { %v566_v2 = vadd.f32 %v3077_v46, %v565_v54 }
 0x2f6   :  { %v570_v6 = vsel %vm569_vm7, %v3077_v46, %v566_v2 }
 0x2f7   :  { %2978 = vrot.lane.b32.xlu2 %v2977_v43, %s3558_s5  ;;  %v575_v19 = vsel %vm572_vm8, %v574_v7, %v570_v6 }
 0x349   :  { %v585_v58 = vpop.permute.xlu2 %584 }
 0x34a   :  { %v4059_v59 = vadd.f32 %v585_v58, %v581_v38 }
 0x34c   :  { %3078 = vtanh.f32 %v4059_v59 }
 0x351   :  { %v2979_v15 = vpop.permute.xlu2 %2978 }
 0x352   :  { %v3079_v16 = vpop.eup %3078  ;;  %v2981_v17 = vunpack.i.h.bf16 %v2979_v15  ;;  %v2980_v18 = vunpack.i.l.bf16 %v2979_v15 }
 0x353   :  { %v4062_v8 = vmul.f32 %v3079_v16, %v575_v19  ;;  %v684_v19 = vrot.slane %v4059_v59, 6 }
 0x354   :  { %v260_v21 = vsel %vm205_vm1, %v3716_v12, %v2981_v17  ;;  %v255_v22 = vsel %vm205_vm1, %v3710_v9, %v2980_v18 }
 0x355   :  { %v591_v10 = vrot.slane %v4062_v8, 2  ;;  %v279_v30 = vrot.slane %v260_v21, 4  ;;  %v276_v23 = vrot.slane %v255_v22, 6 }
 0x357   :  { %592 = vrot.lane.b32.xlu1 %v591_v10, %s3558_s5  ;;  %v290_v33 = vsel %vm284_vm2, %v250_v28, %v276_v23 }
 0x358   :  { %v291_v36 = vsel %vm286_vm3, %v290_v33, %v279_v30 }
 0x359   :  { %v292_v37 = vsel %vm288_vm4, %v291_v36, %v282_v27 }
 0x35a   :  { %350 = vmatmul.f32.gmra.mxu0 %v292_v37  ;;  %373 = vmatmul.f32.gmra.mxu1 %v292_v37 }
 0x3c9   :  { %v593_v25 = vpop.permute.xlu1 %592 }
 0x3ca   :  { %2865 = vmatmul.msk.f32.vlgmr.msrb.gmra.mxu0 %vm205_vm1, %v593_v25  ;;  %2866 = vmatmul.msk.f32.vlgmr.msrb.gmra.mxu1 %vm205_vm1, %v593_v25 }
 0x3cb   :  { %1017 = vmatpush.msrb.mxu0 %v3742_v24  ;;  %1037 = vmatpush.msrb.mxu1 %v3760_v29 }
 0x3cd   :  { %1018 = vmatpush.msrb.mxu0 %v3769_v31  ;;  %1038 = vmatpush.msrb.mxu1 %v3774_v32 }
 0x3cf   :  { %1019 = vmatpush.msrb.mxu0 %v3783_v34  ;;  %1039 = vmatpush.msrb.mxu1 %v3788_v35 }
 0x3d1   :  { %1020 = vmatpush.msrb.mxu0 %v3820_v44  ;;  %1040 = vmatpush.msrb.mxu1 %v3825_v45 }
 0x3d3   :  { %1021 = vmatpush.msrb.mxu0 %v3837_v48  ;;  %1041 = vmatpush.msrb.mxu1 %v3843_v49 }
 0x3d5   :  { %1022 = vmatpush.msrb.mxu0 %v3855_v52  ;;  %1042 = vmatpush.msrb.mxu1 %v3860_v53 }
 0x3d7   :  { %1023 = vmatpush.msrb.mxu0 %v3872_v56  ;;  %1043 = vmatpush.msrb.mxu1 %v3878_v57  ;;  %v4095_v9 = vpop.f32.mrf.mxu0  ;;  %v4098_v39 = vpop.f32.mrf.mxu1 }
 0x3d9   :  { %1024 = vmatpush.msrb.mxu0 %v3892_v60  ;;  %1044 = vmatpush.msrb.mxu1 %v3897_v61 }
 0x447   :  { %v613_v12 = vpop.f32.mrf.mxu0  ;;  %v633_v46 = vpop.f32.mrf.mxu1 }
 0x448   :  { %v638_v26 = vrot.slane %v613_v12, 4  ;;  %v639_v41 = vrot.slane %v633_v46, 4 }
 0x44a   :  { %v642_v38 = vadd.f32 %v638_v26, %v4010_v55  ;;  %v643_v54 = vadd.f32 %v639_v41, %v4016_v3 }
 0x44c   :  { %v2867_v40 = vmul.f32 -1.442695, %v642_v38  ;;  %v2868_v17 = vmul.f32 -1.442695, %v643_v54 }
 0x44e   :  { %3080 = vpow2.f32 %v2867_v40 }
 0x454   :  { %v3081_v42 = vpop.eup %3080 }
 0x455   :  { %v650_v43 = vadd.f32 1.0, %v3081_v42 }
 0x457   :  { %3082 = vrcp.f32 %v650_v43  ;;  %v663_v4 = vand.u32 2147483648, %v650_v43  ;;  %v661_v6 = vand.u32 2147483647, %v650_v43  ;;  %vm657_vm10 = vweird.f32 %v650_v43 }
 0x458   :  { %3084 = vtanh.f32 %v643_v54 }
 0x459   :  { %v664_v16 = vor.u32 1.1754944e-38, %v663_v4  ;;  %vm662_vm12 = vcmp.eq.f32.partialorder %v661_v6, 8.507059e+37  ;;  %3086 = vpow2.f32 %v2868_v17 }
 0x45d   :  { %v3083_v51 = vpop.eup %3082 }
 0x45e   :  { %v653_v58 = vmul.f32 %v3083_v51, %v650_v43  ;;  %vm658_vm9 = vweird.f32 %v3083_v51  ;;  %v3085_v11 = vpop.eup %3084 }
 0x45f   :  { %vm659_vm11 = vmor %vm657_vm10, %vm658_vm9  ;;  %v3087_v18 = vpop.eup %3086 }
 0x460   :  { %v654_v2 = vsub.f32 1.0, %v653_v58  ;;  %v651_v20 = vadd.f32 1.0, %v3087_v18 }
 0x462   :  { %v655_v5 = vmul.f32 %v3083_v51, %v654_v2  ;;  %3088 = vrcp.f32 %v651_v20  ;;  %v678_v33 = vand.u32 2147483648, %v651_v20  ;;  %vm672_vm14 = vweird.f32 %v651_v20 }
 0x463   :  { %v676_v36 = vand.u32 2147483647, %v651_v20 }
 0x464   :  { %v656_v7 = vadd.f32 %v3083_v51, %v655_v5  ;;  %v679_v25 = vor.u32 1.1754944e-38, %v678_v33 }
 0x465   :  { %vm677_vm0 = vcmp.eq.f32.partialorder %v676_v36, 8.507059e+37 }
 0x466   :  { %v660_v10 = vsel %vm659_vm11, %v3083_v51, %v656_v7 }
 0x467   :  { %v665_v13 = vsel %vm662_vm12, %v664_v16, %v660_v10 }
 0x468   :  { %v687_v14 = vmul.f32 %v3085_v11, %v665_v13  ;;  %v686_v15 = vmul.f32 %v684_v19, %v665_v13  ;;  %v3089_v21 = vpop.eup %3088 }
 0x469   :  { %v668_v22 = vmul.f32 %v3089_v21, %v651_v20  ;;  %vm673_vm13 = vweird.f32 %v3089_v21 }
 0x46a   :  { %689 = vrot.lane.b32.xlu2 %v687_v14, %s3558_s5  ;;  %vm674_vm15 = vmor %vm672_vm14, %vm673_vm13 }
 0x46b   :  { %v669_v28 = vsub.f32 1.0, %v668_v22 }
 0x46d   :  { %v670_v30 = vmul.f32 %v3089_v21, %v669_v28 }
 0x46f   :  { %v671_v59 = vadd.f32 %v3089_v21, %v670_v30  ;;  %v4145_v30 = vadd.f32 %v4095_v9, %v327_v50 }
 0x471   :  { %v675_v37 = vsel %vm674_vm15, %v3089_v21, %v671_v59 }
 0x472   :  { %v680_v26 = vsel %vm677_vm0, %v679_v25, %v675_v37  ;;  %v4151_v25 = vadd.f32 %v4098_v39, %v328_v63 }
 0x4c4   :  { %v690_v23 = vpop.permute.xlu2 %689 }
 0x4c5   :  { %v4103_v27 = vadd.f32 %v690_v23, %v686_v15 }
 0x4c7   :  { %3090 = vtanh.f32 %v4103_v27  ;;  %v789_v43 = vrot.slane %v4103_v27, 6 }
 0x4cd   :  { %v3091_v12 = vpop.eup %3090 }
 0x4ce   :  { %v4106_v38 = vmul.f32 %v3091_v12, %v680_v26 }
 0x4d0   :  { %v696_v40 = vrot.slane %v4106_v38, 4 }
 0x4d2   :  { %697 = vrot.lane.b32.xlu0 %v696_v40, %s3558_s5 }
 0x544   :  { %v698_v42 = vpop.permute.xlu0 %697 }
 0x545   :  { %2869 = vmatmul.msk.f32.vlgmr.msra.gmra.mxu2 %vm205_vm1, %v698_v42  ;;  %2870 = vmatmul.msk.f32.vlgmr.msra.gmra.mxu3 %vm205_vm1, %v698_v42 }
 0x546   :  { %1122 = vmatpush.msra.mxu2 %v3742_v24  ;;  %1142 = vmatpush.msra.mxu3 %v3760_v29 }
 0x548   :  { %1123 = vmatpush.msra.mxu2 %v3769_v31  ;;  %1143 = vmatpush.msra.mxu3 %v3774_v32 }
 0x54a   :  { %1124 = vmatpush.msra.mxu2 %v3783_v34  ;;  %1144 = vmatpush.msra.mxu3 %v3788_v35 }
 0x54c   :  { %1125 = vmatpush.msra.mxu2 %v3820_v44  ;;  %1145 = vmatpush.msra.mxu3 %v3825_v45 }
 0x54e   :  { %1126 = vmatpush.msra.mxu2 %v3837_v48  ;;  %1146 = vmatpush.msra.mxu3 %v3843_v49 }
 0x550   :  { %1127 = vmatpush.msra.mxu2 %v3855_v52  ;;  %1147 = vmatpush.msra.mxu3 %v3860_v53 }
 0x552   :  { %1128 = vmatpush.msra.mxu2 %v3872_v56  ;;  %1148 = vmatpush.msra.mxu3 %v3878_v57 }
 0x554   :  { %1129 = vmatpush.msra.mxu2 %v3892_v60  ;;  %1149 = vmatpush.msra.mxu3 %v3897_v61 }
 0x5c8   :  { %v718_v24 = vpop.f32.mrf.mxu2  ;;  %v738_v44 = vpop.f32.mrf.mxu3 }
 0x5c9   :  { %v743_v29 = vrot.slane %v718_v24, 2  ;;  %v744_v45 = vrot.slane %v738_v44, 2 }
 0x5cb   :  { %v747_v31 = vadd.f32 %v743_v29, %v4010_v55  ;;  %v748_v49 = vadd.f32 %v744_v45, %v4016_v3 }
 0x5cd   :  { %v2871_v32 = vmul.f32 -1.442695, %v747_v31  ;;  %v2872_v3 = vmul.f32 -1.442695, %v748_v49 }
 0x5cf   :  { %3092 = vpow2.f32 %v2871_v32 }
 0x5d5   :  { %v3093_v34 = vpop.eup %3092 }
 0x5d6   :  { %v755_v35 = vadd.f32 1.0, %v3093_v34 }
 0x5d8   :  { %3094 = vrcp.f32 %v755_v35  ;;  %v768_v56 = vand.u32 2147483648, %v755_v35  ;;  %v766_v60 = vand.u32 2147483647, %v755_v35  ;;  %vm762_vm6 = vweird.f32 %v755_v35 }
 0x5d9   :  { %3096 = vtanh.f32 %v748_v49 }
 0x5da   :  { %v769_v55 = vor.u32 1.1754944e-38, %v768_v56  ;;  %vm767_vm8 = vcmp.eq.f32.partialorder %v766_v60, 8.507059e+37  ;;  %3098 = vpow2.f32 %v2872_v3 }
 0x5de   :  { %v3095_v48 = vpop.eup %3094 }
 0x5df   :  { %v758_v52 = vmul.f32 %v3095_v48, %v755_v35  ;;  %vm763_vm5 = vweird.f32 %v3095_v48  ;;  %v3097_v41 = vpop.eup %3096 }
 0x5e0   :  { %vm764_vm7 = vmor %vm762_vm6, %vm763_vm5  ;;  %v3099_v2 = vpop.eup %3098 }
 0x5e1   :  { %v759_v53 = vsub.f32 1.0, %v758_v52  ;;  %v756_v4 = vadd.f32 1.0, %v3099_v2 }
 0x5e3   :  { %v760_v57 = vmul.f32 %v3095_v48, %v759_v53  ;;  %3100 = vrcp.f32 %v756_v4  ;;  %v783_v13 = vand.u32 2147483648, %v756_v4  ;;  %vm777_vm10 = vweird.f32 %v756_v4 }
 0x5e4   :  { %v781_v14 = vand.u32 2147483647, %v756_v4 }
 0x5e5   :  { %v761_v61 = vadd.f32 %v3095_v48, %v760_v57  ;;  %v784_v17 = vor.u32 1.1754944e-38, %v783_v13 }
 0x5e6   :  { %vm782_vm12 = vcmp.eq.f32.partialorder %v781_v14, 8.507059e+37 }
 0x5e7   :  { %v765_v46 = vsel %vm764_vm7, %v3095_v48, %v761_v61 }
 0x5e8   :  { %v770_v51 = vsel %vm767_vm8, %v769_v55, %v765_v46 }
 0x5e9   :  { %v792_v54 = vmul.f32 %v3097_v41, %v770_v51  ;;  %v791_v58 = vmul.f32 %v789_v43, %v770_v51  ;;  %v3101_v5 = vpop.eup %3100 }
 0x5ea   :  { %v773_v6 = vmul.f32 %v3101_v5, %v756_v4  ;;  %vm778_vm9 = vweird.f32 %v3101_v5 }
 0x5eb   :  { %794 = vrot.lane.b32.xlu1 %v792_v54, %s3558_s5  ;;  %vm779_vm11 = vmor %vm777_vm10, %vm778_vm9 }
 0x5ec   :  { %v774_v7 = vsub.f32 1.0, %v773_v6 }
 0x5ee   :  { %v775_v16 = vmul.f32 %v3101_v5, %v774_v7 }
 0x5f0   :  { %v776_v11 = vadd.f32 %v3101_v5, %v775_v16 }
 0x5f2   :  { %v780_v15 = vsel %vm779_vm11, %v3101_v5, %v776_v11 }
 0x5f3   :  { %v785_v20 = vsel %vm782_vm12, %v784_v17, %v780_v15 }
 0x65d   :  { %v795_v19 = vpop.permute.xlu1 %794 }
 0x65e   :  { %v797_v10 = vadd.f32 %v795_v19, %v791_v58 }
 0x660   :  { %3102 = vtanh.f32 %v797_v10  ;;  %v888_v32 = vrot.slane %v797_v10, 6 }
 0x666   :  { %v3103_v18 = vpop.eup %3102 }
 0x667   :  { %v4132_v21 = vmul.f32 %v3103_v18, %v785_v20 }
 0x669   :  { %v801_v22 = vrot.slane %v4132_v21, 6 }
 0x66b   :  { %802 = vrot.lane.b32.xlu2 %v801_v22, %s3558_s5 }
 0x6c5   :  { %v4136_v28 = vpop.permute.xlu2 %802 }
 0x6c6   :  { %2873 = vmatmul.msk.f32.vlgmr.msra.gmra.mxu0 %vm205_vm1, %v4136_v28  ;;  %2874 = vmatmul.msk.f32.vlgmr.msra.gmra.mxu1 %vm205_vm1, %v4136_v28 }
 0x743   :  { %v823_v23 = vpop.f32.mrf.mxu0  ;;  %v843_v37 = vpop.f32.mrf.mxu1 }
 0x744   :  { %v846_v27 = vadd.f32 %v823_v23, %v4145_v30  ;;  %v847_v26 = vadd.f32 %v843_v37, %v4151_v25 }
 0x746   :  { %v2875_v59 = vmul.f32 -1.442695, %v846_v27  ;;  %v2876_v44 = vmul.f32 -1.442695, %v847_v26 }
 0x748   :  { %3104 = vpow2.f32 %v2875_v59 }
 0x74e   :  { %v3105_v33 = vpop.eup %3104 }
 0x74f   :  { %v854_v36 = vadd.f32 1.0, %v3105_v33 }
 0x751   :  { %3106 = vrcp.f32 %v854_v36  ;;  %v867_v9 = vand.u32 2147483648, %v854_v36  ;;  %v865_v24 = vand.u32 2147483647, %v854_v36  ;;  %vm861_vm14 = vweird.f32 %v854_v36 }
 0x752   :  { %3108 = vtanh.f32 %v847_v26 }
 0x753   :  { %v868_v31 = vor.u32 1.1754944e-38, %v867_v9  ;;  %vm866_vm0 = vcmp.eq.f32.partialorder %v865_v24, 8.507059e+37  ;;  %3110 = vpow2.f32 %v2876_v44 }
 0x757   :  { %v3107_v12 = vpop.eup %3106 }
 0x758   :  { %v857_v40 = vmul.f32 %v3107_v12, %v854_v36  ;;  %vm862_vm13 = vweird.f32 %v3107_v12  ;;  %v3109_v47 = vpop.eup %3108 }
 0x759   :  { %vm863_vm15 = vmor %vm861_vm14, %vm862_vm13  ;;  %v3111_v45 = vpop.eup %3110 }
 0x75a   :  { %v858_v50 = vsub.f32 1.0, %v857_v40  ;;  %v855_v48 = vadd.f32 1.0, %v3111_v45 }
 0x75c   :  { %v859_v42 = vmul.f32 %v3107_v12, %v858_v50  ;;  %3112 = vrcp.f32 %v855_v48  ;;  %v882_v55 = vand.u32 2147483648, %v855_v48  ;;  %vm876_vm6 = vweird.f32 %v855_v48 }
 0x75d   :  { %v880_v43 = vand.u32 2147483647, %v855_v48 }
 0x75e   :  { %v860_v29 = vadd.f32 %v3107_v12, %v859_v42  ;;  %v883_v41 = vor.u32 1.1754944e-38, %v882_v55 }
 0x75f   :  { %vm881_vm8 = vcmp.eq.f32.partialorder %v880_v43, 8.507059e+37 }
 0x760   :  { %v864_v34 = vsel %vm863_vm15, %v3107_v12, %v860_v29 }
 0x761   :  { %v869_v63 = vsel %vm866_vm0, %v868_v31, %v864_v34 }
 0x762   :  { %v891_v39 = vmul.f32 %v3109_v47, %v869_v63  ;;  %v890_v35 = vmul.f32 %v888_v32, %v869_v63  ;;  %v3113_v49 = vpop.eup %3112 }
 0x763   :  { %v872_v52 = vmul.f32 %v3113_v49, %v855_v48  ;;  %vm877_vm5 = vweird.f32 %v3113_v49 }
 0x764   :  { %893 = vrot.lane.b32.xlu0 %v891_v39, %s3558_s5  ;;  %vm878_vm7 = vmor %vm876_vm6, %vm877_vm5 }
 0x765   :  { %v873_v53 = vsub.f32 1.0, %v872_v52 }
 0x767   :  { %v874_v56 = vmul.f32 %v3113_v49, %v873_v53 }
 0x769   :  { %v875_v61 = vadd.f32 %v3113_v49, %v874_v56 }
 0x76b   :  { %v879_v46 = vsel %vm878_vm7, %v3113_v49, %v875_v61  ;;  %v1267_v49 = vrot.slane %v4023_v62, 2 }
 0x76c   :  { %v884_v54 = vsel %vm881_vm8, %v883_v41, %v879_v46 }
 0x7d6   :  { %v894_v57 = vpop.permute.xlu0 %893 }
 0x7d7   :  { %v896_v60 = vadd.f32 %v894_v57, %v890_v35 }
 0x7d9   :  { %3114 = vtanh.f32 %v896_v60  ;;  %v992_v27 = vrot.slane %v896_v60, 6 }
 0x7df   :  { %v3115_v51 = vpop.eup %3114 }
 0x7e0   :  { %v4155_v58 = vmul.f32 %v3115_v51, %v884_v54 }
 0x7e2   :  { %900 = vrot.lane.b32.xlu1 %v4155_v58, %s3558_s5 }
 0x854   :  { %v4159_v3 = vpop.permute.xlu1 %900 }
 0x855   :  { %2877 = vmatmul.msk.f32.vlgmr.msrb.gmra.mxu2 %vm205_vm1, %v4159_v3  ;;  %2878 = vmatmul.msk.f32.vlgmr.msrb.gmra.mxu3 %vm205_vm1, %v4159_v3 }
 0x8d8   :  { %v921_v2 = vpop.f32.mrf.mxu2  ;;  %v941_v19 = vpop.f32.mrf.mxu3 }
 0x8d9   :  { %v946_v4 = vrot.slane %v921_v2, 6  ;;  %v947_v10 = vrot.slane %v941_v19, 6 }
 0x8db   :  { %v950_v5 = vadd.f32 %v946_v4, %v4145_v30  ;;  %v951_v13 = vadd.f32 %v947_v10, %v4151_v25 }
 0x8dd   :  { %v2879_v6 = vmul.f32 -1.442695, %v950_v5  ;;  %v2880_v26 = vmul.f32 -1.442695, %v951_v13 }
 0x8df   :  { %3116 = vpow2.f32 %v2879_v6 }
 0x8e5   :  { %v3117_v7 = vpop.eup %3116 }
 0x8e6   :  { %v958_v16 = vadd.f32 1.0, %v3117_v7 }
 0x8e8   :  { %3118 = vrcp.f32 %v958_v16  ;;  %v971_v17 = vand.u32 2147483648, %v958_v16  ;;  %v969_v20 = vand.u32 2147483647, %v958_v16  ;;  %vm965_vm10 = vweird.f32 %v958_v16 }
 0x8e9   :  { %3120 = vtanh.f32 %v951_v13 }
 0x8ea   :  { %v972_v23 = vor.u32 1.1754944e-38, %v971_v17  ;;  %vm970_vm12 = vcmp.eq.f32.partialorder %v969_v20, 8.507059e+37  ;;  %3122 = vpow2.f32 %v2880_v26 }
 0x8ee   :  { %v3119_v11 = vpop.eup %3118 }
 0x8ef   :  { %v961_v14 = vmul.f32 %v3119_v11, %v958_v16  ;;  %vm966_vm9 = vweird.f32 %v3119_v11  ;;  %v3121_v33 = vpop.eup %3120 }
 0x8f0   :  { %vm967_vm11 = vmor %vm965_vm10, %vm966_vm9  ;;  %v3123_v40 = vpop.eup %3122 }
 0x8f1   :  { %v962_v15 = vsub.f32 1.0, %v961_v14  ;;  %v959_v50 = vadd.f32 1.0, %v3123_v40 }
 0x8f3   :  { %v963_v18 = vmul.f32 %v3119_v11, %v962_v15  ;;  %3124 = vrcp.f32 %v959_v50  ;;  %v986_v47 = vand.u32 2147483648, %v959_v50  ;;  %vm980_vm14 = vweird.f32 %v959_v50 }
 0x8f4   :  { %v984_v63 = vand.u32 2147483647, %v959_v50 }
 0x8f5   :  { %v964_v22 = vadd.f32 %v3119_v11, %v963_v18  ;;  %v987_v35 = vor.u32 1.1754944e-38, %v986_v47  ;;  %v1251_v47 = vrot.slane %v4106_v38, 2 }
 0x8f6   :  { %vm985_vm0 = vcmp.eq.f32.partialorder %v984_v63, 8.507059e+37 }
 0x8f7   :  { %v968_v59 = vsel %vm967_vm11, %v3119_v11, %v964_v22 }
 0x8f8   :  { %v973_v36 = vsel %vm970_vm12, %v972_v23, %v968_v59 }
 0x8f9   :  { %v995_v37 = vmul.f32 %v3121_v33, %v973_v36  ;;  %v994_v12 = vmul.f32 %v992_v27, %v973_v36  ;;  %v3125_v9 = vpop.eup %3124 }
 0x8fa   :  { %v976_v42 = vmul.f32 %v3125_v9, %v959_v50  ;;  %vm981_vm13 = vweird.f32 %v3125_v9 }
 0x8fb   :  { %997 = vrot.lane.b32.xlu2 %v995_v37, %s3558_s5  ;;  %vm982_vm15 = vmor %vm980_vm14, %vm981_vm13 }
 0x8fc   :  { %v977_v24 = vsub.f32 1.0, %v976_v42 }
 0x8fe   :  { %v978_v29 = vmul.f32 %v3125_v9, %v977_v24 }
 0x900   :  { %v979_v34 = vadd.f32 %v3125_v9, %v978_v29 }
 0x902   :  { %v983_v39 = vsel %vm982_vm15, %v3125_v9, %v979_v34 }
 0x903   :  { %v988_v45 = vsel %vm985_vm0, %v987_v35, %v983_v39 }
 0x955   :  { %v998_v31 = vpop.permute.xlu2 %997 }
 0x956   :  { %v1000_v32 = vadd.f32 %v998_v31, %v994_v12  ;;  %v1259_v31 = vrot.slane %v4062_v8, 6 }
 0x958   :  { %3126 = vtanh.f32 %v1000_v32  ;;  %v1097_v10 = vrot.slane %v1000_v32, 6 }
 0x95e   :  { %v3127_v44 = vpop.eup %3126 }
 0x95f   :  { %v4168_v48 = vmul.f32 %v3127_v44, %v988_v45 }
 0x961   :  { %v1004_v52 = vrot.slane %v4168_v48, 2  ;;  %v4173_v53 = vpack.i.bf16 %v4168_v48, %v1267_v49 }
 0x963   :  { %1005 = vrot.lane.b32.xlu0 %v1004_v52, %s3558_s5 }
 0x9d5   :  { %v1006_v56 = vpop.permute.xlu0 %1005 }
 0x9d6   :  { %2881 = vmatmul.msk.f32.vlgmr.msrb.gmra.mxu0 %vm205_vm1, %v1006_v56  ;;  %2882 = vmatmul.msk.f32.vlgmr.msrb.gmra.mxu1 %vm205_vm1, %v1006_v56 }
 0xa53   :  { %v1026_v57 = vpop.f32.mrf.mxu0  ;;  %v1046_v46 = vpop.f32.mrf.mxu1 }
 0xa54   :  { %v1051_v60 = vrot.slane %v1026_v57, 4  ;;  %v1052_v41 = vrot.slane %v1046_v46, 4 }
 0xa56   :  { %v1055_v61 = vadd.f32 %v1051_v60, %v4145_v30  ;;  %v1056_v54 = vadd.f32 %v1052_v41, %v4151_v25 }
 0xa58   :  { %v2883_v55 = vmul.f32 -1.442695, %v1055_v61  ;;  %v2884_v18 = vmul.f32 -1.442695, %v1056_v54 }
 0xa5a   :  { %3128 = vpow2.f32 %v2883_v55 }
 0xa60   :  { %v3129_v43 = vpop.eup %3128 }
 0xa61   :  { %v1063_v62 = vadd.f32 1.0, %v3129_v43 }
 0xa63   :  { %3130 = vrcp.f32 %v1063_v62  ;;  %v1076_v5 = vand.u32 2147483648, %v1063_v62  ;;  %v1074_v7 = vand.u32 2147483647, %v1063_v62  ;;  %vm1070_vm6 = vweird.f32 %v1063_v62 }
 0xa64   :  { %3132 = vtanh.f32 %v1056_v54 }
 0xa65   :  { %v1077_v19 = vor.u32 1.1754944e-38, %v1076_v5  ;;  %vm1075_vm8 = vcmp.eq.f32.partialorder %v1074_v7, 8.507059e+37  ;;  %3134 = vpow2.f32 %v2884_v18 }
 0xa69   :  { %v3131_v51 = vpop.eup %3130 }
 0xa6a   :  { %v1066_v2 = vmul.f32 %v3131_v51, %v1063_v62  ;;  %vm1071_vm5 = vweird.f32 %v3131_v51  ;;  %v3133_v13 = vpop.eup %3132 }
 0xa6b   :  { %vm1072_vm7 = vmor %vm1070_vm6, %vm1071_vm5  ;;  %v3135_v20 = vpop.eup %3134 }
 0xa6c   :  { %v1067_v4 = vsub.f32 1.0, %v1066_v2  ;;  %v1064_v22 = vadd.f32 1.0, %v3135_v20 }
 0xa6e   :  { %v1068_v6 = vmul.f32 %v3131_v51, %v1067_v4  ;;  %3136 = vrcp.f32 %v1064_v22  ;;  %v1091_v26 = vand.u32 2147483648, %v1064_v22  ;;  %vm1085_vm10 = vweird.f32 %v1064_v22 }
 0xa6f   :  { %v1089_v40 = vand.u32 2147483647, %v1064_v22 }
 0xa70   :  { %v1069_v16 = vadd.f32 %v3131_v51, %v1068_v6  ;;  %v1092_v9 = vor.u32 1.1754944e-38, %v1091_v26 }
 0xa71   :  { %vm1090_vm12 = vcmp.eq.f32.partialorder %v1089_v40, 8.507059e+37 }
 0xa72   :  { %v1073_v11 = vsel %vm1072_vm7, %v3131_v51, %v1069_v16 }
 0xa73   :  { %v1078_v14 = vsel %vm1075_vm8, %v1077_v19, %v1073_v11 }
 0xa74   :  { %v1100_v15 = vmul.f32 %v3133_v13, %v1078_v14  ;;  %v1099_v17 = vmul.f32 %v1097_v10, %v1078_v14  ;;  %v3137_v23 = vpop.eup %3136 }
 0xa75   :  { %v1081_v27 = vmul.f32 %v3137_v23, %v1064_v22  ;;  %vm1086_vm9 = vweird.f32 %v3137_v23 }
 0xa76   :  { %1102 = vrot.lane.b32.xlu1 %v1100_v15, %s3558_s5  ;;  %vm1087_vm11 = vmor %vm1085_vm10, %vm1086_vm9  ;;  %vm1219_vm9 = vcmask 261120  }
 0xa77   :  { %v1082_v59 = vsub.f32 1.0, %v1081_v27 }
 0xa79   :  { %v1083_v33 = vmul.f32 %v3137_v23, %v1082_v59 }
 0xa7b   :  { %v1084_v12 = vadd.f32 %v3137_v23, %v1083_v33 }
 0xa7d   :  { %v1088_v50 = vsel %vm1087_vm11, %v3137_v23, %v1084_v12 }
 0xa7e   :  { %v1093_v24 = vsel %vm1090_vm12, %v1092_v9, %v1088_v50  ;;  %v1240_v9 = vrot.slane %v4155_v58, 2 }
 0xae8   :  { %v1103_v36 = vpop.permute.xlu1 %1102 }
 0xae9   :  { %v1105_v37 = vadd.f32 %v1103_v36, %v1099_v17 }
 0xaeb   :  { %3138 = vtanh.f32 %v1105_v37  ;;  %v1202_v54 = vrot.slane %v1105_v37, 6 }
 0xaf1   :  { %v3139_v42 = vpop.eup %3138 }
 0xaf2   :  { %v1107_v29 = vmul.f32 %v3139_v42, %v1093_v24 }
 0xaf4   :  { %v2987_v32 = vpack.i.bf16 %v1259_v31, %v1107_v29  ;;  %v1109_v34 = vrot.slane %v1107_v29, 4 }
 0xaf6   :  { %2988 = vrot.lane.b32.xlu1 %v2987_v32, %s3558_s5  ;;  %1110 = vrot.lane.b32.xlu2 %v1109_v34, %s3558_s5 }
 0xafe   :  { %1252 = vrot.lane.b32.xlu1 %v1251_v47, %s3558_s5 }
 0xb50   :  { %v1111_v63 = vpop.permute.xlu2 %1110 }
 0xb51   :  { %2885 = vmatmul.msk.f32.vlgmr.msra.gmra.mxu2 %vm205_vm1, %v1111_v63  ;;  %2886 = vmatmul.msk.f32.vlgmr.msra.gmra.mxu3 %vm205_vm1, %v1111_v63 }
 0xb68   :  { %v2989_v18 = vpop.permute.xlu1 %2988 }
 0xb69   :  { %v2991_v31 = vunpack.i.h.bf16 %v2989_v18  ;;  %v2990_v32 = vunpack.i.l.bf16 %v2989_v18  ;;  %v1341_v18 = vld [vmem:[#allocation8 + $0x78] sm:$0xff] }
 0xb6b   :  { %v4208_v47 = vsel %vm1219_vm9, %v2990_v32, %v2991_v31  ;;  %v1326_v31 = vld [vmem:[#allocation8] sm:$0xff]  ;;  %v1327_v32 = vld [vmem:[#allocation8 + $0x8] sm:$0xff] }
 0xb6c   :  { %v1279_v63 = vrot.slane %v4208_v47, 2 }
 0xb6e   :  { %v3007_v58 = vpack.i.bf16 %v4132_v21, %v1279_v63  ;;  %v1350_v21 = vld [vmem:[#allocation8 + $0xc0] sm:$0xff] }
 0xb70   :  { %v1253_v26 = vpop.permute.xlu1 %1252 }
 0xbd4   :  { %v1131_v39 = vpop.f32.mrf.mxu2  ;;  %v1151_v56 = vpop.f32.mrf.mxu3 }
 0xbd5   :  { %v1156_v35 = vrot.slane %v1131_v39, 2  ;;  %v1157_v57 = vrot.slane %v1151_v56, 2  ;;  %v1356_v39 = vld [vmem:[#allocation8 + $0xf0] sm:$0xff] }
 0xbd6   :  { %1364 = vmatpush.msra.mxu0 %v1356_v39 }
 0xbd7   :  { %v1160_v44 = vadd.f32 %v1156_v35, %v4145_v30  ;;  %v1161_v61 = vadd.f32 %v1157_v57, %v4151_v25  ;;  %v1224_v25 = vrot.slane %v1107_v29, 2  ;;  %v1357_v35 = vld [vmem:[#allocation8 + $0xf8] sm:$0xff] }
 0xbd8   :  { %1387 = vmatpush.msra.mxu1 %v1357_v35 }
 0xbd9   :  { %v2887_v45 = vmul.f32 -1.442695, %v1160_v44  ;;  %v2997_v16 = vpack.i.bf16 %v4106_v38, %v1224_v25  ;;  %v2888_v19 = vmul.f32 -1.442695, %v1161_v61  ;;  %v1354_v44 = vld [vmem:[#allocation8 + $0xe0] sm:$0xff]  ;;  %v4242_v25 = vld [vmem:[#allocation10 + $0x48] sm:$0xff] }
 0xbda   :  { %1365 = vmatpush.msra.mxu0 %v1354_v44 }
 0xbdb   :  { %3140 = vpow2.f32 %v2887_v45  ;;  %v1355_v45 = vld [vmem:[#allocation8 + $0xe8] sm:$0xff] }
 0xbdc   :  { %1388 = vmatpush.msra.mxu1 %v1355_v45 }
 0xbe1   :  { %v3141_v49 = vpop.eup %3140 }
 0xbe2   :  { %v1168_v52 = vadd.f32 1.0, %v3141_v49 }
 0xbe4   :  { %3142 = vrcp.f32 %v1168_v52  ;;  %v1181_v62 = vand.u32 2147483648, %v1168_v52  ;;  %v1179_v41 = vand.u32 2147483647, %v1168_v52  ;;  %vm1175_vm14 = vweird.f32 %v1168_v52 }
 0xbe5   :  { %3144 = vtanh.f32 %v1161_v61  ;;  %v4220_v61 = vld [vmem:[#allocation10 + $0x70] sm:$0xff] }
 0xbe6   :  { %v1182_v30 = vor.u32 1.1754944e-38, %v1181_v62  ;;  %vm1180_vm0 = vcmp.eq.f32.partialorder %v1179_v41, 8.507059e+37  ;;  %3146 = vpow2.f32 %v2888_v19  ;;  %v4224_v62 = vld [vmem:[#allocation10 + $0x78] sm:$0xff]  ;;  %1434 = vmatpush.msrb.mxu2 %v4220_v61  ;;  %v4228_v41 = vld [vmem:[#allocation10 + $0x60] sm:$0xff]  ;;  %v4245_v19 = vld [vmem:[#allocation10 + $0x30] sm:$0xff] }
 0xbe7   :  { %1454 = vmatpush.msrb.mxu3 %v4224_v62 }
 0xbe8   :  { %1435 = vmatpush.msrb.mxu2 %v4228_v41 }
 0xbea   :  { %v3143_v60 = vpop.eup %3142 }
 0xbeb   :  { %v1171_v55 = vmul.f32 %v3143_v60, %v1168_v52  ;;  %vm1176_vm13 = vweird.f32 %v3143_v60  ;;  %v3145_v4 = vpop.eup %3144  ;;  %v1352_v52 = vld [vmem:[#allocation8 + $0xd0] sm:$0xff] }
 0xbec   :  { %vm1177_vm15 = vmor %vm1175_vm14, %vm1176_vm13  ;;  %v3147_v10 = vpop.eup %3146  ;;  %1366 = vmatpush.msra.mxu0 %v1352_v52 }
 0xbed   :  { %v1172_v43 = vsub.f32 1.0, %v1171_v55  ;;  %v1169_v11 = vadd.f32 1.0, %v3147_v10  ;;  %v4250_v10 = vsel %vm1219_vm9, %v4159_v3, %v4136_v28  ;;  %v1338_v28 = vld [vmem:[#allocation8 + $0x60] sm:$0xff]  ;;  %v1339_v3 = vld [vmem:[#allocation8 + $0x68] sm:$0xff] }
 0xbee   :  { %1367 = vmatpush.msra.mxu0 %v1350_v21 }
 0xbef   :  { %v1173_v46 = vmul.f32 %v3143_v60, %v1172_v43  ;;  %3148 = vrcp.f32 %v1169_v11  ;;  %vm1190_vm6 = vweird.f32 %v1169_v11  ;;  %v1194_v38 = vand.u32 2147483647, %v1169_v11 }
 0xbf0   :  { %v1232_v43 = vrot.slane %v4168_v48, 6  ;;  %v1346_v48 = vld [vmem:[#allocation8 + $0xa0] sm:$0xff] }
 0xbf1   :  { %v1174_v51 = vadd.f32 %v3143_v60, %v1173_v46  ;;  %vm1195_vm8 = vcmp.eq.f32.partialorder %v1194_v38, 8.507059e+37  ;;  %v1348_v46 = vld [vmem:[#allocation8 + $0xb0] sm:$0xff]  ;;  %v4260_v38 = vld [vmem:[#allocation10 + $0x20] sm:$0xff] }
 0xbf2   :  { %1368 = vmatpush.msra.mxu0 %v1348_v46 }
 0xbf3   :  { %v1178_v2 = vsel %vm1177_vm15, %v3143_v60, %v1174_v51  ;;  %v1351_v60 = vld [vmem:[#allocation8 + $0xc8] sm:$0xff] }
 0xbf4   :  { %v1183_v5 = vsel %vm1180_vm0, %v1182_v30, %v1178_v2  ;;  %v4230_v51 = vld [vmem:[#allocation10 + $0x68] sm:$0xff]  ;;  %v4232_v2 = vld [vmem:[#allocation10 + $0x50] sm:$0xff]  ;;  %1369 = vmatpush.msra.mxu0 %v1346_v48 }
 0xbf5   :  { %v1205_v6 = vmul.f32 %v3145_v4, %v1183_v5  ;;  %v1204_v7 = vmul.f32 %v1202_v54, %v1183_v5  ;;  %v3149_v13 = vpop.eup %3148  ;;  %v1349_v54 = vld [vmem:[#allocation8 + $0xb8] sm:$0xff]  ;;  %1455 = vmatpush.msrb.mxu3 %v4230_v51  ;;  %v1347_v5 = vld [vmem:[#allocation8 + $0xa8] sm:$0xff]  ;;  %1436 = vmatpush.msrb.mxu2 %v4232_v2 }
 0xbf6   :  { %v1186_v14 = vmul.f32 %v3149_v13, %v1169_v11  ;;  %vm1191_vm5 = vweird.f32 %v3149_v13  ;;  %v4236_v4 = vld [vmem:[#allocation10 + $0x58] sm:$0xff] }
 0xbf7   :  { %1207 = vrot.lane.b32.xlu0 %v1205_v6, %s3558_s5  ;;  %vm1192_vm7 = vmor %vm1190_vm6, %vm1191_vm5  ;;  %v4239_v6 = vld [vmem:[#allocation10 + $0x40] sm:$0xff]  ;;  %1456 = vmatpush.msrb.mxu3 %v4236_v4 }
 0xbf8   :  { %v1187_v15 = vsub.f32 1.0, %v1186_v14  ;;  %1437 = vmatpush.msrb.mxu2 %v4239_v6  ;;  %v1343_v14 = vld [vmem:[#allocation8 + $0x88] sm:$0xff] }
 0xbf9   :  { %1457 = vmatpush.msrb.mxu3 %v4242_v25 }
 0xbfa   :  { %v1188_v17 = vmul.f32 %v3149_v13, %v1187_v15  ;;  %v1340_v15 = vld [vmem:[#allocation8 + $0x70] sm:$0xff]  ;;  %1438 = vmatpush.msrb.mxu2 %v4245_v19 }
 0xbfc   :  { %v1189_v23 = vadd.f32 %v3149_v13, %v1188_v17  ;;  %v1291_v17 = vrot.slane %v4250_v10, 2  ;;  %1439 = vmatpush.msrb.mxu2 %v4260_v38 }
 0xbfe   :  { %v1193_v27 = vsel %vm1192_vm7, %v3149_v13, %v1189_v23  ;;  %v4253_v13 = vld [vmem:[#allocation10 + $0x38] sm:$0xff]  ;;  %v1334_v23 = vld [vmem:[#allocation8 + $0x40] sm:$0xff] }
 0xbff   :  { %2993 = vrot.lane.b32.xlu0 %v4173_v53, %s3558_s5  ;;  %v1196_v53 = vand.u32 2147483648, %v1169_v11  ;;  %v1342_v11 = vld [vmem:[#allocation8 + $0x80] sm:$0xff]  ;;  %1458 = vmatpush.msrb.mxu3 %v4253_v13 }
 0xc01   :  { %v1197_v59 = vor.u32 1.1754944e-38, %v1196_v53  ;;  %v1335_v53 = vld [vmem:[#allocation8 + $0x48] sm:$0xff] }
 0xc03   :  { %v1198_v12 = vsel %vm1195_vm8, %v1197_v59, %v1193_v27  ;;  %v4262_v27 = vld [vmem:[#allocation10 + $0x28] sm:$0xff]  ;;  %v1332_v59 = vld [vmem:[#allocation8 + $0x30] sm:$0xff] }
 0xc04   :  { %1459 = vmatpush.msrb.mxu3 %v4262_v27 }
 0xc07   :  { %2998 = vrot.lane.b32.xlu0 %v2997_v16, %s3558_s5  ;;  %v1345_v16 = vld [vmem:[#allocation8 + $0x98] sm:$0xff] }
 0xc69   :  { %v1208_v20 = vpop.permute.xlu0 %1207 }
 0xc6a   :  { %v1210_v22 = vadd.f32 %v1208_v20, %v1204_v7  ;;  %v1344_v7 = vld [vmem:[#allocation8 + $0x90] sm:$0xff] }
 0xc6b   :  { %1370 = vmatpush.msra.mxu0 %v1344_v7  ;;  %v1336_v20 = vld [vmem:[#allocation8 + $0x50] sm:$0xff] }
 0xc6c   :  { %3150 = vtanh.f32 %v1210_v22  ;;  %v1337_v22 = vld [vmem:[#allocation8 + $0x58] sm:$0xff] }
 0xc6d   :  { %1371 = vmatpush.msra.mxu0 %v1342_v11 }
 0xc6f   :  { %1372 = vmatpush.msra.mxu0 %v1340_v15 }
 0xc71   :  { %v2994_v33 = vpop.permute.xlu0 %2993  ;;  %1373 = vmatpush.msra.mxu0 %v1338_v28 }
 0xc72   :  { %v3151_v36 = vpop.eup %3150  ;;  %v2996_v37 = vunpack.i.h.bf16 %v2994_v33  ;;  %v2995_v49 = vunpack.i.l.bf16 %v2994_v33  ;;  %v1333_v33 = vld [vmem:[#allocation8 + $0x38] sm:$0xff] }
 0xc73   :  { %v4195_v40 = vmul.f32 %v3151_v36, %v1198_v12  ;;  %1374 = vmatpush.msra.mxu0 %v1336_v20  ;;  %v4266_v36 = vld [vmem:[#allocation10 + $0x10] sm:$0xff]  ;;  %v1330_v12 = vld [vmem:[#allocation8 + $0x20] sm:$0xff] }
 0xc74   :  { %v4198_v50 = vsel %vm1219_vm9, %v2996_v37, %v1253_v26  ;;  %v4268_v37 = vld [vmem:[#allocation10 + $0x18] sm:$0xff]  ;;  %v1331_v26 = vld [vmem:[#allocation8 + $0x28] sm:$0xff]  ;;  %1440 = vmatpush.msrb.mxu2 %v4266_v36 }
 0xc75   :  { %1264 = vrot.lane.b32.xlu2 %v4195_v40, %s3558_s5  ;;  %v1285_v42 = vrot.slane %v4198_v50, 6  ;;  %v1215_v29 = vrot.slane %v4195_v40, 6  ;;  %1375 = vmatpush.msra.mxu0 %v1334_v23 }
 0xc76   :  { %1460 = vmatpush.msrb.mxu3 %v4268_v37 }
 0xc77   :  { %v3012_v24 = vpack.i.bf16 %v1285_v42, %v1240_v9  ;;  %v3002_v34 = vpack.i.bf16 %v4062_v8, %v1215_v29  ;;  %v1353_v8 = vld [vmem:[#allocation8 + $0xd8] sm:$0xff]  ;;  %1376 = vmatpush.msra.mxu0 %v1332_v59  ;;  %v4270_v9 = vld [vmem:[#allocation10] sm:$0xff]  ;;  %v4272_v42 = vld [vmem:[#allocation10 + $0x8] sm:$0xff] }
 0xc78   :  { %1389 = vmatpush.msra.mxu1 %v1353_v8  ;;  %v1329_v29 = vld [vmem:[#allocation8 + $0x18] sm:$0xff]  ;;  %1441 = vmatpush.msrb.mxu2 %v4270_v9 }
 0xc79   :  { %3013 = vrot.lane.b32.xlu0 %v3012_v24, %s3558_s5  ;;  %1377 = vmatpush.msra.mxu0 %v1330_v12  ;;  %v1328_v24 = vld [vmem:[#allocation8 + $0x10] sm:$0xff] }
 0xc7a   :  { %1390 = vmatpush.msra.mxu1 %v1351_v60  ;;  %1461 = vmatpush.msrb.mxu3 %v4272_v42 }
 0xc7b   :  { %1442 = vmatmul.f32.vlgmr.msrb.gmra.mxu2 %v3559_v0  ;;  %1462 = vmatmul.f32.vlgmr.msrb.gmra.mxu3 %v3559_v0 }
 0xc7c   :  { %1391 = vmatpush.msra.mxu1 %v1349_v54  ;;  %1378 = vmatpush.msra.mxu0 %v1328_v24 }
 0xc7d   :  { %3003 = vrot.lane.b32.xlu2 %v3002_v34, %s3558_s5  ;;  %1529 = vmatpush.msra.mxu2 %v4220_v61  ;;  %v2999_v34 = vpop.permute.xlu0 %2998 }
 0xc7e   :  { %1392 = vmatpush.msra.mxu1 %v1347_v5  ;;  %1549 = vmatpush.msra.mxu3 %v4224_v62  ;;  %v3001_v44 = vunpack.i.h.bf16 %v2999_v34  ;;  %v3000_v21 = vunpack.i.l.bf16 %v2999_v34 }
 0xc7f   :  { %1379 = vmatpush.msra.mxu0 %v1326_v31  ;;  %1530 = vmatpush.msra.mxu2 %v4228_v41 }
 0xc80   :  { %1393 = vmatpush.msra.mxu1 %v1345_v16  ;;  %1550 = vmatpush.msra.mxu3 %v4230_v51 }
 0xc81   :  { %1634 = vmatpush.msrb.mxu0 %v4220_v61  ;;  %1531 = vmatpush.msra.mxu2 %v4232_v2 }
 0xc82   :  { %1394 = vmatpush.msra.mxu1 %v1343_v14  ;;  %1551 = vmatpush.msra.mxu3 %v4236_v4 }
 0xc83   :  { %1635 = vmatpush.msrb.mxu0 %v4228_v41  ;;  %1532 = vmatpush.msra.mxu2 %v4239_v6 }
 0xc84   :  { %1395 = vmatpush.msra.mxu1 %v1341_v18  ;;  %1552 = vmatpush.msra.mxu3 %v4242_v25  ;;  %v4368_v18 = vld [vmem:[%s4856_s7] sm:$0x3]  ;;  %s3560_s7 = smov 96  }
 0xc85   :  { %3008 = vrot.lane.b32.xlu2 %v3007_v58, %s3558_s5  ;;  %1636 = vmatpush.msrb.mxu0 %v4232_v2  ;;  %v1360_v28 = vperm.slane %v4368_v18, 0 }
 0xc86   :  { %1396 = vmatpush.msra.mxu1 %v1339_v3  ;;  %1533 = vmatpush.msra.mxu2 %v4245_v19 }
 0xc87   :  { %1553 = vmatpush.msra.mxu3 %v4253_v13  ;;  %1637 = vmatpush.msrb.mxu0 %v4239_v6 }
 0xc88   :  { %1397 = vmatpush.msra.mxu1 %v1337_v22  ;;  %1534 = vmatpush.msra.mxu2 %v4260_v38 }
 0xc89   :  { %1554 = vmatpush.msra.mxu3 %v4262_v27  ;;  %1638 = vmatpush.msrb.mxu0 %v4245_v19 }
 0xc8a   :  { %1398 = vmatpush.msra.mxu1 %v1335_v53  ;;  %1535 = vmatpush.msra.mxu2 %v4266_v36 }
 0xc8b   :  { %1555 = vmatpush.msra.mxu3 %v4268_v37  ;;  %1639 = vmatpush.msrb.mxu0 %v4260_v38 }
 0xc8c   :  { %1399 = vmatpush.msra.mxu1 %v1333_v33  ;;  %1536 = vmatpush.msra.mxu2 %v4270_v9  ;;  %v1361_v33 = vperm.slane %v4368_v18, 1 }
 0xc8d   :  { %1556 = vmatpush.msra.mxu3 %v4272_v42  ;;  %1640 = vmatpush.msrb.mxu0 %v4266_v36 }
 0xc8e   :  { %1400 = vmatpush.msra.mxu1 %v1331_v26  ;;  %1739 = vmatpush.msrb.mxu2 %v4220_v61 }
 0xc8f   :  { %1759 = vmatpush.msrb.mxu3 %v4224_v62  ;;  %1641 = vmatpush.msrb.mxu0 %v4270_v9 }
 0xc90   :  { %1401 = vmatpush.msra.mxu1 %v1329_v29  ;;  %1740 = vmatpush.msrb.mxu2 %v4228_v41 }
 0xc91   :  { %1760 = vmatpush.msrb.mxu3 %v4230_v51 }
 0xc92   :  { %1402 = vmatpush.msra.mxu1 %v1327_v32  ;;  %1741 = vmatpush.msrb.mxu2 %v4232_v2 }
 0xc93   :  { %1761 = vmatpush.msrb.mxu3 %v4236_v4 }
 0xc94   :  { %1654 = vmatpush.msrb.mxu1 %v4224_v62  ;;  %1742 = vmatpush.msrb.mxu2 %v4239_v6 }
 0xc95   :  { %1762 = vmatpush.msrb.mxu3 %v4242_v25 }
 0xc96   :  { %1655 = vmatpush.msrb.mxu1 %v4230_v51  ;;  %1743 = vmatpush.msrb.mxu2 %v4245_v19 }
 0xc97   :  { %1763 = vmatpush.msrb.mxu3 %v4253_v13 }
 0xc98   :  { %1656 = vmatpush.msrb.mxu1 %v4236_v4  ;;  %1744 = vmatpush.msrb.mxu2 %v4260_v38 }
 0xc99   :  { %1764 = vmatpush.msrb.mxu3 %v4262_v27 }
 0xc9a   :  { %1657 = vmatpush.msrb.mxu1 %v4242_v25  ;;  %1745 = vmatpush.msrb.mxu2 %v4266_v36 }
 0xc9b   :  { %1765 = vmatpush.msrb.mxu3 %v4268_v37 }
 0xc9c   :  { %1658 = vmatpush.msrb.mxu1 %v4253_v13  ;;  %1746 = vmatpush.msrb.mxu2 %v4270_v9 }
 0xc9d   :  { %1766 = vmatpush.msrb.mxu3 %v4272_v42 }
 0xc9e   :  { %1659 = vmatpush.msrb.mxu1 %v4262_v27 }
 0xca0   :  { %1660 = vmatpush.msrb.mxu1 %v4268_v37 }
 0xca2   :  { %1661 = vmatpush.msrb.mxu1 %v4272_v42 }
 0xccf   :  { %v4214_v56 = vpop.permute.xlu2 %1264 }
 0xcd0   :  { %v4218_v57 = vsel %vm1219_vm9, %v4214_v56, %v2995_v49 }
 0xcd1   :  { %v1273_v55 = vrot.slane %v4218_v57, 6 }
 0xcd3   :  { %v3017_v30 = vpack.i.bf16 %v1273_v55, %v1232_v43 }
 0xcd5   :  { %3018 = vrot.lane.b32.xlu1 %v3017_v30, %s3558_s5 }
 0xcd7   :  { %v3004_v0 = vpop.permute.xlu2 %3003 }
 0xcd8   :  { %v3005_v63 = vunpack.i.l.bf16 %v3004_v0  ;;  %v3006_v39 = vunpack.i.h.bf16 %v3004_v0 }
 0xcda   :  { %v4322_v60 = vsel %vm1219_vm9, %v4027_v1, %v3005_v63  ;;  %v4332_v46 = vsel %vm1219_vm9, %v3006_v39, %v3000_v21 }
 0xcdd   :  { %1292 = vrot.lane.b32.xlu1 %v1291_v17, %s3558_s5 }
 0xcdf   :  { %v3009_v58 = vpop.permute.xlu2 %3008 }
 0xce0   :  { %v3010_v45 = vunpack.i.l.bf16 %v3009_v58  ;;  %v3011_v1 = vunpack.i.h.bf16 %v3009_v58 }
 0xce2   :  { %v1283_v48 = vsel %vm205_vm1, %v4332_v46, %v3010_v45 }
 0xceb   :  { %v3014_v49 = vpop.permute.xlu0 %3013 }
 0xcec   :  { %v3016_v30 = vunpack.i.h.bf16 %v3014_v49  ;;  %v3015_v54 = vunpack.i.l.bf16 %v3014_v49 }
 0xcee   :  { %v1244_v16 = vsel %vm1219_vm9, %v3011_v1, %v3015_v54 }
 0xcfe   :  { %v1443_v20 = vpop.f32.mrf.mxu2  ;;  %v1463_v29 = vpop.f32.mrf.mxu3 }
 0xd47   :  { %v3019_v35 = vpop.permute.xlu1 %3018 }
 0xd48   :  { %v3021_v52 = vunpack.i.h.bf16 %v3019_v35  ;;  %v3020_v8 = vunpack.i.l.bf16 %v3019_v35 }
 0xd4a   :  { %v1277_v55 = vsel %vm205_vm1, %v4322_v60, %v3021_v52  ;;  %v4327_v43 = vsel %vm1219_vm9, %v3001_v44, %v3020_v8 }
 0xd4b   :  { %v1289_v5 = vsel %vm205_vm1, %v4327_v43, %v3016_v30  ;;  %v1320_v7 = vsel %vm284_vm2, %v1277_v55, %v1283_v48  ;;  %v1303_v21 = vrot.slane %v4327_v43, 2  ;;  %v1297_v55 = vrot.slane %v1244_v16, 6 }
 0xd4c   :  { %v1321_v15 = vsel %vm286_vm3, %v1320_v7, %v1289_v5 }
 0xd4d   :  { %v3022_v30 = vpack.i.bf16 %v1303_v21, %v1297_v55 }
 0xd4f   :  { %v1293_v11 = vpop.permute.xlu1 %1292 }
 0xd50   :  { %v1295_v14 = vsel %vm205_vm1, %v1244_v16, %v1293_v11 }
 0xd51   :  { %v1322_v17 = vsel %vm288_vm4, %v1321_v15, %v1295_v14 }
 0xd52   :  { %1380 = vmatmul.f32.vlgmr.msra.gmra.mxu0 %v1322_v17  ;;  %1403 = vmatmul.f32.vlgmr.msra.gmra.mxu1 %v1322_v17 }
 0xd53   :  { %1844 = vmatpush.msra.mxu0 %v4220_v61  ;;  %1864 = vmatpush.msra.mxu1 %v4224_v62 }
 0xd55   :  { %1845 = vmatpush.msra.mxu0 %v4228_v41  ;;  %1865 = vmatpush.msra.mxu1 %v4230_v51 }
 0xd57   :  { %1846 = vmatpush.msra.mxu0 %v4232_v2  ;;  %1866 = vmatpush.msra.mxu1 %v4236_v4 }
 0xd59   :  { %1847 = vmatpush.msra.mxu0 %v4239_v6  ;;  %1867 = vmatpush.msra.mxu1 %v4242_v25 }
 0xd5b   :  { %1848 = vmatpush.msra.mxu0 %v4245_v19  ;;  %1868 = vmatpush.msra.mxu1 %v4253_v13 }
 0xd5d   :  { %1849 = vmatpush.msra.mxu0 %v4260_v38  ;;  %1869 = vmatpush.msra.mxu1 %v4262_v27 }
 0xd5f   :  { %1850 = vmatpush.msra.mxu0 %v4266_v36  ;;  %1870 = vmatpush.msra.mxu1 %v4268_v37 }
 0xd61   :  { %1851 = vmatpush.msra.mxu0 %v4270_v9  ;;  %1871 = vmatpush.msra.mxu1 %v4272_v42 }
 0xdcf   :  { %v1381_v3 = vpop.f32.mrf.mxu0  ;;  %v1404_v26 = vpop.f32.mrf.mxu1 }
 0xdd0   :  { %v4373_v22 = vadd.f32 %v1381_v3, %v1360_v28  ;;  %v4379_v24 = vadd.f32 %v1404_v26, %v1361_v33 }
 0xdd2   :  { %v1466_v23 = vadd.f32 %v1443_v20, %v4373_v22  ;;  %v1467_v32 = vadd.f32 %v1463_v29, %v4379_v24  ;;  %v1309_v29 = vrot.slane %v4332_v46, 6 }
 0xdd4   :  { %v2889_v53 = vmul.f32 -1.442695, %v1466_v23  ;;  %v2890_v54 = vmul.f32 -1.442695, %v1467_v32 }
 0xdd6   :  { %3152 = vpow2.f32 %v2889_v53 }
 0xddc   :  { %v3153_v59 = vpop.eup %3152 }
 0xddd   :  { %v1474_v12 = vadd.f32 1.0, %v3153_v59 }
 0xddf   :  { %3154 = vrcp.f32 %v1474_v12  ;;  %v1487_v63 = vand.u32 2147483648, %v1474_v12  ;;  %v1485_v39 = vand.u32 2147483647, %v1474_v12  ;;  %vm1481_vm11 = vweird.f32 %v1474_v12 }
 0xde0   :  { %3156 = vtanh.f32 %v1467_v32 }
 0xde1   :  { %v1488_v44 = vor.u32 1.1754944e-38, %v1487_v63  ;;  %vm1486_vm13 = vcmp.eq.f32.partialorder %v1485_v39, 8.507059e+37  ;;  %3158 = vpow2.f32 %v2890_v54 }
 0xde5   :  { %v3155_v31 = vpop.eup %3154 }
 0xde6   :  { %v1477_v0 = vmul.f32 %v3155_v31, %v1474_v12  ;;  %vm1482_vm10 = vweird.f32 %v3155_v31  ;;  %v3157_v49 = vpop.eup %3156 }
 0xde7   :  { %vm1483_vm12 = vmor %vm1481_vm11, %vm1482_vm10  ;;  %v3159_v48 = vpop.eup %3158 }
 0xde8   :  { %v1478_v34 = vsub.f32 1.0, %v1477_v0  ;;  %v1475_v1 = vadd.f32 1.0, %v3159_v48 }
 0xdea   :  { %v1479_v58 = vmul.f32 %v3155_v31, %v1478_v34  ;;  %3160 = vrcp.f32 %v1475_v1  ;;  %v1502_v43 = vand.u32 2147483648, %v1475_v1  ;;  %vm1496_vm15 = vweird.f32 %v1475_v1 }
 0xdeb   :  { %v1500_v16 = vand.u32 2147483647, %v1475_v1 }
 0xdec   :  { %v1480_v35 = vadd.f32 %v3155_v31, %v1479_v58  ;;  %v1503_v53 = vor.u32 1.1754944e-38, %v1502_v43 }
 0xded   :  { %vm1501_vm5 = vcmp.eq.f32.partialorder %v1500_v16, 8.507059e+37 }
 0xdee   :  { %v1484_v45 = vsel %vm1483_vm12, %v3155_v31, %v1480_v35  ;;  %v1315_v31 = vrot.slane %v4322_v60, 2 }
 0xdef   :  { %v1489_v52 = vsel %vm1486_vm13, %v1488_v44, %v1484_v45 }
 0xdf0   :  { %v1508_v8 = vmul.f32 %v3157_v49, %v1489_v52  ;;  %v3161_v5 = vpop.eup %3160  ;;  %v1507_v15 = vmul.f32 0.0, %v1489_v52  ;;  %v3027_v32 = vpack.i.bf16 %v1315_v31, %v1309_v29 }
 0xdf1   :  { %v1492_v7 = vmul.f32 %v3161_v5, %v1475_v1  ;;  %vm1497_vm14 = vweird.f32 %v3161_v5 }
 0xdf2   :  { %1510 = vrot.lane.b32.xlu2 %v1508_v8, %s3558_s5  ;;  %vm1498_vm0 = vmor %vm1496_vm15, %vm1497_vm14 }
 0xdf3   :  { %v1493_v11 = vsub.f32 1.0, %v1492_v7 }
 0xdf5   :  { %v1494_v14 = vmul.f32 %v3161_v5, %v1493_v11 }
 0xdf7   :  { %v1495_v20 = vadd.f32 %v3161_v5, %v1494_v14 }
 0xdf9   :  { %v1499_v23 = vsel %vm1498_vm0, %v3161_v5, %v1495_v20 }
 0xdfa   :  { %3023 = vrot.lane.b32.xlu2 %v3022_v30, %s3558_s5  ;;  %v1504_v12 = vsel %vm1501_vm5, %v1503_v53, %v1499_v23 }
 0xe4c   :  { %v1511_v17 = vpop.permute.xlu2 %1510 }
 0xe4d   :  { %v4385_v3 = vadd.f32 %v1511_v17, %v1507_v15 }
 0xe4f   :  { %3162 = vtanh.f32 %v4385_v3  ;;  %v1609_v16 = vrot.slane %v4385_v3, 6 }
 0xe54   :  { %v3024_v34 = vpop.permute.xlu2 %3023 }
 0xe55   :  { %v3163_v59 = vpop.eup %3162  ;;  %v3026_v63 = vunpack.i.h.bf16 %v3024_v34  ;;  %v3025_v46 = vunpack.i.l.bf16 %v3024_v34 }
 0xe56   :  { %v4388_v26 = vmul.f32 %v3163_v59, %v1504_v12 }
 0xe57   :  { %v1307_v60 = vsel %vm205_vm1, %v4198_v50, %v3026_v63  ;;  %v1301_v58 = vsel %vm205_vm1, %v4250_v10, %v3025_v46 }
 0xe58   :  { %1517 = vrot.lane.b32.xlu0 %v4388_v26, %s3558_s5  ;;  %v1323_v49 = vsel %vm284_vm2, %v1301_v58, %v1307_v60 }
 0xe60   :  { %3028 = vrot.lane.b32.xlu0 %v3027_v32, %s3558_s5 }
 0xeca   :  { %v4395_v0 = vpop.permute.xlu0 %1517 }
 0xecb   :  { %2891 = vmatmul.msk.f32.vlgmr.msra.gmra.mxu2 %vm205_vm1, %v4395_v0  ;;  %2892 = vmatmul.msk.f32.vlgmr.msra.gmra.mxu3 %vm205_vm1, %v4395_v0 }
 0xecc   :  { %1942 = vmatpush.msra.mxu2 %v4220_v61  ;;  %1962 = vmatpush.msra.mxu3 %v4224_v62 }
 0xece   :  { %1943 = vmatpush.msra.mxu2 %v4228_v41  ;;  %1963 = vmatpush.msra.mxu3 %v4230_v51 }
 0xed0   :  { %1944 = vmatpush.msra.mxu2 %v4232_v2  ;;  %1964 = vmatpush.msra.mxu3 %v4236_v4 }
 0xed2   :  { %v3029_v39 = vpop.permute.xlu0 %3028  ;;  %1945 = vmatpush.msra.mxu2 %v4239_v6  ;;  %1965 = vmatpush.msra.mxu3 %v4242_v25 }
 0xed3   :  { %v3031_v35 = vunpack.i.h.bf16 %v3029_v39  ;;  %v3030_v44 = vunpack.i.l.bf16 %v3029_v39 }
 0xed4   :  { %1946 = vmatpush.msra.mxu2 %v4245_v19  ;;  %1966 = vmatpush.msra.mxu3 %v4253_v13 }
 0xed5   :  { %v1313_v45 = vsel %vm205_vm1, %v4208_v47, %v3030_v44  ;;  %v1319_v50 = vsel %vm205_vm1, %v4218_v57, %v3031_v35 }
 0xed6   :  { %v1324_v10 = vsel %vm286_vm3, %v1323_v49, %v1313_v45  ;;  %1947 = vmatpush.msra.mxu2 %v4260_v38  ;;  %1967 = vmatpush.msra.mxu3 %v4262_v27 }
 0xed7   :  { %v1325_v52 = vsel %vm288_vm4, %v1324_v10, %v1319_v50 }
 0xed8   :  { %1383 = vmatmul.f32.gmra.mxu0 %v1325_v52  ;;  %1406 = vmatmul.f32.gmra.mxu1 %v1325_v52 }
 0xed9   :  { %1948 = vmatpush.msra.mxu2 %v4266_v36  ;;  %1968 = vmatpush.msra.mxu3 %v4268_v37 }
 0xedb   :  { %1949 = vmatpush.msra.mxu2 %v4270_v9  ;;  %1969 = vmatpush.msra.mxu3 %v4272_v42 }
 0xf4e   :  { %v1538_v47 = vpop.f32.mrf.mxu2  ;;  %v1558_v54 = vpop.f32.mrf.mxu3 }
 0xf4f   :  { %v1563_v57 = vrot.slane %v1538_v47, 6  ;;  %v1564_v48 = vrot.slane %v1558_v54, 6 }
 0xf51   :  { %v1567_v8 = vadd.f32 %v1563_v57, %v4373_v22  ;;  %v1568_v5 = vadd.f32 %v1564_v48, %v4379_v24 }
 0xf53   :  { %v2893_v21 = vmul.f32 -1.442695, %v1567_v8  ;;  %v2894_v31 = vmul.f32 -1.442695, %v1568_v5 }
 0xf55   :  { %3164 = vpow2.f32 %v2893_v21  ;;  %v4457_v21 = vpop.f32.mrf.mxu0 }
 0xf5b   :  { %v3165_v55 = vpop.eup %3164 }
 0xf5c   :  { %v1575_v30 = vadd.f32 1.0, %v3165_v55 }
 0xf5e   :  { %3166 = vrcp.f32 %v1575_v30  ;;  %v1588_v14 = vand.u32 2147483648, %v1575_v30  ;;  %v1586_v17 = vand.u32 2147483647, %v1575_v30  ;;  %vm1582_vm4 = vweird.f32 %v1575_v30 }
 0xf5f   :  { %3168 = vtanh.f32 %v1568_v5 }
 0xf60   :  { %v1589_v43 = vor.u32 1.1754944e-38, %v1588_v14  ;;  %vm1587_vm7 = vcmp.eq.f32.partialorder %v1586_v17, 8.507059e+37  ;;  %3170 = vpow2.f32 %v2894_v31 }
 0xf64   :  { %v3167_v1 = vpop.eup %3166 }
 0xf65   :  { %v1578_v7 = vmul.f32 %v3167_v1, %v1575_v30  ;;  %vm1583_vm3 = vweird.f32 %v3167_v1  ;;  %v3169_v53 = vpop.eup %3168 }
 0xf66   :  { %vm1584_vm6 = vmor %vm1582_vm4, %vm1583_vm3  ;;  %v3171_v32 = vpop.eup %3170 }
 0xf67   :  { %v1579_v11 = vsub.f32 1.0, %v1578_v7  ;;  %v1576_v34 = vadd.f32 1.0, %v3171_v32 }
 0xf69   :  { %v1580_v15 = vmul.f32 %v3167_v1, %v1579_v11  ;;  %3172 = vrcp.f32 %v1576_v34  ;;  %v1603_v44 = vand.u32 2147483648, %v1576_v34  ;;  %vm1597_vm10 = vweird.f32 %v1576_v34 }
 0xf6a   :  { %v1601_v45 = vand.u32 2147483647, %v1576_v34 }
 0xf6b   :  { %v1581_v20 = vadd.f32 %v3167_v1, %v1580_v15  ;;  %v1604_v49 = vor.u32 1.1754944e-38, %v1603_v44 }
 0xf6c   :  { %vm1602_vm12 = vcmp.eq.f32.partialorder %v1601_v45, 8.507059e+37 }
 0xf6d   :  { %v1585_v23 = vsel %vm1584_vm6, %v3167_v1, %v1581_v20  ;;  %v4460_v1 = vpop.f32.mrf.mxu1 }
 0xf6e   :  { %v1590_v59 = vsel %vm1587_vm7, %v1589_v43, %v1585_v23 }
 0xf6f   :  { %v1612_v12 = vmul.f32 %v3169_v53, %v1590_v59  ;;  %v1611_v29 = vmul.f32 %v1609_v16, %v1590_v59  ;;  %v3173_v63 = vpop.eup %3172 }
 0xf70   :  { %v1593_v46 = vmul.f32 %v3173_v63, %v1576_v34  ;;  %vm1598_vm8 = vweird.f32 %v3173_v63 }
 0xf71   :  { %1614 = vrot.lane.b32.xlu1 %v1612_v12, %s3558_s5  ;;  %vm1599_vm11 = vmor %vm1597_vm10, %vm1598_vm8 }
 0xf72   :  { %v1594_v60 = vsub.f32 1.0, %v1593_v46 }
 0xf74   :  { %v1595_v58 = vmul.f32 %v3173_v63, %v1594_v60 }
 0xf76   :  { %v1596_v3 = vadd.f32 %v3173_v63, %v1595_v58 }
 0xf78   :  { %v1600_v50 = vsel %vm1599_vm11, %v3173_v63, %v1596_v3 }
 0xf79   :  { %v1605_v52 = vsel %vm1602_vm12, %v1604_v49, %v1600_v50 }
 0xfe3   :  { %v1615_v39 = vpop.permute.xlu1 %1614 }
 0xfe4   :  { %v4432_v35 = vadd.f32 %v1615_v39, %v1611_v29 }
 0xfe6   :  { %3174 = vtanh.f32 %v4432_v35  ;;  %v1714_v29 = vrot.slane %v4432_v35, 6 }
 0xfec   :  { %v3175_v10 = vpop.eup %3174 }
 0xfed   :  { %v4435_v47 = vmul.f32 %v3175_v10, %v1605_v52 }
 0xfef   :  { %v1621_v57 = vrot.slane %v4435_v47, 2 }
 0xff1   :  { %1622 = vrot.lane.b32.xlu1 %v1621_v57, %s3558_s5 }
0x1063   :  { %v1623_v8 = vpop.permute.xlu1 %1622 }
0x1064   :  { %2895 = vmatmul.msk.f32.vlgmr.msrb.gmra.mxu0 %vm205_vm1, %v1623_v8  ;;  %2896 = vmatmul.msk.f32.vlgmr.msrb.gmra.mxu1 %vm205_vm1, %v1623_v8 }
0x1065   :  { %2047 = vmatpush.msrb.mxu0 %v4220_v61  ;;  %2067 = vmatpush.msrb.mxu1 %v4224_v62 }
0x1067   :  { %2048 = vmatpush.msrb.mxu0 %v4228_v41  ;;  %2068 = vmatpush.msrb.mxu1 %v4230_v51 }
0x1069   :  { %2049 = vmatpush.msrb.mxu0 %v4232_v2  ;;  %2069 = vmatpush.msrb.mxu1 %v4236_v4 }
0x106b   :  { %2050 = vmatpush.msrb.mxu0 %v4239_v6  ;;  %2070 = vmatpush.msrb.mxu1 %v4242_v25 }
0x106d   :  { %2051 = vmatpush.msrb.mxu0 %v4245_v19  ;;  %2071 = vmatpush.msrb.mxu1 %v4253_v13 }
0x106f   :  { %2052 = vmatpush.msrb.mxu0 %v4260_v38  ;;  %2072 = vmatpush.msrb.mxu1 %v4262_v27 }
0x1071   :  { %2053 = vmatpush.msrb.mxu0 %v4266_v36  ;;  %2073 = vmatpush.msrb.mxu1 %v4268_v37 }
0x1073   :  { %2054 = vmatpush.msrb.mxu0 %v4270_v9  ;;  %2074 = vmatpush.msrb.mxu1 %v4272_v42 }
0x10e1   :  { %v1643_v55 = vpop.f32.mrf.mxu0  ;;  %v1663_v11 = vpop.f32.mrf.mxu1 }
0x10e2   :  { %v1668_v30 = vrot.slane %v1643_v55, 4  ;;  %v1669_v14 = vrot.slane %v1663_v11, 4 }
0x10e4   :  { %v1672_v54 = vadd.f32 %v1668_v30, %v4373_v22  ;;  %v1673_v17 = vadd.f32 %v1669_v14, %v4379_v24 }
0x10e6   :  { %v2897_v48 = vmul.f32 -1.442695, %v1672_v54  ;;  %v2898_v60 = vmul.f32 -1.442695, %v1673_v17 }
0x10e8   :  { %3176 = vpow2.f32 %v2897_v48 }
0x10ee   :  { %v3177_v5 = vpop.eup %3176 }
0x10ef   :  { %v1680_v7 = vadd.f32 1.0, %v3177_v5 }
0x10f1   :  { %3178 = vrcp.f32 %v1680_v7  ;;  %v1693_v16 = vand.u32 2147483648, %v1680_v7  ;;  %v1691_v53 = vand.u32 2147483647, %v1680_v7  ;;  %vm1687_vm14 = vweird.f32 %v1680_v7 }
0x10f2   :  { %3180 = vtanh.f32 %v1673_v17 }
0x10f3   :  { %v1694_v12 = vor.u32 1.1754944e-38, %v1693_v16  ;;  %vm1692_vm0 = vcmp.eq.f32.partialorder %v1691_v53, 8.507059e+37  ;;  %3182 = vpow2.f32 %v2898_v60 }
0x10f7   :  { %v3179_v15 = vpop.eup %3178 }
0x10f8   :  { %v1683_v20 = vmul.f32 %v3179_v15, %v1680_v7  ;;  %vm1688_vm13 = vweird.f32 %v3179_v15  ;;  %v3181_v32 = vpop.eup %3180 }
0x10f9   :  { %vm1689_vm15 = vmor %vm1687_vm14, %vm1688_vm13  ;;  %v3183_v58 = vpop.eup %3182 }
0x10fa   :  { %v1684_v43 = vsub.f32 1.0, %v1683_v20  ;;  %v1681_v39 = vadd.f32 1.0, %v3183_v58 }
0x10fc   :  { %v1685_v23 = vmul.f32 %v3179_v15, %v1684_v43  ;;  %3184 = vrcp.f32 %v1681_v39  ;;  %v1708_v52 = vand.u32 2147483648, %v1681_v39  ;;  %vm1702_vm3 = vweird.f32 %v1681_v39 }
0x10fd   :  { %v1706_v57 = vand.u32 2147483647, %v1681_v39 }
0x10fe   :  { %v1686_v59 = vadd.f32 %v3179_v15, %v1685_v23  ;;  %v1709_v55 = vor.u32 1.1754944e-38, %v1708_v52 }
0x10ff   :  { %vm1707_vm6 = vcmp.eq.f32.partialorder %v1706_v57, 8.507059e+37 }
0x1100   :  { %v1690_v31 = vsel %vm1689_vm15, %v3179_v15, %v1686_v59 }
0x1101   :  { %v1695_v34 = vsel %vm1692_vm0, %v1694_v12, %v1690_v31 }
0x1102   :  { %v1717_v63 = vmul.f32 %v3181_v32, %v1695_v34  ;;  %v1716_v46 = vmul.f32 %v1714_v29, %v1695_v34  ;;  %v3185_v3 = vpop.eup %3184 }
0x1103   :  { %v1698_v44 = vmul.f32 %v3185_v3, %v1681_v39  ;;  %vm1703_vm5 = vweird.f32 %v3185_v3 }
0x1104   :  { %1719 = vrot.lane.b32.xlu2 %v1717_v63, %s3558_s5  ;;  %vm1704_vm4 = vmor %vm1702_vm3, %vm1703_vm5 }
0x1105   :  { %v1699_v45 = vsub.f32 1.0, %v1698_v44 }
0x1107   :  { %v1700_v50 = vmul.f32 %v3185_v3, %v1699_v45 }
0x1109   :  { %v1701_v35 = vadd.f32 %v3185_v3, %v1700_v50 }
0x110b   :  { %v1705_v8 = vsel %vm1704_vm4, %v3185_v3, %v1701_v35 }
0x110c   :  { %v1710_v54 = vsel %vm1707_vm6, %v1709_v55, %v1705_v8 }
0x115e   :  { %v1720_v49 = vpop.permute.xlu2 %1719 }
0x115f   :  { %v4465_v10 = vadd.f32 %v1720_v49, %v1716_v46  ;;  %v4507_v49 = vadd.f32 %v4457_v21, %v1360_v28 }
0x1161   :  { %3186 = vtanh.f32 %v4465_v10  ;;  %v1819_v11 = vrot.slane %v4465_v10, 6 }
0x1167   :  { %v3187_v30 = vpop.eup %3186 }
0x1168   :  { %v4468_v48 = vmul.f32 %v3187_v30, %v1710_v54  ;;  %v4513_v30 = vadd.f32 %v4460_v1, %v1361_v33 }
0x116a   :  { %v1726_v5 = vrot.slane %v4468_v48, 4 }
0x116c   :  { %1727 = vrot.lane.b32.xlu0 %v1726_v5, %s3558_s5 }
0x11de   :  { %v1728_v7 = vpop.permute.xlu0 %1727 }
0x11df   :  { %2899 = vmatmul.msk.f32.vlgmr.msrb.gmra.mxu2 %vm205_vm1, %v1728_v7  ;;  %2900 = vmatmul.msk.f32.vlgmr.msrb.gmra.mxu3 %vm205_vm1, %v1728_v7 }
0x11e0   :  { %2152 = vmatpush.msrb.mxu2 %v4220_v61  ;;  %2172 = vmatpush.msrb.mxu3 %v4224_v62 }
0x11e2   :  { %2153 = vmatpush.msrb.mxu2 %v4228_v41  ;;  %2173 = vmatpush.msrb.mxu3 %v4230_v51 }
0x11e4   :  { %2154 = vmatpush.msrb.mxu2 %v4232_v2  ;;  %2174 = vmatpush.msrb.mxu3 %v4236_v4 }
0x11e6   :  { %2155 = vmatpush.msrb.mxu2 %v4239_v6  ;;  %2175 = vmatpush.msrb.mxu3 %v4242_v25 }
0x11e8   :  { %2156 = vmatpush.msrb.mxu2 %v4245_v19  ;;  %2176 = vmatpush.msrb.mxu3 %v4253_v13 }
0x11ea   :  { %2157 = vmatpush.msrb.mxu2 %v4260_v38  ;;  %2177 = vmatpush.msrb.mxu3 %v4262_v27 }
0x11ec   :  { %2158 = vmatpush.msrb.mxu2 %v4266_v36  ;;  %2178 = vmatpush.msrb.mxu3 %v4268_v37 }
0x11ee   :  { %2159 = vmatpush.msrb.mxu2 %v4270_v9  ;;  %2179 = vmatpush.msrb.mxu3 %v4272_v42 }
0x1262   :  { %v1748_v61 = vpop.f32.mrf.mxu2  ;;  %v1768_v6 = vpop.f32.mrf.mxu3 }
0x1263   :  { %v1773_v62 = vrot.slane %v1748_v61, 2  ;;  %v1774_v25 = vrot.slane %v1768_v6, 2 }
0x1265   :  { %v1777_v41 = vadd.f32 %v1773_v62, %v4373_v22  ;;  %v1778_v13 = vadd.f32 %v1774_v25, %v4379_v24 }
0x1267   :  { %v2901_v51 = vmul.f32 -1.442695, %v1777_v41  ;;  %v2902_v24 = vmul.f32 -1.442695, %v1778_v13 }
0x1269   :  { %3188 = vpow2.f32 %v2901_v51 }
0x126f   :  { %v3189_v2 = vpop.eup %3188 }
0x1270   :  { %v1785_v4 = vadd.f32 1.0, %v3189_v2 }
0x1272   :  { %3190 = vrcp.f32 %v1785_v4  ;;  %v1798_v36 = vand.u32 2147483648, %v1785_v4  ;;  %v1796_v9 = vand.u32 2147483647, %v1785_v4  ;;  %vm1792_vm8 = vweird.f32 %v1785_v4 }
0x1273   :  { %3192 = vtanh.f32 %v1778_v13 }
0x1274   :  { %v1799_v22 = vor.u32 1.1754944e-38, %v1798_v36  ;;  %vm1797_vm11 = vcmp.eq.f32.partialorder %v1796_v9, 8.507059e+37  ;;  %3194 = vpow2.f32 %v2902_v24 }
0x1278   :  { %v3191_v19 = vpop.eup %3190 }
0x1279   :  { %v1788_v38 = vmul.f32 %v3191_v19, %v1785_v4  ;;  %vm1793_vm7 = vweird.f32 %v3191_v19  ;;  %v3193_v15 = vpop.eup %3192 }
0x127a   :  { %vm1794_vm10 = vmor %vm1792_vm8, %vm1793_vm7  ;;  %v3195_v16 = vpop.eup %3194 }
0x127b   :  { %v1789_v27 = vsub.f32 1.0, %v1788_v38  ;;  %v1786_v23 = vadd.f32 1.0, %v3195_v16 }
0x127d   :  { %v1790_v37 = vmul.f32 %v3191_v19, %v1789_v27  ;;  %3196 = vrcp.f32 %v1786_v23  ;;  %v1813_v63 = vand.u32 2147483648, %v1786_v23  ;;  %vm1807_vm13 = vweird.f32 %v1786_v23 }
0x127e   :  { %v1811_v46 = vand.u32 2147483647, %v1786_v23 }
0x127f   :  { %v1791_v42 = vadd.f32 %v3191_v19, %v1790_v37  ;;  %v1814_v58 = vor.u32 1.1754944e-38, %v1813_v63 }
0x1280   :  { %vm1812_vm15 = vcmp.eq.f32.partialorder %v1811_v46, 8.507059e+37 }
0x1281   :  { %v1795_v14 = vsel %vm1794_vm10, %v3191_v19, %v1791_v42 }
0x1282   :  { %v1800_v17 = vsel %vm1797_vm11, %v1799_v22, %v1795_v14  ;;  %vm2255_vm11 = vcmask 516096  }
0x1283   :  { %v1822_v20 = vmul.f32 %v3193_v15, %v1800_v17  ;;  %v1821_v43 = vmul.f32 %v1819_v11, %v1800_v17  ;;  %v3197_v53 = vpop.eup %3196 }
0x1284   :  { %v1803_v59 = vmul.f32 %v3197_v53, %v1786_v23  ;;  %vm1808_vm12 = vweird.f32 %v3197_v53 }
0x1285   :  { %1824 = vrot.lane.b32.xlu1 %v1822_v20, %s3558_s5  ;;  %vm1809_vm14 = vmor %vm1807_vm13, %vm1808_vm12  ;;  %vm2250_vm12 = vcmask 517120  }
0x1286   :  { %v1804_v12 = vsub.f32 1.0, %v1803_v59 }
0x1288   :  { %v1805_v29 = vmul.f32 %v3197_v53, %v1804_v12 }
0x128a   :  { %v1806_v34 = vadd.f32 %v3197_v53, %v1805_v29 }
0x128c   :  { %v1810_v60 = vsel %vm1809_vm14, %v3197_v53, %v1806_v34 }
0x128d   :  { %v1815_v3 = vsel %vm1812_vm15, %v1814_v58, %v1810_v60 }
0x12f7   :  { %v1825_v31 = vpop.permute.xlu1 %1824 }
0x12f8   :  { %v1827_v32 = vadd.f32 %v1825_v31, %v1821_v43 }
0x12fa   :  { %3198 = vtanh.f32 %v1827_v32  ;;  %v1918_v2 = vrot.slane %v1827_v32, 6 }
0x1300   :  { %v3199_v39 = vpop.eup %3198 }
0x1301   :  { %v4494_v44 = vmul.f32 %v3199_v39, %v1815_v3 }
0x1303   :  { %v1831_v45 = vrot.slane %v4494_v44, 6 }
0x1305   :  { %1832 = vrot.lane.b32.xlu2 %v1831_v45, %s3558_s5 }
0x135f   :  { %v4498_v50 = vpop.permute.xlu2 %1832 }
0x1360   :  { %2903 = vmatmul.msk.f32.vlgmr.msra.gmra.mxu0 %vm205_vm1, %v4498_v50  ;;  %2904 = vmatmul.msk.f32.vlgmr.msra.gmra.mxu1 %vm205_vm1, %v4498_v50 }
0x13dd   :  { %v1853_v10 = vpop.f32.mrf.mxu0  ;;  %v1873_v55 = vpop.f32.mrf.mxu1 }
0x13de   :  { %v1876_v35 = vadd.f32 %v1853_v10, %v4507_v49  ;;  %v1877_v5 = vadd.f32 %v1873_v55, %v4513_v30 }
0x13e0   :  { %v2905_v52 = vmul.f32 -1.442695, %v1876_v35  ;;  %v2906_v25 = vmul.f32 -1.442695, %v1877_v5 }
0x13e2   :  { %3200 = vpow2.f32 %v2905_v52 }
0x13e8   :  { %v3201_v57 = vpop.eup %3200 }
0x13e9   :  { %v1884_v8 = vadd.f32 1.0, %v3201_v57 }
0x13eb   :  { %3202 = vrcp.f32 %v1884_v8  ;;  %v1897_v21 = vand.u32 2147483648, %v1884_v8  ;;  %v1895_v62 = vand.u32 2147483647, %v1884_v8  ;;  %vm1891_vm5 = vweird.f32 %v1884_v8 }
0x13ec   :  { %3204 = vtanh.f32 %v1877_v5 }
0x13ed   :  { %v1898_v51 = vor.u32 1.1754944e-38, %v1897_v21  ;;  %vm1896_vm4 = vcmp.eq.f32.partialorder %v1895_v62, 8.507059e+37  ;;  %3206 = vpow2.f32 %v2906_v25 }
0x13f1   :  { %v3203_v54 = vpop.eup %3202 }
0x13f2   :  { %v1887_v7 = vmul.f32 %v3203_v54, %v1884_v8  ;;  %vm1892_vm0 = vweird.f32 %v3203_v54  ;;  %v3205_v18 = vpop.eup %3204 }
0x13f3   :  { %vm1893_vm3 = vmor %vm1891_vm5, %vm1892_vm0  ;;  %v3207_v19 = vpop.eup %3206 }
0x13f4   :  { %v1888_v28 = vsub.f32 1.0, %v1887_v7  ;;  %v1885_v13 = vadd.f32 1.0, %v3207_v19 }
0x13f6   :  { %v1889_v61 = vmul.f32 %v3203_v54, %v1888_v28  ;;  %3208 = vrcp.f32 %v1885_v13  ;;  %v1912_v11 = vand.u32 2147483648, %v1885_v13  ;;  %vm1906_vm7 = vweird.f32 %v1885_v13 }
0x13f7   :  { %v1910_v14 = vand.u32 2147483647, %v1885_v13 }
0x13f8   :  { %v1890_v41 = vadd.f32 %v3203_v54, %v1889_v61  ;;  %v1913_v17 = vor.u32 1.1754944e-38, %v1912_v11 }
0x13f9   :  { %vm1911_vm10 = vcmp.eq.f32.partialorder %v1910_v14, 8.507059e+37 }
0x13fa   :  { %v1894_v4 = vsel %vm1893_vm3, %v3203_v54, %v1890_v41 }
0x13fb   :  { %v1899_v33 = vsel %vm1896_vm4, %v1898_v51, %v1894_v4 }
0x13fc   :  { %v1921_v1 = vmul.f32 %v3205_v18, %v1899_v33  ;;  %v1920_v6 = vmul.f32 %v1918_v2, %v1899_v33  ;;  %v3209_v38 = vpop.eup %3208 }
0x13fd   :  { %v1902_v27 = vmul.f32 %v3209_v38, %v1885_v13  ;;  %vm1907_vm6 = vweird.f32 %v3209_v38 }
0x13fe   :  { %1923 = vrot.lane.b32.xlu0 %v1921_v1, %s3558_s5  ;;  %vm1908_vm8 = vmor %vm1906_vm7, %vm1907_vm6 }
0x13ff   :  { %v1903_v36 = vsub.f32 1.0, %v1902_v27 }
0x1401   :  { %v1904_v37 = vmul.f32 %v3209_v38, %v1903_v36 }
0x1403   :  { %v1905_v22 = vadd.f32 %v3209_v38, %v1904_v37 }
0x1405   :  { %v1909_v15 = vsel %vm1908_vm8, %v3209_v38, %v1905_v22 }
0x1406   :  { %v1914_v43 = vsel %vm1911_vm10, %v1913_v17, %v1909_v15 }
0x1470   :  { %v1924_v9 = vpop.permute.xlu0 %1923 }
0x1471   :  { %v1926_v42 = vadd.f32 %v1924_v9, %v1920_v6 }
0x1473   :  { %3210 = vtanh.f32 %v1926_v42  ;;  %v2022_v57 = vrot.slane %v1926_v42, 6 }
0x1479   :  { %v3211_v20 = vpop.eup %3210 }
0x147a   :  { %v4517_v24 = vmul.f32 %v3211_v20, %v1914_v43 }
0x147c   :  { %1930 = vrot.lane.b32.xlu1 %v4517_v24, %s3558_s5 }
0x14ee   :  { %v1931_v16 = vpop.permute.xlu1 %1930 }
0x14ef   :  { %v2323_v23 = vsel %vm1219_vm9, %v1931_v16, %v4498_v50  ;;  %2907 = vmatmul.msk.f32.vlgmr.msra.gmra.mxu2 %vm205_vm1, %v1931_v16  ;;  %2908 = vmatmul.msk.f32.vlgmr.msra.gmra.mxu3 %vm205_vm1, %v1931_v16 }
0x14f0   :  { %v2327_v53 = vrot.slane %v2323_v23, 1  ;;  %2329 = vst.msk [vmem:[#allocation17 + $0x4] sm:$0x1] %vm2255_vm11, %v2323_v23 }
0x14f1   :  { %2325 = vst.msk [vmem:[#allocation2 + $0x8] sm:$0x3] %vm2250_vm12, %v2323_v23 }
0x14f2   :  { %2330 = vst.msk [vmem:[#allocation17 + $0xc] sm:$0x1] %vm2255_vm11, %v2327_v53 }
0x1572   :  { %v1951_v59 = vpop.f32.mrf.mxu2  ;;  %v1971_v63 = vpop.f32.mrf.mxu3 }
0x1573   :  { %v1976_v12 = vrot.slane %v1951_v59, 6  ;;  %v1977_v46 = vrot.slane %v1971_v63, 6 }
0x1575   :  { %v1980_v29 = vadd.f32 %v1976_v12, %v4507_v49  ;;  %v1981_v58 = vadd.f32 %v1977_v46, %v4513_v30 }
0x1577   :  { %v2909_v31 = vmul.f32 -1.442695, %v1980_v29  ;;  %v2910_v28 = vmul.f32 -1.442695, %v1981_v58 }
0x1579   :  { %3212 = vpow2.f32 %v2909_v31 }
0x157f   :  { %v3213_v32 = vpop.eup %3212 }
0x1580   :  { %v1988_v34 = vadd.f32 1.0, %v3213_v32 }
0x1582   :  { %3214 = vrcp.f32 %v1988_v34  ;;  %v2001_v45 = vand.u32 2147483648, %v1988_v34  ;;  %v1999_v10 = vand.u32 2147483647, %v1988_v34  ;;  %vm1995_vm14 = vweird.f32 %v1988_v34 }
0x1583   :  { %3216 = vtanh.f32 %v1981_v58 }
0x1584   :  { %v2002_v52 = vor.u32 1.1754944e-38, %v2001_v45  ;;  %vm2000_vm0 = vcmp.eq.f32.partialorder %v1999_v10, 8.507059e+37  ;;  %3218 = vpow2.f32 %v2910_v28 }
0x1588   :  { %v3215_v60 = vpop.eup %3214 }
0x1589   :  { %v1991_v39 = vmul.f32 %v3215_v60, %v1988_v34  ;;  %vm1996_vm13 = vweird.f32 %v3215_v60  ;;  %v3217_v55 = vpop.eup %3216 }
0x158a   :  { %vm1997_vm15 = vmor %vm1995_vm14, %vm1996_vm13  ;;  %v3219_v21 = vpop.eup %3218 }
0x158b   :  { %v1992_v3 = vsub.f32 1.0, %v1991_v39  ;;  %v1989_v61 = vadd.f32 1.0, %v3219_v21 }
0x158d   :  { %v1993_v50 = vmul.f32 %v3215_v60, %v1992_v3  ;;  %3220 = vrcp.f32 %v1989_v61  ;;  %v2016_v1 = vand.u32 2147483648, %v1989_v61  ;;  %vm2010_vm3 = vweird.f32 %v1989_v61 }
0x158e   :  { %v2014_v6 = vand.u32 2147483647, %v1989_v61  ;;  %v2303_v3 = vrot.slane %v4517_v24, 2 }
0x158f   :  { %v1994_v35 = vadd.f32 %v3215_v60, %v1993_v50  ;;  %v2017_v19 = vor.u32 1.1754944e-38, %v2016_v1 }
0x1590   :  { %vm2015_vm6 = vcmp.eq.f32.partialorder %v2014_v6, 8.507059e+37 }
0x1591   :  { %v1998_v8 = vsel %vm1997_vm15, %v3215_v60, %v1994_v35 }
0x1592   :  { %v2003_v54 = vsel %vm2000_vm0, %v2002_v52, %v1998_v8 }
0x1593   :  { %v2025_v5 = vmul.f32 %v3217_v55, %v2003_v54  ;;  %v2024_v7 = vmul.f32 %v2022_v57, %v2003_v54  ;;  %v3221_v62 = vpop.eup %3220 }
0x1594   :  { %v2006_v41 = vmul.f32 %v3221_v62, %v1989_v61  ;;  %vm2011_vm5 = vweird.f32 %v3221_v62 }
0x1595   :  { %2027 = vrot.lane.b32.xlu2 %v2025_v5, %s3558_s5  ;;  %vm2012_vm4 = vmor %vm2010_vm3, %vm2011_vm5  ;;  %vm2288_vm3 = vcmask 521220  }
0x1596   :  { %v2007_v51 = vsub.f32 1.0, %v2006_v41 }
0x1598   :  { %v2008_v2 = vmul.f32 %v3221_v62, %v2007_v51 }
0x159a   :  { %v2009_v33 = vadd.f32 %v3221_v62, %v2008_v2 }
0x159c   :  { %v2013_v25 = vsel %vm2012_vm4, %v3221_v62, %v2009_v33 }
0x159d   :  { %v2018_v38 = vsel %vm2015_vm6, %v2017_v19, %v2013_v25 }
0x15ef   :  { %v2028_v4 = vpop.permute.xlu2 %2027 }
0x15f0   :  { %v2030_v18 = vadd.f32 %v2028_v4, %v2024_v7  ;;  %v2354_v4 = vrot.slane %v4435_v47, 6 }
0x15f2   :  { %3222 = vtanh.f32 %v2030_v18  ;;  %v2127_v34 = vrot.slane %v2030_v18, 6 }
0x15f8   :  { %v3223_v13 = vpop.eup %3222 }
0x15f9   :  { %v4531_v27 = vmul.f32 %v3223_v13, %v2018_v38 }
0x15fb   :  { %v2034_v36 = vrot.slane %v4531_v27, 2  ;;  %v2282_v2 = vrot.slane %v4531_v27, 6 }
0x15fd   :  { %2035 = vrot.lane.b32.xlu0 %v2034_v36, %s3558_s5 }
0x166f   :  { %v2036_v37 = vpop.permute.xlu0 %2035 }
0x1670   :  { %2911 = vmatmul.msk.f32.vlgmr.msrb.gmra.mxu0 %vm205_vm1, %v2036_v37  ;;  %2912 = vmatmul.msk.f32.vlgmr.msrb.gmra.mxu1 %vm205_vm1, %v2036_v37 }
0x16ed   :  { %v2056_v9 = vpop.f32.mrf.mxu0  ;;  %v2076_v17 = vpop.f32.mrf.mxu1 }
0x16ee   :  { %v2081_v42 = vrot.slane %v2056_v9, 4  ;;  %v2082_v20 = vrot.slane %v2076_v17, 4 }
0x16f0   :  { %v2085_v22 = vadd.f32 %v2081_v42, %v4507_v49  ;;  %v2086_v16 = vadd.f32 %v2082_v20, %v4513_v30 }
0x16f2   :  { %v2913_v11 = vmul.f32 -1.442695, %v2085_v22  ;;  %v2914_v45 = vmul.f32 -1.442695, %v2086_v16 }
0x16f4   :  { %3224 = vpow2.f32 %v2913_v11 }
0x16fa   :  { %v3225_v14 = vpop.eup %3224 }
0x16fb   :  { %v2093_v15 = vadd.f32 1.0, %v3225_v14 }
0x16fd   :  { %3226 = vrcp.f32 %v2093_v15  ;;  %v2106_v59 = vand.u32 2147483648, %v2093_v15  ;;  %v2104_v29 = vand.u32 2147483647, %v2093_v15  ;;  %vm2100_vm8 = vweird.f32 %v2093_v15 }
0x16fe   :  { %3228 = vtanh.f32 %v2086_v16 }
0x16ff   :  { %v2107_v32 = vor.u32 1.1754944e-38, %v2106_v59  ;;  %vm2105_vm13 = vcmp.eq.f32.partialorder %v2104_v29, 8.507059e+37  ;;  %3230 = vpow2.f32 %v2914_v45 }
0x1703   :  { %v3227_v43 = vpop.eup %3226 }
0x1704   :  { %v2096_v23 = vmul.f32 %v3227_v43, %v2093_v15  ;;  %vm2101_vm7 = vweird.f32 %v3227_v43  ;;  %v3229_v46 = vpop.eup %3228 }
0x1705   :  { %vm2102_vm10 = vmor %vm2100_vm8, %vm2101_vm7  ;;  %v3231_v50 = vpop.eup %3230 }
0x1706   :  { %v2097_v53 = vsub.f32 1.0, %v2096_v23  ;;  %v2094_v10 = vadd.f32 1.0, %v3231_v50 }
0x1708   :  { %v2098_v12 = vmul.f32 %v3227_v43, %v2097_v53  ;;  %3232 = vrcp.f32 %v2094_v10  ;;  %v2121_v7 = vand.u32 2147483648, %v2094_v10  ;;  %vm2115_vm15 = vweird.f32 %v2094_v10 }
0x1709   :  { %v2119_v24 = vand.u32 2147483647, %v2094_v10 }
0x170a   :  { %v2099_v31 = vadd.f32 %v3227_v43, %v2098_v12  ;;  %v2122_v21 = vor.u32 1.1754944e-38, %v2121_v7 }
0x170b   :  { %vm2120_vm5 = vcmp.eq.f32.partialorder %v2119_v24, 8.507059e+37 }
0x170c   :  { %v2103_v63 = vsel %vm2102_vm10, %v3227_v43, %v2099_v31 }
0x170d   :  { %v2108_v60 = vsel %vm2105_vm13, %v2107_v32, %v2103_v63 }
0x170e   :  { %v2130_v58 = vmul.f32 %v3229_v46, %v2108_v60  ;;  %v2129_v39 = vmul.f32 %v2127_v34, %v2108_v60  ;;  %v3233_v35 = vpop.eup %3232  ;;  %v2334_v60 = vrot.slane %v4468_v48, 2 }
0x170f   :  { %v2111_v52 = vmul.f32 %v3233_v35, %v2094_v10  ;;  %vm2116_vm14 = vweird.f32 %v3233_v35 }
0x1710   :  { %2132 = vrot.lane.b32.xlu1 %v2130_v58, %s3558_s5  ;;  %vm2117_vm0 = vmor %vm2115_vm15, %vm2116_vm14  ;;  %vm2267_vm15 = vcmask 519170  }
0x1711   :  { %v2112_v57 = vsub.f32 1.0, %v2111_v52 }
0x1713   :  { %v2113_v8 = vmul.f32 %v3233_v35, %v2112_v57 }
0x1715   :  { %v2114_v5 = vadd.f32 %v3233_v35, %v2113_v8 }
0x1717   :  { %v2118_v28 = vsel %vm2117_vm0, %v3233_v35, %v2114_v5 }
0x1718   :  { %2279 = vrot.lane.b32.xlu1 %v4468_v48, %s3558_s5  ;;  %v2123_v62 = vsel %vm2120_vm5, %v2122_v21, %v2118_v28  ;;  %vm2309_vm5 = vcmask 523270  }
0x1720   :  { %2304 = vrot.lane.b32.xlu1 %v2303_v3, %s3558_s5 }
0x1782   :  { %v2133_v55 = vpop.permute.xlu1 %2132 }
0x1783   :  { %v4544_v54 = vadd.f32 %v2133_v55, %v2129_v39 }
0x1785   :  { %3234 = vtanh.f32 %v4544_v54  ;;  %v2232_v29 = vrot.slane %v4544_v54, 6 }
0x178a   :  { %v2280_v1 = vpop.permute.xlu1 %2279 }
0x178b   :  { %v3235_v61 = vpop.eup %3234 }
0x178c   :  { %v2137_v41 = vmul.f32 %v3235_v61, %v2123_v62 }
0x178e   :  { %2351 = vrot.lane.b32.xlu1 %v2137_v41, %s3558_s5  ;;  %v2139_v51 = vrot.slane %v2137_v41, 4 }
0x1790   :  { %2140 = vrot.lane.b32.xlu2 %v2139_v51, %s3558_s5 }
0x1792   :  { %v4565_v19 = vpop.permute.xlu1 %2304 }
0x1798   :  { %2258 = vrot.lane.b32.xlu2 %v4435_v47, %s3558_s5 }
0x17a0   :  { %2283 = vrot.lane.b32.xlu2 %v2282_v2, %s3558_s5 }
0x17a8   :  { %2331 = vrot.lane.b32.xlu2 %v4531_v27, %s3558_s5 }
0x17b0   :  { %2355 = vrot.lane.b32.xlu2 %v2354_v4, %s3558_s5  ;;  %v2374_v4 = vrot.slane %v4388_v26, 2 }
0x17ea   :  { %v2141_v18 = vpop.permute.xlu2 %2140 }
0x17eb   :  { %2915 = vmatmul.msk.f32.vlgmr.msrb.gmra.mxu2 %vm205_vm1, %v2141_v18  ;;  %2916 = vmatmul.msk.f32.vlgmr.msrb.gmra.mxu3 %vm205_vm1, %v2141_v18 }
0x17f2   :  { %v4559_v33 = vpop.permute.xlu2 %2258 }
0x17fa   :  { %v2284_v6 = vpop.permute.xlu2 %2283 }
0x17fb   :  { %v4562_v25 = vsel %vm1219_vm9, %v2280_v1, %v2284_v6 }
0x17fc   :  { %2289 = vst.msk [vmem:[#allocation2] sm:$0x30] %vm2288_vm3, %v4562_v25 }
0x1800   :  { %v2352_v13 = vpop.permute.xlu1 %2351 }
0x1802   :  { %v4567_v47 = vpop.permute.xlu2 %2331 }
0x180a   :  { %v2356_v38 = vpop.permute.xlu2 %2355 }
0x180b   :  { %v4570_v27 = vsel %vm1219_vm9, %v2352_v13, %v2356_v38  ;;  %v2418_v38 = vld [vmem:[%s4857_s8 + $0x38] sm:$0xff] }
0x180c   :  { %2360 = vst.msk [vmem:[#allocation2 + $0x8] sm:$0x30] %vm2288_vm3, %v4570_v27  ;;  %2434 = vmatpush.msra.mxu0 %v2418_v38  ;;  %v2652_v38 = vld [vmem:[%s4861_s12 + $0xc0] sm:$0xff]  ;;  %vm2759_vm3 = vcmask 19456  }
0x186e   :  { %v2161_v36 = vpop.f32.mrf.mxu2  ;;  %v2181_v14 = vpop.f32.mrf.mxu3 }
0x186f   :  { %v2186_v37 = vrot.slane %v2161_v36, 2  ;;  %v2187_v15 = vrot.slane %v2181_v14, 2  ;;  %v2417_v36 = vld [vmem:[%s4857_s8 + $0x30] sm:$0xff] }
0x1870   :  { %2435 = vmatpush.msra.mxu0 %v2417_v36  ;;  %v2635_v36 = vld [vmem:[%s4861_s12 + $0x38] sm:$0xff] }
0x1871   :  { %v2190_v9 = vadd.f32 %v2186_v37, %v4507_v49  ;;  %v2191_v20 = vadd.f32 %v2187_v15, %v4513_v30  ;;  %v2261_v30 = vrot.slane %v2137_v41, 2  ;;  %v2416_v37 = vld [vmem:[%s4857_s8 + $0x28] sm:$0xff] }
0x1872   :  { %2436 = vmatpush.msra.mxu0 %v2416_v37  ;;  %v2634_v37 = vld [vmem:[%s4861_s12 + $0x30] sm:$0xff] }
0x1873   :  { %v2917_v42 = vmul.f32 -1.442695, %v2190_v9  ;;  %v2918_v58 = vmul.f32 -1.442695, %v2191_v20  ;;  %v2414_v9 = vld [vmem:[%s4857_s8 + $0x18] sm:$0xff] }
0x1875   :  { %3236 = vpow2.f32 %v2917_v42  ;;  %v2413_v42 = vld [vmem:[%s4857_s8 + $0x10] sm:$0xff] }
0x187b   :  { %v3237_v22 = vpop.eup %3236 }
0x187c   :  { %v2198_v11 = vadd.f32 1.0, %v3237_v22  ;;  %v2412_v22 = vld [vmem:[%s4857_s8 + $0x8] sm:$0xff] }
0x187e   :  { %3238 = vrcp.f32 %v2198_v11  ;;  %v2211_v23 = vand.u32 2147483648, %v2198_v11  ;;  %v2209_v59 = vand.u32 2147483647, %v2198_v11  ;;  %vm2205_vm6 = vweird.f32 %v2198_v11 }
0x187f   :  { %3240 = vtanh.f32 %v2191_v20 }
0x1880   :  { %v2212_v49 = vor.u32 1.1754944e-38, %v2211_v23  ;;  %vm2210_vm8 = vcmp.eq.f32.partialorder %v2209_v59, 8.507059e+37  ;;  %3242 = vpow2.f32 %v2918_v58 }
0x1884   :  { %v3239_v17 = vpop.eup %3238 }
0x1885   :  { %v2201_v43 = vmul.f32 %v3239_v17, %v2198_v11  ;;  %vm2206_vm4 = vweird.f32 %v3239_v17  ;;  %v3241_v32 = vpop.eup %3240  ;;  %v2411_v11 = vld [vmem:[%s4857_s8] sm:$0xff] }
0x1886   :  { %vm2207_vm7 = vmor %vm2205_vm6, %vm2206_vm4  ;;  %v3243_v39 = vpop.eup %3242 }
0x1887   :  { %v2202_v16 = vsub.f32 1.0, %v2201_v43  ;;  %v2199_v3 = vadd.f32 1.0, %v3243_v39 }
0x1889   :  { %v2203_v53 = vmul.f32 %v3239_v17, %v2202_v16  ;;  %3244 = vrcp.f32 %v2199_v3  ;;  %v2226_v55 = vand.u32 2147483648, %v2199_v3  ;;  %vm2220_vm13 = vweird.f32 %v2199_v3 }
0x188b   :  { %v2204_v12 = vadd.f32 %v3239_v17, %v2203_v53  ;;  %v2227_v54 = vor.u32 1.1754944e-38, %v2226_v55 }
0x188d   :  { %v2208_v31 = vsel %vm2207_vm7, %v3239_v17, %v2204_v12 }
0x188e   :  { %v2213_v34 = vsel %vm2210_vm8, %v2212_v49, %v2208_v31 }
0x188f   :  { %v2235_v63 = vmul.f32 %v3241_v32, %v2213_v34  ;;  %v2234_v46 = vmul.f32 %v2232_v29, %v2213_v34  ;;  %v3245_v45 = vpop.eup %3244 }
0x1890   :  { %v2216_v50 = vmul.f32 %v3245_v45, %v2199_v3  ;;  %vm2221_vm10 = vweird.f32 %v3245_v45 }
0x1891   :  { %2237 = vrot.lane.b32.xlu0 %v2235_v63, %s3558_s5  ;;  %vm2222_vm14 = vmor %vm2220_vm13, %vm2221_vm10 }
0x1892   :  { %v2217_v10 = vsub.f32 1.0, %v2216_v50 }
0x1894   :  { %v2218_v35 = vmul.f32 %v3245_v45, %v2217_v10 }
0x1896   :  { %v2219_v8 = vadd.f32 %v3245_v45, %v2218_v35 }
0x1898   :  { %v2223_v48 = vsel %vm2222_vm14, %v3245_v45, %v2219_v8 }
0x1899   :  { %2262 = vrot.lane.b32.xlu0 %v2261_v30, %s3558_s5 }
0x18a1   :  { %2300 = vrot.lane.b32.xlu0 %v4494_v44, %s3558_s5  ;;  %v2224_v44 = vand.u32 2147483647, %v2199_v3 }
0x18a3   :  { %vm2225_vm0 = vcmp.eq.f32.partialorder %v2224_v44, 8.507059e+37 }
0x18a4   :  { %v2228_v28 = vsel %vm2225_vm0, %v2227_v54, %v2223_v48 }
0x18a9   :  { %2335 = vrot.lane.b32.xlu0 %v2334_v60, %s3558_s5 }
0x1903   :  { %v2238_v52 = vpop.permute.xlu0 %2237 }
0x1904   :  { %v2240_v57 = vadd.f32 %v2238_v52, %v2234_v46 }
0x1906   :  { %3246 = vtanh.f32 %v2240_v57 }
0x190b   :  { %v2263_v5 = vpop.permute.xlu0 %2262 }
0x190c   :  { %v3247_v7 = vpop.eup %3246  ;;  %v2265_v24 = vsel %vm1219_vm9, %v4559_v33, %v2263_v5 }
0x190d   :  { %2268 = vst.msk [vmem:[#allocation2] sm:$0xc] %vm2267_vm15, %v2265_v24  ;;  %v2242_v21 = vmul.f32 %v3247_v7, %v2228_v28  ;;  %v2642_v28 = vld [vmem:[%s4861_s12 + $0x70] sm:$0xff] }
0x190e   :  { %2270 = vst [vmem:[#allocation1] sm:$0xff] %v2265_v24  ;;  %v2643_v24 = vld [vmem:[%s4861_s12 + $0x78] sm:$0xff] }
0x190f   :  { %2391 = vrot.lane.b32.xlu2 %v2242_v21, %s3560_s7  ;;  %2371 = vrot.lane.b32.xlu0 %v2242_v21, %s3558_s5  ;;  %v2245_v61 = vrot.slane %v2242_v21, 6  ;;  %s4636_s7 = sld [smem:[#allocation3 + $0x9]]  ;;  %v2659_v21 = vld [vmem:[%s4861_s12 + $0xf8] sm:$0xff] }
0x1910   :  { %2664 = vmatpush.msra.mxu2 %v2643_v24  ;;  %2684 = vmatpush.msra.mxu3 %v2659_v21 }
0x1911   :  { %2246 = vrot.lane.b32.xlu1 %v2245_v61, %s3558_s5  ;;  %v2641_v61 = vld [vmem:[%s4861_s12 + $0x68] sm:$0xff] }
0x1912   :  { %2665 = vmatpush.msra.mxu2 %v2642_v28 }
0x1913   :  { %v2301_v62 = vpop.permute.xlu0 %2300 }
0x1914   :  { %v2307_v41 = vsel %vm1219_vm9, %v2301_v62, %v4565_v19  ;;  %v2658_v62 = vld [vmem:[%s4861_s12 + $0xf0] sm:$0xff]  ;;  %2666 = vmatpush.msra.mxu2 %v2641_v61 }
0x1915   :  { %v2272_v51 = vld [vmem:[#allocation1 + $0x2] ss:$9 sm:$0xff]  ;;  %2310 = vst.msk [vmem:[#allocation2] sm:$0xc0] %vm2309_vm5, %v2307_v41  ;;  %s2939_s6 = sshll.u32 %s4636_s7, 1  ;;  %s2517_s7 = scalar_lea.vmem [#allocation2], %s2927_s15  ;;  %2685 = vmatpush.msra.mxu3 %v2658_v62 }
0x1916   :  { %v2274_v2 = vld [vmem:[#allocation1 + $0x3] ss:$9 sm:$0xff]  ;;  %2277 = vst.msk [vmem:[#allocation17 + $0x1] sm:$0x1] %vm2255_vm11, %v2272_v51  ;;  %s2571_s30 = scalar_lea.vmem [#allocation2], %s2939_s6  ;;  %s4777_s6 = sld [smem:[#allocation3 + $0xa]] }
0x1917   :  { %2278 = vst.msk [vmem:[#allocation17 + $0x9] sm:$0x1] %vm2255_vm11, %v2274_v2  ;;  %2395 = vrot.lane.b32.xlu0 %v4195_v40, %s3561_s1  ;;  %s4639_s1 = sld [smem:[#allocation3 + $0x2]]  ;;  %v2640_v51 = vld [vmem:[%s4861_s12 + $0x60] sm:$0xff] }
0x1918   :  { %2291 = vst [vmem:[#allocation1] sm:$0xff] %v4562_v25  ;;  %v2454_v2 = vld [vmem:[#allocation11 + $0x38] sm:$0xff]  ;;  %2667 = vmatpush.msra.mxu2 %v2640_v51 }
0x1919   :  { %2375 = vrot.lane.b32.xlu1 %v2374_v4, %s3558_s5  ;;  %v2656_v4 = vld [vmem:[%s4861_s12 + $0xe0] sm:$0xff]  ;;  %2470 = vmatpush.msra.mxu1 %v2454_v2 }
0x191b   :  { %v2336_v18 = vpop.permute.xlu0 %2335 }
0x191c   :  { %v2338_v33 = vsel %vm1219_vm9, %v4567_v47, %v2336_v18  ;;  %v2453_v18 = vld [vmem:[#allocation11 + $0x30] sm:$0xff] }
0x191d   :  { %2340 = vst.msk [vmem:[#allocation2 + $0x8] sm:$0xc] %vm2267_vm15, %v2338_v33  ;;  %s2925_s3 = sshll.u32 %s4639_s1, 1  ;;  %s2552_s1 = scalar_lea.vmem [#allocation2], %s2937_s26  ;;  %2471 = vmatpush.msra.mxu1 %v2453_v18 }
0x191e   :  { %s2498_s25 = scalar_lea.vmem [#allocation2], %s2925_s3  ;;  %s2929_s3 = sshll.u32 %s2928_s22, 1 }
0x191f   :  { %v2293_v1 = vld [vmem:[#allocation1 + $0x4] ss:$9 sm:$0xff]  ;;  %s2521_s15 = scalar_lea.vmem [#allocation2], %s2929_s3  ;;  %s2494_s26 = scalar_lea.vmem [#allocation2], %s2923_s11 }
0x1920   :  { %v2295_v6 = vld [vmem:[#allocation1 + $0x5] ss:$9 sm:$0xff]  ;;  %2298 = vst.msk [vmem:[#allocation17 + $0x2] sm:$0x1] %vm2255_vm11, %v2293_v1 }
0x1921   :  { %2299 = vst.msk [vmem:[#allocation17 + $0xa] sm:$0x1] %vm2255_vm11, %v2295_v6  ;;  %v2452_v1 = vld [vmem:[#allocation11 + $0x28] sm:$0xff]  ;;  %v2655_v6 = vld [vmem:[%s4861_s12 + $0xd8] sm:$0xff] }
0x1922   :  { %2312 = vst [vmem:[#allocation1] sm:$0xff] %v2307_v41  ;;  %v2657_v41 = vld [vmem:[%s4861_s12 + $0xe8] sm:$0xff]  ;;  %2472 = vmatpush.msra.mxu1 %v2452_v1 }
0x1923   :  { %2686 = vmatpush.msra.mxu3 %v2657_v41 }
0x1925   :  { %2687 = vmatpush.msra.mxu3 %v2656_v4 }
0x1927   :  { %2688 = vmatpush.msra.mxu3 %v2655_v6 }
0x1929   :  { %v2314_v40 = vld [vmem:[#allocation1 + $0x6] ss:$9 sm:$0xff] }
0x192a   :  { %v2316_v19 = vld [vmem:[#allocation1 + $0x7] ss:$9 sm:$0xff]  ;;  %2319 = vst.msk [vmem:[#allocation17 + $0x3] sm:$0x1] %vm2255_vm11, %v2314_v40 }
0x192b   :  { %2320 = vst.msk [vmem:[#allocation17 + $0xb] sm:$0x1] %vm2255_vm11, %v2316_v19  ;;  %v2638_v40 = vld [vmem:[%s4861_s12 + $0x50] sm:$0xff]  ;;  %v2451_v19 = vld [vmem:[#allocation11 + $0x20] sm:$0xff] }
0x192c   :  { %2342 = vst [vmem:[#allocation1] sm:$0xff] %v2338_v33  ;;  %v2639_v33 = vld [vmem:[%s4861_s12 + $0x58] sm:$0xff]  ;;  %2473 = vmatpush.msra.mxu1 %v2451_v19 }
0x192d   :  { %2668 = vmatpush.msra.mxu2 %v2639_v33 }
0x192f   :  { %2669 = vmatpush.msra.mxu2 %v2638_v40 }
0x1933   :  { %v2344_v26 = vld [vmem:[#allocation1 + $0x2] ss:$9 sm:$0xff] }
0x1934   :  { %v2346_v25 = vld [vmem:[#allocation1 + $0x3] ss:$9 sm:$0xff]  ;;  %2349 = vst.msk [vmem:[#allocation17 + $0x5] sm:$0x1] %vm2255_vm11, %v2344_v26 }
0x1935   :  { %2350 = vst.msk [vmem:[#allocation17 + $0xd] sm:$0x1] %vm2255_vm11, %v2346_v25  ;;  %v2654_v26 = vld [vmem:[%s4861_s12 + $0xd0] sm:$0xff]  ;;  %v2637_v25 = vld [vmem:[%s4861_s12 + $0x48] sm:$0xff] }
0x1936   :  { %2362 = vst [vmem:[#allocation1] sm:$0xff] %v4570_v27  ;;  %v2415_v27 = vld [vmem:[%s4857_s8 + $0x20] sm:$0xff]  ;;  %s4642_s8 = sld [smem:[#allocation3 + $0x6]]  ;;  %2689 = vmatpush.msra.mxu3 %v2654_v26  ;;  %2670 = vmatpush.msra.mxu2 %v2637_v25 }
0x1937   :  { %2437 = vmatpush.msra.mxu0 %v2415_v27  ;;  %v2633_v27 = vld [vmem:[%s4861_s12 + $0x28] sm:$0xff] }
0x1939   :  { %2438 = vmatpush.msra.mxu0 %v2414_v9  ;;  %v2632_v9 = vld [vmem:[%s4861_s12 + $0x20] sm:$0xff] }
0x193b   :  { %2439 = vmatpush.msra.mxu0 %v2413_v42  ;;  %v2450_v42 = vld [vmem:[#allocation11 + $0x18] sm:$0xff] }
0x193c   :  { %s2933_s2 = sshll.u32 %s4642_s8, 1  ;;  %s2579_s8 = scalar_lea.vmem [#allocation2], %s2943_s4  ;;  %2474 = vmatpush.msra.mxu1 %v2450_v42  ;;  %v2710_v42 = vld [vmem:[%s4863_s14 + $0x28] sm:$0xff] }
0x193d   :  { %v2364_v47 = vld [vmem:[#allocation1 + $0x4] ss:$9 sm:$0xff]  ;;  %2440 = vmatpush.msra.mxu0 %v2412_v22  ;;  %s2544_s20 = scalar_lea.vmem [#allocation2], %s2933_s2 }
0x193e   :  { %v2366_v13 = vld [vmem:[#allocation1 + $0x5] ss:$9 sm:$0xff]  ;;  %2369 = vst.msk [vmem:[#allocation17 + $0x6] sm:$0x1] %vm2255_vm11, %v2364_v47 }
0x193f   :  { %2370 = vst.msk [vmem:[#allocation17 + $0xe] sm:$0x1] %vm2255_vm11, %v2366_v13  ;;  %2441 = vmatpush.msra.mxu0 %v2411_v11  ;;  %v2653_v47 = vld [vmem:[%s4861_s12 + $0xc8] sm:$0xff]  ;;  %v2636_v13 = vld [vmem:[%s4861_s12 + $0x40] sm:$0xff]  ;;  %v2651_v22 = vld [vmem:[%s4861_s12 + $0xb8] sm:$0xff] }
0x1940   :  { %2690 = vmatpush.msra.mxu3 %v2653_v47  ;;  %2671 = vmatpush.msra.mxu2 %v2636_v13  ;;  %v2631_v11 = vld [vmem:[%s4861_s12 + $0x18] sm:$0xff] }
0x1942   :  { %2691 = vmatpush.msra.mxu3 %v2652_v38  ;;  %2672 = vmatpush.msra.mxu2 %v2635_v36 }
0x1944   :  { %2673 = vmatpush.msra.mxu2 %v2634_v37  ;;  %2692 = vmatpush.msra.mxu3 %v2651_v22  ;;  %v2709_v22 = vld [vmem:[%s4863_s14 + $0x20] sm:$0xff] }
0x1946   :  { %2674 = vmatpush.msra.mxu2 %v2633_v27  ;;  %v2712_v27 = vld [vmem:[%s4863_s14 + $0x38] sm:$0xff] }
0x1947   :  { %2728 = vmatpush.msrb.mxu0 %v2712_v27 }
0x1948   :  { %2675 = vmatpush.msra.mxu2 %v2632_v9  ;;  %v2711_v9 = vld [vmem:[%s4863_s14 + $0x30] sm:$0xff] }
0x1949   :  { %2729 = vmatpush.msrb.mxu0 %v2711_v9 }
0x194a   :  { %2676 = vmatpush.msra.mxu2 %v2631_v11  ;;  %v2708_v11 = vld [vmem:[%s4863_s14 + $0x18] sm:$0xff] }
0x194b   :  { %2730 = vmatpush.msrb.mxu0 %v2710_v42 }
0x194d   :  { %2731 = vmatpush.msrb.mxu0 %v2709_v22 }
0x194f   :  { %2732 = vmatpush.msrb.mxu0 %v2708_v11 }
0x1969   :  { %v2392_v43 = vpop.permute.xlu2 %2391 }
0x196a   :  { %v2394_v16 = vsel %vm1219_vm9, %v4214_v56, %v2392_v43  ;;  %v2649_v43 = vld [vmem:[%s4861_s12 + $0xa8] sm:$0xff] }
0x1981   :  { %v2372_v14 = vpop.permute.xlu0 %2371 }
0x1983   :  { %v2247_v15 = vpop.permute.xlu1 %2246 }
0x1984   :  { %v2249_v17 = vsel %vm1219_vm9, %v4395_v0, %v2247_v15  ;;  %v2650_v15 = vld [vmem:[%s4861_s12 + $0xb0] sm:$0xff] }
0x1985   :  { %2251 = vst.msk [vmem:[#allocation2] sm:$0x3] %vm2250_vm12, %v2249_v17  ;;  %v2253_v20 = vrot.slane %v2249_v17, 1  ;;  %2693 = vmatpush.msra.mxu3 %v2650_v15  ;;  %vm2625_vm12 = vcmask 1042432   ;;  %v2706_v15 = vld [vmem:[%s4863_s14 + $0x8] sm:$0xff] }
0x1986   :  { %2256 = vst.msk [vmem:[#allocation17] sm:$0x1] %vm2255_vm11, %v2249_v17  ;;  %v2630_v17 = vld [vmem:[%s4861_s12 + $0x10] sm:$0xff] }
0x1987   :  { %2257 = vst.msk [vmem:[#allocation17 + $0x8] sm:$0x1] %vm2255_vm11, %v2253_v20  ;;  %v2448_v20 = vld [vmem:[#allocation11 + $0x8] sm:$0xff]  ;;  %2677 = vmatpush.msra.mxu2 %v2630_v17  ;;  %2694 = vmatpush.msra.mxu3 %v2649_v43  ;;  %v2705_v17 = vld [vmem:[%s4863_s14] sm:$0xff] }
0x1989   :  { %v2396_v0 = vpop.permute.xlu0 %2395 }
0x198a   :  { %v2398_v23 = vsel %vm1219_vm9, %v2396_v0, %v2372_v14  ;;  %v2629_v0 = vld [vmem:[%s4861_s12 + $0x8] sm:$0xff] }
0x198b   :  { %v2399_v53 = vadd.f32 %v2398_v23, %v2394_v16  ;;  %v2376_v59 = vpop.permute.xlu1 %2375  ;;  %v2447_v16 = vld [vmem:[#allocation11] sm:$0xff]  ;;  %v2648_v23 = vld [vmem:[%s4861_s12 + $0xa0] sm:$0xff]  ;;  %2678 = vmatpush.msra.mxu2 %v2629_v0 }
0x198c   :  { %v2378_v12 = vsel %vm1219_vm9, %v2372_v14, %v2376_v59  ;;  %v2449_v14 = vld [vmem:[#allocation11 + $0x10] sm:$0xff]  ;;  %2695 = vmatpush.msra.mxu3 %v2648_v23  ;;  %vm2620_vm9 = vcmask 1040384  }
0x198d   :  { %v4655_v49 = vmul.f32 0.5, %v2399_v53  ;;  %2380 = vst.msk [vmem:[#allocation2 + $0x8] sm:$0xc0] %vm2309_vm5, %v2378_v12  ;;  %2475 = vmatpush.msra.mxu1 %v2449_v14  ;;  %v2628_v53 = vld [vmem:[%s4861_s12] sm:$0xff]  ;;  %v2647_v59 = vld [vmem:[%s4861_s12 + $0x98] sm:$0xff]  ;;  %v2707_v14 = vld [vmem:[%s4863_s14 + $0x10] sm:$0xff] }
0x198e   :  { %2382 = vst [vmem:[#allocation1] sm:$0xff] %v2378_v12  ;;  %2679 = vmatpush.msra.mxu2 %v2628_v53  ;;  %v2646_v12 = vld [vmem:[%s4861_s12 + $0x90] sm:$0xff]  ;;  %2696 = vmatpush.msra.mxu3 %v2647_v59  ;;  %v3054_v53 = vld [vmem:[#allocation14] ss:$0 sm:$0xff] }
0x198f   :  { %v2423_v56 = vrot.slane %v4655_v49, 6  ;;  %2476 = vmatpush.msra.mxu1 %v2448_v20  ;;  %2733 = vmatpush.msrb.mxu0 %v2707_v14  ;;  %v3053_v20 = vld [vmem:[#allocation13] ss:$0 sm:$0xff] }
0x1990   :  { %2697 = vmatpush.msra.mxu3 %v2646_v12 }
0x1991   :  { %2919 = vmatmul.msk.f32.vlgmr.msra.gmra.mxu0 %vm205_vm1, %v2423_v56  ;;  %2477 = vmatpush.msra.mxu1 %v2447_v16  ;;  %v2645_v56 = vld [vmem:[%s4861_s12 + $0x88] sm:$0xff] }
0x1992   :  { %2698 = vmatpush.msra.mxu3 %v2645_v56  ;;  %2734 = vmatpush.msrb.mxu0 %v2706_v15 }
0x1994   :  { %v2526_v29 = vld [vmem:[%s2525_s28] sm:$0x3]  ;;  %2735 = vmatpush.msrb.mxu0 %v2705_v17 }
0x1995   :  { %v2572_v31 = vld [vmem:[%s2571_s30] sm:$0x3]  ;;  %v2386_v63 = vld [vmem:[#allocation1 + $0x7] ss:$9 sm:$0xff]  ;;  %v2536_v46 = vrot.slane %v2526_v29, 2  ;;  %s2767_s30 = sshll.u32 %s4865_s16, 4  ;;  %s2768_s30 = int_to_ptr.hbm [resolvable:$true] %s2767_s30 }
0x1996   :  { %v2499_v32 = vld [vmem:[%s2498_s25] sm:$0x3]  ;;  %v2582_v30 = vrot.slane %v2572_v31, 2  ;;  %2390 = vst.msk [vmem:[#allocation17 + $0xf] sm:$0x1] %vm2255_vm11, %v2386_v63  ;;  %s3564_s25 = smov [#allocation17]  }
0x1997   :  { %v2384_v34 = vld [vmem:[#allocation1 + $0x6] ss:$9 sm:$0xff]  ;;  %v2509_v60 = vrot.slane %v2499_v32, 2  ;;  %s3566_s16 = smov [#allocation21]  }
0x1998   :  { %2389 = vst.msk [vmem:[#allocation17 + $0x7] sm:$0x1] %vm2255_vm11, %v2384_v34  ;;  %v2545_v58 = vld [vmem:[%s2544_s20] sm:$0x3]  ;;  %v3042_v39 = vpack.i.bf16 %v2582_v30, %v2536_v46  ;;  %s2765_s20 = sshll.u32 %s3564_s25, 4  ;;  %s2766_s20 = int_to_ptr.vmem [resolvable:$true] %s2765_s20 }
0x1999   :  { %v2555_v3 = vrot.slane %v2545_v58, 2  ;;  %v2491_v45 = vld [vmem:[%s2490_s21] sm:$0x3]  ;;  %2402 = vst [vmem:[#allocation1] sm:$0xff] %v4655_v49 }
0x199a   :  { %v2501_v50 = vrot.slane %v2491_v45, 2  ;;  %v2518_v10 = vld [vmem:[%s2517_s7] sm:$0x3]  ;;  %3043 = vrot.lane.b32.xlu0 %v3042_v39, %s3558_s5 }
0x199b   :  { %v3037_v35 = vpack.i.bf16 %v2509_v60, %v2555_v3  ;;  %v2528_v52 = vrot.slane %v2518_v10, 2  ;;  %v2553_v8 = vld [vmem:[%s2552_s1] sm:$0x3]  ;;  %s2793_s1 = sshll.u32 %s4867_s18, 4  ;;  %s2805_s18 = sshll.u32 %s3566_s16, 4  ;;  %s2794_s1 = int_to_ptr.hbm [resolvable:$true] %s2793_s1  ;;  %s2806_s18 = int_to_ptr.vmem [resolvable:$true] %s2805_s18 }
0x199c   :  { %v2580_v55 = vld [vmem:[%s2579_s8] sm:$0x3]  ;;  %v2563_v44 = vrot.slane %v2553_v8, 2 }
0x199d   :  { %3038 = vrot.lane.b32.xlu2 %v3037_v35, %s3558_s5  ;;  %v3032_v57 = vpack.i.bf16 %v2528_v52, %v2501_v50  ;;  %v2590_v48 = vrot.slane %v2580_v55, 2  ;;  %v2644_v29 = vld [vmem:[%s4861_s12 + $0x80] sm:$0xff]  ;;  %s2935_s12 = sshll.u32 %s4775_s13, 1 }
0x199e   :  { %2699 = vmatpush.msra.mxu3 %v2644_v29  ;;  %v3052_v34 = vld [vmem:[%s4858_s9] ss:$0 sm:$0xff]  ;;  %s2548_s9 = scalar_lea.vmem [#allocation2], %s2935_s12  ;;  %s2780_s12 = sshll.u32 %s4866_s17, 4  ;;  %s2781_s12 = int_to_ptr.hbm [resolvable:$true] %s2780_s12 }
0x199f   :  { %3033 = vrot.lane.b32.xlu1 %v3032_v57, %s3558_s5  ;;  %v3047_v7 = vpack.i.bf16 %v2590_v48, %v2563_v44  ;;  %v2522_v39 = vld [vmem:[%s2521_s15] sm:$0x3]  ;;  %s3565_s17 = smov [#allocation20]  }
0x19a0   :  { %v2404_v54 = vld [vmem:[#allocation1 + $0x6] ss:$9 sm:$0xff]  ;;  %v2533_v48 = vrot.slane %v2522_v39, 2  ;;  %2773 = dma.vmem_to_hbm [thread:$0]  %s2766_s20, 256, %s2768_s30, [#allocation5], %s3550_s29, %s3550_s29, %s3551_s0  }
0x19a1   :  { %v2406_v5 = vld [vmem:[#allocation1 + $0x7] ss:$9 sm:$0xff]  ;;  %2409 = vst.msk [vmem:[#allocation18] sm:$0x1] %vm2255_vm11, %v2404_v54  ;;  %v2495_v52 = vld [vmem:[%s2494_s26] sm:$0x3] }
0x19a2   :  { %2410 = vst.msk [vmem:[#allocation18 + $0x1] sm:$0x1] %vm2255_vm11, %v2406_v5  ;;  %v2549_v24 = vld [vmem:[%s2548_s9] sm:$0x3]  ;;  %v2506_v28 = vrot.slane %v2495_v52, 2  ;;  %s3563_s26 = smov 1  }
0x19a3   :  { %v2560_v2 = vrot.slane %v2549_v24, 2  ;;  %s2791_s4 = sshll.u32 %s3565_s17, 4  ;;  %s2792_s4 = int_to_ptr.vmem [resolvable:$true] %s2791_s4 }
0x19a7   :  { %3048 = vrot.lane.b32.xlu1 %v3047_v7, %s3558_s5  ;;  %s2941_s5 = sshll.u32 %s4777_s6, 1 }
0x19a8   :  { %s2575_s28 = scalar_lea.vmem [#allocation2], %s2941_s5  ;;  %s3562_s5 = smov [#allocation18]  }
0x19a9   :  { %v2576_v62 = vld [vmem:[%s2575_s28] sm:$0x3]  ;;  %s2778_s15 = sshll.u32 %s3562_s5, 4  ;;  %s2779_s15 = int_to_ptr.vmem [resolvable:$true] %s2778_s15 }
0x19aa   :  { %v2587_v1 = vrot.slane %v2576_v62, 2  ;;  %2786 = dma.vmem_to_hbm [thread:$0]  %s2779_s15, 32, %s2781_s12, [#allocation19], %s4880_s23, %s4880_s23, %s3563_s26  }
0x19f7   :  { %v3039_v31 = vpop.permute.xlu2 %3038 }
0x19f8   :  { %v3040_v63 = vunpack.i.l.bf16 %v3039_v31  ;;  %v3041_v44 = vunpack.i.h.bf16 %v3039_v31 }
0x19fa   :  { %v2567_v50 = vsel %vm205_vm1, %v4655_v49, %v3040_v63  ;;  %v2514_v51 = vsel %vm205_vm1, %v2506_v28, %v3041_v44 }
0x19fb   :  { %v2610_v7 = vrot.slane %v2567_v50, 5  ;;  %v2599_v19 = vrot.slane %v2514_v51, 6 }
0x1a0c   :  { %v3044_v32 = vpop.permute.xlu0 %3043 }
0x1a0d   :  { %v3046_v46 = vunpack.i.h.bf16 %v3044_v32  ;;  %v3045_v10 = vunpack.i.l.bf16 %v3044_v32  ;;  %v3055_v32 = vld [vmem:[#allocation16] ss:$0 sm:$0xff] }
0x1a0e   :  { %v2443_v30 = vpop.f32.mrf.mxu0 }
0x1a0f   :  { %v2444_v58 = vadd.f32 %v3052_v34, %v2443_v30  ;;  %v2594_v57 = vsel %vm205_vm1, %v4655_v49, %v3046_v46  ;;  %v2541_v61 = vsel %vm205_vm1, %v2533_v48, %v3045_v10 }
0x1a10   :  { %v2616_v21 = vrot.slane %v2594_v57, 4  ;;  %v2605_v33 = vrot.slane %v2541_v61, 5 }
0x1a11   :  { %v3034_v60 = vpop.permute.xlu1 %3033  ;;  %v2446_v35 = vmax.f32 %v2444_v58, 0.0 }
0x1a12   :  { %v3036_v3 = vunpack.i.h.bf16 %v3034_v60  ;;  %v3035_v45 = vunpack.i.l.bf16 %v3034_v60  ;;  %v2622_v38 = vsel %vm2620_vm9, %v2599_v19, %v2605_v33 }
0x1a13   :  { %2920 = vmatmul.msk.f32.vlgmr.msra.gmra.mxu1 %vm205_vm1, %v2446_v35 }
0x1a14   :  { %v2540_v8 = vsel %vm205_vm1, %v4655_v49, %v3036_v3  ;;  %v2513_v55 = vsel %vm205_vm1, %v4655_v49, %v3035_v45 }
0x1a15   :  { %v2604_v54 = vrot.slane %v2540_v8, 5  ;;  %v2598_v5 = vrot.slane %v2513_v55, 6 }
0x1a17   :  { %v2621_v41 = vsel %vm2620_vm9, %v2598_v5, %v2604_v54 }
0x1a18   :  { %v2623_v49 = vsel %vm284_vm2, %v2621_v41, %v2610_v7 }
0x1a19   :  { %v3049_v4 = vpop.permute.xlu1 %3048  ;;  %v2626_v18 = vsel %vm2625_vm12, %v2623_v49, %v2616_v21 }
0x1a1a   :  { %v3051_v6 = vunpack.i.h.bf16 %v3049_v4  ;;  %v3050_v40 = vunpack.i.l.bf16 %v3049_v4  ;;  %2680 = vmatmul.f32.vlgmr.msra.gmra.mxu2 %v2626_v18 }
0x1a1c   :  { %v2595_v26 = vsel %vm205_vm1, %v2587_v1, %v3051_v6  ;;  %v2568_v25 = vsel %vm205_vm1, %v2560_v2, %v3050_v40 }
0x1a1d   :  { %v2617_v47 = vrot.slane %v2595_v26, 4  ;;  %v2611_v13 = vrot.slane %v2568_v25, 5 }
0x1a1f   :  { %v2624_v36 = vsel %vm284_vm2, %v2622_v38, %v2611_v13 }
0x1a20   :  { %v2627_v37 = vsel %vm2625_vm12, %v2624_v36, %v2617_v47 }
0x1a21   :  { %2700 = vmatmul.f32.vlgmr.msra.gmra.mxu3 %v2627_v37 }
0x1a90   :  { %v2479_v43 = vpop.f32.mrf.mxu1 }
0x1a91   :  { %v2480_v0 = vadd.f32 %v3053_v20, %v2479_v43 }
0x1a93   :  { %3248 = vtanh.f32 %v2480_v0 }
0x1a99   :  { %v3249_v16 = vpop.eup %3248 }
0x1a9a   :  { %v2484_v23 = vrot.slane %v3249_v16, 1  ;;  %2486 = vst.msk [vmem:[#allocation20] sm:$0x1] %vm2255_vm11, %v3249_v16 }
0x1a9c   :  { %2487 = vst.msk [vmem:[#allocation20 + $0x1] sm:$0x1] %vm2255_vm11, %v2484_v23 }
0x1a9d   :  { %v2681_v59 = vpop.f32.mrf.mxu2  ;;  %2799 = dma.vmem_to_hbm [thread:$0]  %s2792_s4, 32, %s2794_s1, [#allocation19], %s4880_s23, %s4880_s23, %s3563_s26  }
0x1a9e   :  { %v2682_v12 = vadd.f32 %v3054_v53, %v2681_v59  ;;  %s2807_s23 = sshll.u32 %s4868_s19, 4  ;;  %s2808_s23 = int_to_ptr.hbm [resolvable:$true] %s2807_s23 }
0x1aa4   :  { %v2701_v56 = vpop.f32.mrf.mxu3 }
0x1aa5   :  { %v2702_v29 = vadd.f32 %v2701_v56, %v2682_v12 }
0x1aa7   :  { %v2704_v31 = vmax.f32 %v2702_v29, 0.0 }
0x1aa9   :  { %2944 = vmatmul.msk.f32.vlgmr.msrb.gmra.mxu0 %vm205_vm1, %v2704_v31 }
0x1b26   :  { %v2737_v34 = vpop.f32.mrf.mxu0 }
0x1b27   :  { %v2738_v63 = vadd.f32 %v3055_v32, %v2737_v34 }
0x1b29   :  { %v2945_v46 = vmul.f32 -1.442695, %v2738_v63 }
0x1b2b   :  { %3250 = vpow2.f32 %v2945_v46 }
0x1b31   :  { %v3251_v30 = vpop.eup %3250 }
0x1b32   :  { %v2743_v60 = vadd.f32 1.0, %v3251_v30 }
0x1b34   :  { %3252 = vrcp.f32 %v2743_v60  ;;  %v2755_v45 = vand.u32 2147483648, %v2743_v60  ;;  %v2753_v10 = vand.u32 2147483647, %v2743_v60  ;;  %vm2749_vm2 = vweird.f32 %v2743_v60 }
0x1b36   :  { %v2756_v52 = vor.u32 1.1754944e-38, %v2755_v45  ;;  %vm2754_vm4 = vcmp.eq.f32.partialorder %v2753_v10, 8.507059e+37 }
0x1b3a   :  { %v3253_v58 = vpop.eup %3252 }
0x1b3b   :  { %v2745_v39 = vmul.f32 %v3253_v58, %v2743_v60  ;;  %vm2750_vm1 = vweird.f32 %v3253_v58 }
0x1b3c   :  { %vm2751_vm11 = vmor %vm2749_vm2, %vm2750_vm1 }
0x1b3d   :  { %v2746_v3 = vsub.f32 1.0, %v2745_v39 }
0x1b3f   :  { %v2747_v50 = vmul.f32 %v3253_v58, %v2746_v3 }
0x1b41   :  { %v2748_v35 = vadd.f32 %v3253_v58, %v2747_v50 }
0x1b43   :  { %v2752_v57 = vsel %vm2751_vm11, %v3253_v58, %v2748_v35 }
0x1b44   :  { %v2757_v8 = vsel %vm2754_vm4, %v2756_v52, %v2752_v57 }
0x1b45   :  { %2760 = vst.msk [vmem:[#allocation21] sm:$0xf] %vm2759_vm3, %v2757_v8 }
0x1b46   :  { %2810 = dma.vmem_to_hbm [thread:$0]  %s2806_s18, 64, %s2808_s23, [#allocation22]  }
0x1b47   :  { %3540 = dma.done.wait [#allocation5], 256  }
0x1b48   :  { %3541 = vsyncadd [#allocation5], 4294967040 }
0x1b49   :  { %3542 = dma.done.wait [#allocation19], 64  }
0x1b4a   :  { %3543 = vsyncadd [#allocation19], 4294967232 }
0x1b4b   :  { %3544 = dma.done.wait [#allocation22], 64  }
0x1b4c   :  { %3545 = vsyncadd [#allocation22], 4294967232 }
0x1b4d   :  { %2827 = vsyncpa [#allocation4], 1 }
0x1b4e   :  { %2828 = vsyncpa [#allocation9], 1 }
0x1b4f   :  { %2829 = vsyncpa [#allocation12], 1 }
0x1b50   :  { %2830 = vsyncpa [#allocation15], 1 }
0x1b51   :  { %2831 = vsyncpa [#allocation5], 1 }
0x1b52   :  { %2832 = vsyncpa [#allocation19], 1 }
0x1b53   :  { %2833 = vsyncpa [#allocation22], 1 }
0x1b54   :  { %2834 = vsyncpa [#allocation6], 1 }

</bundles_post_ra>
